<compile_context>
chip_gen: v6e
topology: v6e:2x2x1
jax: 0.10.0
libtpu: 0.0.40
codegen_flags: <defaults>
</compile_context>

<pallas_src>
import jax
import jax.numpy as jnp
from jax.experimental import pallas as pl
from jax.experimental.pallas import tpu as pltpu


def _stat_pool_kernel(x_ref, w1_ref, b1_ref, w2_ref, b2_ref, out_ref):
    """One grid step: TB batch rows.  x tile (TB, f, t) -> out tile (TB, 2f)."""
    x = x_ref[...].astype(jnp.float32)                    # (TB, f, t)
    tb, f, t = x.shape
    d = w1_ref.shape[0]

    # Broadcast the tiny conv weights once per grid step so both contractions are
    # standard batched dots (leading batch dim on both operands -> clean MXU lowering,
    # same pattern as the batched einsums in the flash-attention reference kernel).
    w1 = jnp.broadcast_to(w1_ref[...], (tb, d, f))        # (TB, d, f)
    w2 = jnp.broadcast_to(w2_ref[...], (tb, f, d))        # (TB, f, d)

    # attention = Conv1d(f->d, k=1) -> ReLU -> Conv1d(d->f, k=1) -> Softmax(dim=t)
    h = jnp.einsum('bdf,bft->bdt', w1, x,
                   preferred_element_type=jnp.float32)    # (TB, d, t)
    h = jnp.maximum(h + b1_ref[...], 0.0)                 # b1 (d,1) broadcasts over b,t
    logits = jnp.einsum('bfd,bdt->bft', w2, h,
                        preferred_element_type=jnp.float32)  # (TB, f, t)
    logits = logits + b2_ref[...]                         # b2 (f,1)

    # Max-stabilised softmax over the time (lane) axis; EUP reciprocal frees the VALU.
    m = jnp.max(logits, axis=-1, keepdims=True)
    ex = jnp.exp(logits - m)
    denom = jnp.sum(ex, axis=-1, keepdims=True)
    w = ex * pl.reciprocal(denom, approx=True)

    # Weighted statistics over time.
    xw = x * w
    mu = jnp.sum(xw, axis=-1)                             # (TB, f)
    var = jnp.sum(xw * x, axis=-1) - mu * mu
    std = jnp.sqrt(jnp.maximum(var, 1e-4))                # torch .clamp(min=0.0001)

    # Lane-dense (TB, 2f) output tile: one full-width store, no sublane concat.
    out_ref[...] = jnp.concatenate([mu, std], axis=-1).astype(out_ref.dtype)


def _choose_block_b(B, f, t, target_bytes=4 << 20):
    """Batch rows per grid step.

    Pick an exact divisor of B (no ragged last block), a multiple of 8 sublanes when
    possible (unmasked (TB, 2f) output stores), a few MiB of x per step, and >= 2 grid
    steps when B allows it so the 'parallel' axis can shard across v7x's two cores.
    """
    per_row = 4 * f * t
    cap = max(1, target_bytes // per_row)
    if B >= 16:
        cap = min(cap, B // 2)                 # keep at least 2 parallel grid steps
    for tb in range(min(B, cap), 0, -1):       # prefer sublane-aligned divisors
        if B % tb == 0 and (tb % 8 == 0 or tb == B):
            return tb
    for tb in range(min(B, cap), 0, -1):       # fall back to any divisor
        if B % tb == 0:
            return tb
    return B


def statistics_pooling(x, params, *, block_b=None):
    """x: (B, f, t) float32.  Returns (B, 2f) = cat(mu, std) with channel attention."""
    B, f, t = x.shape
    w1, b1, w2, b2 = params
    d = w1.shape[0]
    assert f % 8 == 0 and d == f // 8, (f, d)

    tb = block_b if block_b is not None else _choose_block_b(B, f, t)
    assert B % tb == 0, (B, tb)
    e = 2 * f

    # Column-vector biases so they broadcast over batch and time in-kernel.
    b1c = b1.reshape(d, 1).astype(jnp.float32)
    b2c = b2.reshape(f, 1).astype(jnp.float32)

    # Note: for production speech shapes with very large t, add a second ('arbitrary')
    # grid axis over time chunks carrying online-softmax state in VMEM scratch; the
    # single (TB, f, t) tile here is sized for small utterance/demo shapes.
    return pl.pallas_call(
        _stat_pool_kernel,
        out_shape=jax.ShapeDtypeStruct((B, e), jnp.float32),
        grid=(B // tb,),
        in_specs=[
            pl.BlockSpec((tb, f, t), lambda i: (i, 0, 0)),   # x: TB batch rows per step
            pl.BlockSpec((d, f), lambda i: (0, 0)),          # conv1 weight (d, f)
            pl.BlockSpec((d, 1), lambda i: (0, 0)),          # conv1 bias
            pl.BlockSpec((f, d), lambda i: (0, 0)),          # conv2 weight (f, d)
            pl.BlockSpec((f, 1), lambda i: (0, 0)),          # conv2 bias
        ],
        out_specs=pl.BlockSpec((tb, e), lambda i: (i, 0)),   # lane-dense (TB, 2f) tile
        compiler_params=pltpu.CompilerParams(
            dimension_semantics=("parallel",),
            vmem_limit_bytes=32 * 1024 * 1024,
        ),
    )(x, w1, b1c, w2, b2c)


def _reference(x, params):
    """Pure-JAX mirror of the PyTorch forward (attention='channel', stats='mu_std')."""
    w1, b1, w2, b2 = params
    h = jnp.maximum(jnp.einsum('df,bft->bdt', w1, x) + b1[None, :, None], 0.0)
    logits = jnp.einsum('fd,bdt->bft', w2, h) + b2[None, :, None]
    w = jax.nn.softmax(logits, axis=2)
    mu = jnp.sum(x * w, axis=2)
    std = jnp.sqrt(jnp.clip(jnp.sum(x * x * w, axis=2) - mu * mu, 1e-4, None))
    return jnp.concatenate([mu, std], axis=1)


if __name__ == "__main__":
    # Module hyper-parameters: f input channels, d = f // 8 bottleneck, output = 2f.
    B, f, t = 16, 64, 32
    d = f // 8

    key = jax.random.PRNGKey(0)
    ks = jax.random.split(key, 5)
    x = jax.random.normal(ks[0], (B, f, t), dtype=jnp.float32)

    # Deterministic synthetic parameters (shapes follow the nn.Module __init__;
    # Conv1d(k=1) weights stored with the trailing kernel dim already squeezed).
    w1 = 0.1 * jax.random.normal(ks[1], (d, f), dtype=jnp.float32)   # Conv1d(f->d, k=1)
    b1 = 0.1 * jax.random.normal(ks[2], (d,), dtype=jnp.float32)
    w2 = 0.1 * jax.random.normal(ks[3], (f, d), dtype=jnp.float32)   # Conv1d(d->f, k=1)
    b2 = 0.1 * jax.random.normal(ks[4], (f,), dtype=jnp.float32)
    params = (w1, b1, w2, b2)

    out = jax.block_until_ready(statistics_pooling(x, params))
    ref = _reference(x, params)

    assert out.shape == (B, 2 * f), out.shape
    # Tolerance accounts for the EUP approximate reciprocal in the softmax
    # normalization (relative error ~1e-4, well inside 1e-2).
    max_err = float(jnp.max(jnp.abs(out - ref)))
    assert jnp.allclose(out, ref, atol=1e-2, rtol=1e-2), ("max abs err", max_err)
    print("KERNEL_OK")
</pallas_src>

<mosaic_0001>
module attributes {stable_mosaic.version = 11 : i64} {
  func.func @_stat_pool_kernel(%arg0: i32, %arg1: memref<8x64x32xf32, #tpu.memory_space<vmem>>, %arg2: memref<8x64xf32, #tpu.memory_space<vmem>>, %arg3: memref<8x1xf32, #tpu.memory_space<vmem>>, %arg4: memref<64x8xf32, #tpu.memory_space<vmem>>, %arg5: memref<64x1xf32, #tpu.memory_space<vmem>>, %arg6: memref<8x128xf32, #tpu.memory_space<vmem>>) attributes {dimension_semantics = [#tpu.dimension_semantics<parallel>], iteration_bounds = array<i64: 2>, scalar_prefetch = 0 : i64, scratch_operands = 0 : i64, tpu.core_type = #tpu.core_type<tc>, window_params = [{transform_indices = @transform_0, window_bounds = array<i64: 8, 64, 32>}, {pipeline_mode = #tpu.pipeline_mode<synchronous>, transform_indices = @transform_1, window_bounds = array<i64: 8, 64>}, {pipeline_mode = #tpu.pipeline_mode<synchronous>, transform_indices = @transform_2, window_bounds = array<i64: 8, 1>}, {pipeline_mode = #tpu.pipeline_mode<synchronous>, transform_indices = @transform_3, window_bounds = array<i64: 64, 8>}, {pipeline_mode = #tpu.pipeline_mode<synchronous>, transform_indices = @transform_4, window_bounds = array<i64: 64, 1>}, {transform_indices = @transform_5, window_bounds = array<i64: 8, 128>}]} {
    %c0 = arith.constant 0 : index
    %c0_0 = arith.constant 0 : index
    %c0_1 = arith.constant 0 : index
    %0 = vector.load %arg1[%c0, %c0_0, %c0_1] : memref<8x64x32xf32, #tpu.memory_space<vmem>>, vector<8x64x32xf32>
    %c0_2 = arith.constant 0 : index
    %c0_3 = arith.constant 0 : index
    %1 = vector.load %arg2[%c0_2, %c0_3] : memref<8x64xf32, #tpu.memory_space<vmem>>, vector<8x64xf32>
    %2 = vector.shape_cast %1 : vector<8x64xf32> to vector<1x8x64xf32>
    %3 = vector.broadcast %2 : vector<1x8x64xf32> to vector<8x8x64xf32>
    %c0_4 = arith.constant 0 : index
    %c0_5 = arith.constant 0 : index
    %4 = vector.load %arg4[%c0_4, %c0_5] : memref<64x8xf32, #tpu.memory_space<vmem>>, vector<64x8xf32>
    %5 = vector.shape_cast %4 : vector<64x8xf32> to vector<1x64x8xf32>
    %6 = vector.broadcast %5 : vector<1x64x8xf32> to vector<8x64x8xf32>
    "tpu.trace_start"() <{level = 10 : i32, message = "bdf,bft->bdt"}> : () -> ()
    %cst = arith.constant dense<0.000000e+00> : vector<8x8x32xf32>
    %7 = tpu.matmul %3, %0, %cst {dimension_numbers = #tpu.dot_dimension_numbers<[2], [1], [1], [2], [0, 0, 0, 1, 1, 2], [0], [0]>} : vector<8x8x64xf32>, vector<8x64x32xf32>, vector<8x8x32xf32> -> vector<8x8x32xf32>
    "tpu.trace_stop"() : () -> ()
    %c0_6 = arith.constant 0 : index
    %c0_7 = arith.constant 0 : index
    %8 = vector.load %arg3[%c0_6, %c0_7] : memref<8x1xf32, #tpu.memory_space<vmem>>, vector<8x1xf32>
    %9 = vector.shape_cast %8 : vector<8x1xf32> to vector<1x8x1xf32>
    %10 = vector.broadcast %9 : vector<1x8x1xf32> to vector<8x8x32xf32>
    %11 = arith.addf %7, %10 : vector<8x8x32xf32>
    %cst_8 = arith.constant 0.000000e+00 : f32
    %12 = vector.broadcast %cst_8 : f32 to vector<8x8x32xf32>
    %13 = arith.maximumf %11, %12 : vector<8x8x32xf32>
    "tpu.trace_start"() <{level = 10 : i32, message = "bfd,bdt->bft"}> : () -> ()
    %cst_9 = arith.constant dense<0.000000e+00> : vector<8x64x32xf32>
    %14 = tpu.matmul %6, %13, %cst_9 {dimension_numbers = #tpu.dot_dimension_numbers<[2], [1], [1], [2], [0, 0, 0, 1, 1, 2], [0], [0]>} : vector<8x64x8xf32>, vector<8x8x32xf32>, vector<8x64x32xf32> -> vector<8x64x32xf32>
    "tpu.trace_stop"() : () -> ()
    %c0_10 = arith.constant 0 : index
    %c0_11 = arith.constant 0 : index
    %15 = vector.load %arg5[%c0_10, %c0_11] : memref<64x1xf32, #tpu.memory_space<vmem>>, vector<64x1xf32>
    %16 = vector.shape_cast %15 : vector<64x1xf32> to vector<1x64x1xf32>
    %17 = vector.broadcast %16 : vector<1x64x1xf32> to vector<8x64x32xf32>
    %18 = arith.addf %14, %17 : vector<8x64x32xf32>
    %cst_12 = arith.constant dense<0xFF800000> : vector<8x64xf32>
    %19 = vector.multi_reduction <maximumf>, %18, %cst_12 [2] : vector<8x64x32xf32> to vector<8x64xf32>
    %20 = vector.shape_cast %19 : vector<8x64xf32> to vector<8x64x1xf32>
    %21 = vector.broadcast %20 : vector<8x64x1xf32> to vector<8x64x32xf32>
    %22 = arith.subf %18, %21 : vector<8x64x32xf32>
    %23 = math.exp %22 : vector<8x64x32xf32>
    %cst_13 = arith.constant dense<0.000000e+00> : vector<8x64xf32>
    %24 = vector.multi_reduction <add>, %23, %cst_13 [2] : vector<8x64x32xf32> to vector<8x64xf32>
    %25 = vector.shape_cast %24 : vector<8x64xf32> to vector<8x64x1xf32>
    %26 = tpu.reciprocal %25 {approx = true} : vector<8x64x1xf32> -> vector<8x64x1xf32>
    %27 = vector.broadcast %26 : vector<8x64x1xf32> to vector<8x64x32xf32>
    %28 = arith.mulf %23, %27 : vector<8x64x32xf32>
    %29 = arith.mulf %0, %28 : vector<8x64x32xf32>
    %cst_14 = arith.constant dense<0.000000e+00> : vector<8x64xf32>
    %30 = vector.multi_reduction <add>, %29, %cst_14 [2] : vector<8x64x32xf32> to vector<8x64xf32>
    %31 = arith.mulf %29, %0 : vector<8x64x32xf32>
    %cst_15 = arith.constant dense<0.000000e+00> : vector<8x64xf32>
    %32 = vector.multi_reduction <add>, %31, %cst_15 [2] : vector<8x64x32xf32> to vector<8x64xf32>
    %33 = arith.mulf %30, %30 : vector<8x64xf32>
    %34 = arith.subf %32, %33 : vector<8x64xf32>
    %cst_16 = arith.constant 9.99999974E-5 : f32
    %35 = vector.broadcast %cst_16 : f32 to vector<8x64xf32>
    %36 = arith.maximumf %34, %35 : vector<8x64xf32>
    %37 = math.sqrt %36 : vector<8x64xf32>
    %38 = tpu.concatenate %30, %37 in 1 : vector<8x64xf32>, vector<8x64xf32> -> vector<8x128xf32>
    %c0_17 = arith.constant 0 : index
    %c0_18 = arith.constant 0 : index
    %39 = vector.load %arg6[%c0_17, %c0_18] : memref<8x128xf32, #tpu.memory_space<vmem>>, vector<8x128xf32>
    tpu.vector_store %arg6[%c0_17, %c0_18], %38 {strides = array<i32>} : memref<8x128xf32, #tpu.memory_space<vmem>>, vector<8x128xf32>,
    return
  }
  func.func @transform_0(%arg0: i32) -> (i32, i32, i32) {
    %c0_i32 = arith.constant 0 : i32
    %c0_i32_0 = arith.constant 0 : i32
    %c0_i32_1 = arith.constant 0 : i32
    return %arg0, %c0_i32, %c0_i32_0 : i32, i32, i32
  }
  func.func @transform_1(%arg0: i32) -> (i32, i32) {
    %c0_i32 = arith.constant 0 : i32
    %c0_i32_0 = arith.constant 0 : i32
    %c0_i32_1 = arith.constant 0 : i32
    return %c0_i32, %c0_i32_0 : i32, i32
  }
  func.func @transform_2(%arg0: i32) -> (i32, i32) {
    %c0_i32 = arith.constant 0 : i32
    %c0_i32_0 = arith.constant 0 : i32
    %c0_i32_1 = arith.constant 0 : i32
    return %c0_i32, %c0_i32_0 : i32, i32
  }
  func.func @transform_3(%arg0: i32) -> (i32, i32) {
    %c0_i32 = arith.constant 0 : i32
    %c0_i32_0 = arith.constant 0 : i32
    %c0_i32_1 = arith.constant 0 : i32
    return %c0_i32, %c0_i32_0 : i32, i32
  }
  func.func @transform_4(%arg0: i32) -> (i32, i32) {
    %c0_i32 = arith.constant 0 : i32
    %c0_i32_0 = arith.constant 0 : i32
    %c0_i32_1 = arith.constant 0 : i32
    return %c0_i32, %c0_i32_0 : i32, i32
  }
  func.func @transform_5(%arg0: i32) -> (i32, i32) {
    %c0_i32 = arith.constant 0 : i32
    %c0_i32_0 = arith.constant 0 : i32
    return %arg0, %c0_i32 : i32, i32
  }
}

</mosaic_0001>

<bundles_post_ra>
// kernel: tpu_custom_call.1
= control target key start
LH: loop header
LB: loop body
LE: loop exit
PB: predicated region body
PF: predicated region fallthrough
CT: control target
= control target key end

     0   :  { %10 = vsyncpa [#allocation3], 0  ;;  %s8508_s0 = inlined_call_operand.vmem [shape: f32[16,64,32], index: 0, kind: input, shape index: {}]   ;;  %s8509_s1 = inlined_call_operand.vmem [shape: f32[8,64], index: 1, kind: input, shape index: {}]   ;;  %s8510_s2 = inlined_call_operand.vmem [shape: f32[8,1], index: 2, kind: input, shape index: {}]   ;;  %s8511_s3 = inlined_call_operand.vmem [shape: f32[64,8], index: 3, kind: input, shape index: {}]   ;;  %s8512_s4 = inlined_call_operand.vmem [shape: f32[64,1], index: 4, kind: input, shape index: {}]   ;;  %s8513_s5 = inlined_call_operand.hbm [shape: f32[16,128], index: 5, kind: output, shape index: {}]  }
   0x1   :  { %12 = vsyncpa [#allocation3 + $0x1], 0  ;;  %s5611_s18 = smov 0   ;;  %s5613_s19 = smov 0  }
   0x2   :  { %s5615_s20 = smov 0   ;;  %s5617_s21 = smov 0  }
   0x3 LB: > { %s5632_s22 = sadd.s32 4294967295, %s5575_s21   ;;  %s4530_s23 = sadd.s32 4294967294, %s5575_s21   ;;  %s5575_s21 = sphi %s5617_s21, %s8694_s21   ;;  %s5571_s20 = sphi %s5615_s20, %s8693_s20   ;;  %s5567_s19 = sphi %s5613_s19, %s8692_s19   ;;  %s5563_s18 = sphi %s5611_s18, %s8691_s18  }
   0x4   : > { %s5636_s24 = sadd.s32 1, %s5575_s21   ;;  %s135_s25 = sadd.s32 1, %s5571_s20 }
   0x5   : > { %s132_s26 = ssub.s32 %s5575_s21, %s5636_s24  ;;  %p145_p0 = scmp.ne.s32.totalorder %s5571_s20, %s5567_s19 }
   0x6   : > { %p133_p1 = scmp.eq.s32.totalorder %s132_s26, 0  ;;  %p146_p2 = scmp.eq.s32.totalorder %s5632_s22, 1 }
   0x7   : > { %p151_p3 = scmp.ne.s32.totalorder %s5567_s19, %s5563_s18  ;;  %p152_p4 = scmp.eq.s32.totalorder %s4530_s23, 1 }
   0x8   : > { %s5647_s27 = scalar_select %p133_p1, %s5571_s20, %s135_s25  }
   0x9   : > { %p5649_p5 = por %p146_p2, %p145_p0  ;;  %p5653_p6 = por %p152_p4, %p151_p3 }
   0xa   : > { %p4533_p7 = scmp.ge.s32.totalorder %s5575_s21, 1  ;;  %p192_p8 = scmp.lt.s32.totalorder %s5575_s21, 3 }
   0xc   : > { %p193_p9 = pnand %p4533_p7, %p192_p8 }
   0xe   : > { %196 = sbr.rel (%p193_p9) target bundleno = 1186 (0x4a2), region = 40 }
  0x13   : > { %s4535_s30 = sshll.u32 %s5632_s22, 3  ;;  %v5577_v0 = vmov 0.0   ;;  %v301_v1 = vld [vmem:[%s8510_s2] sm:$0xff]  ;;  %vm5578_vm0 = vmmov 0   ;;  %v5579_v2 = vmov 0   ;;  %vm8558_vm1 = vcmask 523264  }
  0x14   : > { %4759 = vmatprep.subr.mxu0 %v5577_v0  ;;  %4778 = vmatprep.subr.mxu1 %v5577_v0  ;;  %p222_p10 = scmp.lt.s32.totalorder %s4535_s30, 15  ;;  %v5705_v19 = vld [vmem:[%s8509_s1] sm:$0xff]  ;;  %vm927_vm2 = vcmask 64512   ;;  %vm1792_vm3 = vcmask 261120   ;;  %vm8560_vm4 = vcmask 130112   ;;  %vm3731_vm5 = vcmask 195712  }
  0x15   : > { %4775 = vmatprep.mubr.msk.f32.mxu0 %vm5578_vm0, %v5577_v0  ;;  %4794 = vmatprep.mubr.msk.f32.mxu1 %vm5578_vm0, %v5577_v0  ;;  %vm3738_vm6 = vcmask 261312   ;;  %vm8565_vm7 = vcmask 654912   ;;  %vm3745_vm9 = vcmask 326912   ;;  %vm3752_vm11 = vcmask 392512   ;;  %s4611_s17 = sshll.u32 %s5632_s22, 7 }
  0x16   : > { %s8696_s30 = smov (!%p222_p10, %s4535_s30), 15  ;;  %5065 = vset.pattern.permute.xlu0 %v5579_v2  ;;  %5066 = vset.pattern.permute.xlu1 %v5579_v2  ;;  %s8469_s6 = scalar_lea.hbm %s8513_s5, %s4611_s17 }
  0x17   : > { %304 = vperm.xlu0 %5065, %v301_v1   ;;  %s4614_s8 = sshll.u32 %s8696_s30, 6 }
  0x18   : > { %s5672_s11 = scalar_lea.vmem %s8508_s0, %s4614_s8  ;;  %s5580_s8 = smov [#allocation2]  }
  0x19   : > { %v235_v3 = vld [vmem:[%s5672_s11 + $0x38] sm:$0xff]  ;;  %v234_v5 = vld [vmem:[%s5672_s11 + $0x30] sm:$0xff]  ;;  %v233_v7 = vld [vmem:[%s5672_s11 + $0x28] sm:$0xff]  ;;  %s5519_s9 = sshll.u32 %s5580_s8, 4  ;;  %s5520_s9 = int_to_ptr.vmem [resolvable:$false] %s5519_s9 }
  0x1a   : > { %v243_v4 = vld [vmem:[%s5672_s11 + $0x78] sm:$0xff]  ;;  %4760 = vmatpush3.msra.mxu0 %v235_v3  ;;  %v242_v6 = vld [vmem:[%s5672_s11 + $0x70] sm:$0xff]  ;;  %v241_v8 = vld [vmem:[%s5672_s11 + $0x68] sm:$0xff]  ;;  %s5521_s10 = scalar_lea.vmem %s5520_s9, 256 }
  0x1b   : > { %4779 = vmatpush3.msra.mxu1 %v243_v4  ;;  %4761 = vmatprep.subr.mxu0 %v5577_v0  ;;  %v232_v9 = vld [vmem:[%s5672_s11 + $0x20] sm:$0xff]  ;;  %v231_v11 = vld [vmem:[%s5672_s11 + $0x18] sm:$0xff]  ;;  %v230_v13 = vld [vmem:[%s5672_s11 + $0x10] sm:$0xff] }
  0x1c   : > { %4780 = vmatprep.subr.mxu1 %v5577_v0  ;;  %4762 = vmatpush3.msra.mxu0 %v234_v5  ;;  %v240_v10 = vld [vmem:[%s5672_s11 + $0x60] sm:$0xff]  ;;  %v239_v12 = vld [vmem:[%s5672_s11 + $0x58] sm:$0xff]  ;;  %v238_v14 = vld [vmem:[%s5672_s11 + $0x50] sm:$0xff] }
  0x1d   : > { %4781 = vmatpush3.msra.mxu1 %v242_v6  ;;  %4763 = vmatprep.subr.mxu0 %v5577_v0  ;;  %v229_v15 = vld [vmem:[%s5672_s11 + $0x8] sm:$0xff]  ;;  %v228_v17 = vld [vmem:[%s5672_s11] sm:$0xff]  ;;  %v251_v20 = vld [vmem:[%s5672_s11 + $0xb8] sm:$0xff] }
  0x1e   : > { %4782 = vmatprep.subr.mxu1 %v5577_v0  ;;  %4764 = vmatpush3.msra.mxu0 %v233_v7  ;;  %v237_v16 = vld [vmem:[%s5672_s11 + $0x48] sm:$0xff]  ;;  %v236_v18 = vld [vmem:[%s5672_s11 + $0x40] sm:$0xff]  ;;  %v259_v21 = vld [vmem:[%s5672_s11 + $0xf8] sm:$0xff] }
  0x1f   : > { %4783 = vmatpush3.msra.mxu1 %v241_v8  ;;  %4765 = vmatprep.subr.mxu0 %v5577_v0  ;;  %v250_v22 = vld [vmem:[%s5672_s11 + $0xb0] sm:$0xff]  ;;  %v249_v24 = vld [vmem:[%s5672_s11 + $0xa8] sm:$0xff]  ;;  %v248_v26 = vld [vmem:[%s5672_s11 + $0xa0] sm:$0xff] }
  0x20   : > { %4784 = vmatprep.subr.mxu1 %v5577_v0  ;;  %4766 = vmatpush3.msra.mxu0 %v232_v9  ;;  %v258_v23 = vld [vmem:[%s5672_s11 + $0xf0] sm:$0xff]  ;;  %v257_v25 = vld [vmem:[%s5672_s11 + $0xe8] sm:$0xff]  ;;  %v256_v27 = vld [vmem:[%s5672_s11 + $0xe0] sm:$0xff] }
  0x21   : > { %4785 = vmatpush3.msra.mxu1 %v240_v10  ;;  %4767 = vmatprep.subr.mxu0 %v5577_v0  ;;  %v247_v28 = vld [vmem:[%s5672_s11 + $0x98] sm:$0xff]  ;;  %v246_v30 = vld [vmem:[%s5672_s11 + $0x90] sm:$0xff]  ;;  %v245_v32 = vld [vmem:[%s5672_s11 + $0x88] sm:$0xff] }
  0x22   : > { %4786 = vmatprep.subr.mxu1 %v5577_v0  ;;  %4768 = vmatpush3.msra.mxu0 %v231_v11  ;;  %v255_v29 = vld [vmem:[%s5672_s11 + $0xd8] sm:$0xff]  ;;  %v254_v31 = vld [vmem:[%s5672_s11 + $0xd0] sm:$0xff]  ;;  %v253_v33 = vld [vmem:[%s5672_s11 + $0xc8] sm:$0xff] }
  0x23   : > { %4787 = vmatpush3.msra.mxu1 %v239_v12  ;;  %4769 = vmatprep.subr.mxu0 %v5577_v0  ;;  %v244_v34 = vld [vmem:[%s5672_s11 + $0x80] sm:$0xff]  ;;  %v267_v36 = vld [vmem:[%s5672_s11 + $0x138] sm:$0xff]  ;;  %v266_v38 = vld [vmem:[%s5672_s11 + $0x130] sm:$0xff] }
  0x24   : > { %4788 = vmatprep.subr.mxu1 %v5577_v0  ;;  %4770 = vmatpush3.msra.mxu0 %v230_v13  ;;  %v252_v35 = vld [vmem:[%s5672_s11 + $0xc0] sm:$0xff]  ;;  %v275_v37 = vld [vmem:[%s5672_s11 + $0x178] sm:$0xff]  ;;  %v274_v39 = vld [vmem:[%s5672_s11 + $0x170] sm:$0xff] }
  0x25   : > { %4789 = vmatpush3.msra.mxu1 %v238_v14  ;;  %4771 = vmatprep.subr.mxu0 %v5577_v0  ;;  %v265_v40 = vld [vmem:[%s5672_s11 + $0x128] sm:$0xff]  ;;  %v264_v42 = vld [vmem:[%s5672_s11 + $0x120] sm:$0xff]  ;;  %v263_v44 = vld [vmem:[%s5672_s11 + $0x118] sm:$0xff] }
  0x26   : > { %4790 = vmatprep.subr.mxu1 %v5577_v0  ;;  %4772 = vmatpush3.msra.mxu0 %v229_v15  ;;  %v273_v41 = vld [vmem:[%s5672_s11 + $0x168] sm:$0xff]  ;;  %v272_v43 = vld [vmem:[%s5672_s11 + $0x160] sm:$0xff]  ;;  %v271_v45 = vld [vmem:[%s5672_s11 + $0x158] sm:$0xff] }
  0x27   : > { %4791 = vmatpush3.msra.mxu1 %v237_v16  ;;  %4773 = vmatprep.subr.mxu0 %v5577_v0  ;;  %v262_v46 = vld [vmem:[%s5672_s11 + $0x110] sm:$0xff]  ;;  %v261_v48 = vld [vmem:[%s5672_s11 + $0x108] sm:$0xff]  ;;  %v260_v50 = vld [vmem:[%s5672_s11 + $0x100] sm:$0xff] }
  0x28   : > { %4792 = vmatprep.subr.mxu1 %v5577_v0  ;;  %4774 = vmatpush3.msra.mxu0 %v228_v17  ;;  %v270_v47 = vld [vmem:[%s5672_s11 + $0x150] sm:$0xff]  ;;  %v269_v49 = vld [vmem:[%s5672_s11 + $0x148] sm:$0xff]  ;;  %v268_v51 = vld [vmem:[%s5672_s11 + $0x140] sm:$0xff] }
  0x29   : > { %4793 = vmatpush3.msra.mxu1 %v236_v18  ;;  %4776 = vmatmul.mubr.msk.f32.vlgmr.msra.gmra.mxu0 %vm8558_vm1, %v5705_v19  ;;  %v283_v52 = vld [vmem:[%s5672_s11 + $0x1b8] sm:$0xff]  ;;  %v282_v54 = vld [vmem:[%s5672_s11 + $0x1b0] sm:$0xff]  ;;  %v281_v56 = vld [vmem:[%s5672_s11 + $0x1a8] sm:$0xff] }
  0x2a   : > { %4795 = vmatmul.mubr.msk.f32.vlgmr.msra.gmra.mxu1 %vm8558_vm1, %v5705_v19  ;;  %4797 = vmatprep.subr.mxu0 %v5577_v0  ;;  %v291_v53 = vld [vmem:[%s5672_s11 + $0x1f8] sm:$0xff]  ;;  %v290_v55 = vld [vmem:[%s5672_s11 + $0x1f0] sm:$0xff]  ;;  %v289_v57 = vld [vmem:[%s5672_s11 + $0x1e8] sm:$0xff] }
  0x2b   : > { %4816 = vmatprep.subr.mxu1 %v5577_v0  ;;  %4798 = vmatpush3.msra.mxu0 %v251_v20  ;;  %v280_v58 = vld [vmem:[%s5672_s11 + $0x1a0] sm:$0xff]  ;;  %v279_v60 = vld [vmem:[%s5672_s11 + $0x198] sm:$0xff]  ;;  %v278_v62 = vld [vmem:[%s5672_s11 + $0x190] sm:$0xff] }
  0x2c   : > { %4817 = vmatpush3.msra.mxu1 %v259_v21  ;;  %4799 = vmatprep.subr.mxu0 %v5577_v0  ;;  %v288_v59 = vld [vmem:[%s5672_s11 + $0x1e0] sm:$0xff]  ;;  %v287_v61 = vld [vmem:[%s5672_s11 + $0x1d8] sm:$0xff]  ;;  %v286_v63 = vld [vmem:[%s5672_s11 + $0x1d0] sm:$0xff] }
  0x2d   : > { %4818 = vmatprep.subr.mxu1 %v5577_v0  ;;  %4800 = vmatpush3.msra.mxu0 %v250_v22  ;;  %v277_v1 = vld [vmem:[%s5672_s11 + $0x188] sm:$0xff]  ;;  %v276_v3 = vld [vmem:[%s5672_s11 + $0x180] sm:$0xff]  ;;  %v882_v6 = vld [vmem:[%s8512_s4 + $0x18] sm:$0xff] }
  0x2e   : > { %4819 = vmatpush3.msra.mxu1 %v258_v23  ;;  %4801 = vmatprep.subr.mxu0 %v5577_v0  ;;  %v285_v2 = vld [vmem:[%s5672_s11 + $0x1c8] sm:$0xff]  ;;  %v284_v4 = vld [vmem:[%s5672_s11 + $0x1c0] sm:$0xff]  ;;  %v881_v10 = vld [vmem:[%s8512_s4 + $0x10] sm:$0xff] }
  0x2f   : > { %4820 = vmatprep.subr.mxu1 %v5577_v0  ;;  %4802 = vmatpush3.msra.mxu0 %v249_v24  ;;  %v879_v5 = vld [vmem:[%s8512_s4] sm:$0xff]  ;;  %v884_v7 = vld [vmem:[%s8512_s4 + $0x28] sm:$0xff]  ;;  %v885_v12 = vld [vmem:[%s8512_s4 + $0x30] sm:$0xff] }
  0x30   : > { %4821 = vmatpush3.msra.mxu1 %v257_v25  ;;  %4803 = vmatprep.subr.mxu0 %v5577_v0  ;;  %v5848_v8 = vld [vmem:[%s8511_s3] sm:$0xff]  ;;  %v880_v9 = vld [vmem:[%s8512_s4 + $0x8] sm:$0xff]  ;;  %v5878_v23 = vld [vmem:[%s8511_s3 + $0x10] sm:$0xff] }
  0x31   : > { %4822 = vmatprep.subr.mxu1 %v5577_v0  ;;  %4804 = vmatpush3.msra.mxu0 %v248_v26  ;;  %v883_v11 = vld [vmem:[%s8512_s4 + $0x20] sm:$0xff]  ;;  %v5873_v22 = vld [vmem:[%s8511_s3 + $0x8] sm:$0xff]  ;;  %v5891_v24 = vld [vmem:[%s8511_s3 + $0x18] sm:$0xff] }
  0x32   : > { %4823 = vmatpush3.msra.mxu1 %v256_v27  ;;  %4805 = vmatprep.subr.mxu0 %v5577_v0  ;;  %v5896_v25 = vld [vmem:[%s8511_s3 + $0x20] sm:$0xff]  ;;  %v5909_v26 = vld [vmem:[%s8511_s3 + $0x28] sm:$0xff]  ;;  %v5914_v27 = vld [vmem:[%s8511_s3 + $0x30] sm:$0xff] }
  0x33   : > { %4824 = vmatprep.subr.mxu1 %v5577_v0  ;;  %4806 = vmatpush3.msra.mxu0 %v247_v28  ;;  %v5927_v28 = vld [vmem:[%s8511_s3 + $0x38] sm:$0xff] }
  0x34   : > { %4825 = vmatpush3.msra.mxu1 %v255_v29  ;;  %4807 = vmatprep.subr.mxu0 %v5577_v0 }
  0x35   : > { %4826 = vmatprep.subr.mxu1 %v5577_v0  ;;  %4808 = vmatpush3.msra.mxu0 %v246_v30 }
  0x36   : > { %4827 = vmatpush3.msra.mxu1 %v254_v31  ;;  %4809 = vmatprep.subr.mxu0 %v5577_v0 }
  0x37   : > { %4828 = vmatprep.subr.mxu1 %v5577_v0  ;;  %4810 = vmatpush3.msra.mxu0 %v245_v32 }
  0x38   : > { %4829 = vmatpush3.msra.mxu1 %v253_v33  ;;  %4811 = vmatprep.subr.mxu0 %v5577_v0 }
  0x39   : > { %4830 = vmatprep.subr.mxu1 %v5577_v0  ;;  %4812 = vmatpush3.msra.mxu0 %v244_v34 }
  0x3a   : > { %4813 = vmatprep.mubr.msk.f32.mxu0 %vm5578_vm0, %v5577_v0  ;;  %4831 = vmatpush3.msra.mxu1 %v252_v35 }
  0x3b   : > { %4832 = vmatprep.mubr.msk.f32.mxu1 %vm5578_vm0, %v5577_v0  ;;  %4814 = vmatmul.mubr.msk.f32.vlgmr.msra.gmra.mxu0 %vm8558_vm1, %v5705_v19 }
  0x3c   : > { %4833 = vmatmul.mubr.msk.f32.vlgmr.msra.gmra.mxu1 %vm8558_vm1, %v5705_v19  ;;  %4835 = vmatprep.subr.mxu0 %v5577_v0 }
  0x3d   : > { %4854 = vmatprep.subr.mxu1 %v5577_v0  ;;  %4836 = vmatpush3.msra.mxu0 %v267_v36 }
  0x3e   : > { %4855 = vmatpush3.msra.mxu1 %v275_v37  ;;  %4837 = vmatprep.subr.mxu0 %v5577_v0 }
  0x3f   : > { %4856 = vmatprep.subr.mxu1 %v5577_v0  ;;  %4838 = vmatpush3.msra.mxu0 %v266_v38 }
  0x40   : > { %4857 = vmatpush3.msra.mxu1 %v274_v39  ;;  %4839 = vmatprep.subr.mxu0 %v5577_v0 }
  0x41   : > { %4858 = vmatprep.subr.mxu1 %v5577_v0  ;;  %4840 = vmatpush3.msra.mxu0 %v265_v40 }
  0x42   : > { %4859 = vmatpush3.msra.mxu1 %v273_v41  ;;  %4841 = vmatprep.subr.mxu0 %v5577_v0 }
  0x43   : > { %4860 = vmatprep.subr.mxu1 %v5577_v0  ;;  %4842 = vmatpush3.msra.mxu0 %v264_v42 }
  0x44   : > { %4861 = vmatpush3.msra.mxu1 %v272_v43  ;;  %4843 = vmatprep.subr.mxu0 %v5577_v0 }
  0x45   : > { %4862 = vmatprep.subr.mxu1 %v5577_v0  ;;  %4844 = vmatpush3.msra.mxu0 %v263_v44 }
  0x46   : > { %4863 = vmatpush3.msra.mxu1 %v271_v45  ;;  %4845 = vmatprep.subr.mxu0 %v5577_v0 }
  0x47   : > { %4864 = vmatprep.subr.mxu1 %v5577_v0  ;;  %4846 = vmatpush3.msra.mxu0 %v262_v46 }
  0x48   : > { %4865 = vmatpush3.msra.mxu1 %v270_v47  ;;  %4847 = vmatprep.subr.mxu0 %v5577_v0 }
  0x49   : > { %4866 = vmatprep.subr.mxu1 %v5577_v0  ;;  %4848 = vmatpush3.msra.mxu0 %v261_v48 }
  0x4a   : > { %4867 = vmatpush3.msra.mxu1 %v269_v49  ;;  %4849 = vmatprep.subr.mxu0 %v5577_v0 }
  0x4b   : > { %4868 = vmatprep.subr.mxu1 %v5577_v0  ;;  %4850 = vmatpush3.msra.mxu0 %v260_v50 }
  0x4c   : > { %4851 = vmatprep.mubr.msk.f32.mxu0 %vm5578_vm0, %v5577_v0  ;;  %4869 = vmatpush3.msra.mxu1 %v268_v51 }
  0x4d   : > { %4870 = vmatprep.mubr.msk.f32.mxu1 %vm5578_vm0, %v5577_v0  ;;  %4852 = vmatmul.mubr.msk.f32.vlgmr.msra.gmra.mxu0 %vm8558_vm1, %v5705_v19 }
  0x4e   : > { %4871 = vmatmul.mubr.msk.f32.vlgmr.msra.gmra.mxu1 %vm8558_vm1, %v5705_v19  ;;  %4873 = vmatprep.subr.mxu0 %v5577_v0 }
  0x4f   : > { %4892 = vmatprep.subr.mxu1 %v5577_v0  ;;  %4874 = vmatpush3.msra.mxu0 %v283_v52 }
  0x50   : > { %4893 = vmatpush3.msra.mxu1 %v291_v53  ;;  %4875 = vmatprep.subr.mxu0 %v5577_v0 }
  0x51   : > { %4894 = vmatprep.subr.mxu1 %v5577_v0  ;;  %4876 = vmatpush3.msra.mxu0 %v282_v54 }
  0x52   : > { %4895 = vmatpush3.msra.mxu1 %v290_v55  ;;  %4877 = vmatprep.subr.mxu0 %v5577_v0 }
  0x53   : > { %4896 = vmatprep.subr.mxu1 %v5577_v0  ;;  %4878 = vmatpush3.msra.mxu0 %v281_v56 }
  0x54   : > { %4897 = vmatpush3.msra.mxu1 %v289_v57  ;;  %4879 = vmatprep.subr.mxu0 %v5577_v0 }
  0x55   : > { %4898 = vmatprep.subr.mxu1 %v5577_v0  ;;  %4880 = vmatpush3.msra.mxu0 %v280_v58 }
  0x56   : > { %4899 = vmatpush3.msra.mxu1 %v288_v59  ;;  %4881 = vmatprep.subr.mxu0 %v5577_v0 }
  0x57   : > { %4900 = vmatprep.subr.mxu1 %v5577_v0  ;;  %4882 = vmatpush3.msra.mxu0 %v279_v60 }
  0x58   : > { %4901 = vmatpush3.msra.mxu1 %v287_v61  ;;  %4883 = vmatprep.subr.mxu0 %v5577_v0 }
  0x59   : > { %4902 = vmatprep.subr.mxu1 %v5577_v0  ;;  %4884 = vmatpush3.msra.mxu0 %v278_v62 }
  0x5a   : > { %4903 = vmatpush3.msra.mxu1 %v286_v63  ;;  %4885 = vmatprep.subr.mxu0 %v5577_v0 }
  0x5b   : > { %4904 = vmatprep.subr.mxu1 %v5577_v0  ;;  %4886 = vmatpush3.msra.mxu0 %v277_v1 }
  0x5c   : > { %4905 = vmatpush3.msra.mxu1 %v285_v2  ;;  %4887 = vmatprep.subr.mxu0 %v5577_v0 }
  0x5d   : > { %4906 = vmatprep.subr.mxu1 %v5577_v0  ;;  %4888 = vmatpush3.msra.mxu0 %v276_v3 }
  0x5e   : > { %4889 = vmatprep.mubr.msk.f32.mxu0 %vm5578_vm0, %v5577_v0  ;;  %4907 = vmatpush3.msra.mxu1 %v284_v4 }
  0x5f   : > { %4908 = vmatprep.mubr.msk.f32.mxu1 %vm5578_vm0, %v5577_v0  ;;  %4890 = vmatmul.mubr.msk.f32.vlgmr.msra.gmra.mxu0 %vm8558_vm1, %v5705_v19  ;;  %v886_v0 = vld [vmem:[%s8512_s4 + $0x38] sm:$0xff] }
  0x60   : > { %4909 = vmatmul.mubr.msk.f32.vlgmr.msra.gmra.mxu1 %vm8558_vm1, %v5705_v19  ;;  %889 = vperm.xlu0 %5065, %v879_v5  }
  0x61   : > { %4913 = vmatprep.mubr.msk.f32.mxu0 %vm927_vm2, %v5848_v8  ;;  %4927 = vmatprep.mubr.msk.f32.mxu1 %vm927_vm2, %v5848_v8 }
  0x62   : > { %894 = vperm.xlu1 %5066, %v880_v9  }
  0x64   : > { %904 = vperm.xlu0 %5065, %v882_v6  }
  0x66   : > { %899 = vperm.xlu1 %5066, %v881_v10  }
  0x68   : > { %914 = vperm.xlu0 %5065, %v884_v7  }
  0x6a   : > { %909 = vperm.xlu1 %5066, %v883_v11  }
  0x6c   : > { %924 = vperm.xlu0 %5065, %v886_v0  }
  0x6e   : > { %919 = vperm.xlu1 %5066, %v885_v12  }
  0x92   : > { %v5866_v13 = vpop.permute.xlu0 %304 }
  0xdb   : > { %v6035_v53 = vpop.permute.xlu0 %889 }
  0xdd   : > { %v6037_v54 = vpop.permute.xlu1 %894 }
  0xdf   : > { %v6055_v4 = vpop.permute.xlu0 %904 }
  0xe1   : > { %v6057_v5 = vpop.permute.xlu1 %899 }
  0xe9   : > { %v377_v14 = vpop.f32.mrf.mxu0 }
  0xea   : > { %v447_v15 = vpop.f32.mrf.mxu1  ;;  %v378_v16 = vadd.f32 %v377_v14, %v5866_v13 }
  0xeb   : > { %v448_v17 = vadd.f32 %v447_v15, %v5866_v13  ;;  %v4777_v18 = vpop.f32.mrf.mxu0 }
  0xec   : > { %v4796_v19 = vpop.f32.mrf.mxu1  ;;  %v871_v20 = vmax.f32 %v378_v16, 0.0  ;;  %v6079_v18 = vpop.permute.xlu0 %914 }
  0xed   : > { %v872_v21 = vmax.f32 %v448_v17, 0.0  ;;  %v6081_v19 = vpop.permute.xlu1 %909 }
  0xee   : > { %4911 = vmatprep.subr.mxu0 %v871_v20 }
  0xef   : > { %4925 = vmatprep.subr.mxu1 %v872_v21  ;;  %4912 = vmatpush3.msra.mxu0 %v871_v20 }
  0xf0   : > { %4926 = vmatpush3.msra.mxu1 %v872_v21  ;;  %4914 = vmatmul.mubr.msk.f32.vlgmr.msra.gmra.mxu0 %vm927_vm2, %v5873_v22 }
  0xf1   : > { %4928 = vmatmul.mubr.msk.f32.vlgmr.msra.gmra.mxu1 %vm927_vm2, %v5873_v22  ;;  %4916 = vmatprep.mubr.msk.f32.mxu0 %vm927_vm2, %v5878_v23 }
  0xf2   : > { %4930 = vmatprep.mubr.msk.f32.mxu1 %vm927_vm2, %v5878_v23 }
  0xf4   : > { %4917 = vmatmul.mubr.msk.f32.gmra.mxu0 %vm927_vm2, %v5891_v24 }
  0xf5   : > { %4931 = vmatmul.mubr.msk.f32.gmra.mxu1 %vm927_vm2, %v5891_v24  ;;  %4919 = vmatprep.mubr.msk.f32.mxu0 %vm927_vm2, %v5896_v25 }
  0xf6   : > { %4933 = vmatprep.mubr.msk.f32.mxu1 %vm927_vm2, %v5896_v25 }
  0xf8   : > { %4920 = vmatmul.mubr.msk.f32.gmra.mxu0 %vm927_vm2, %v5909_v26 }
  0xf9   : > { %4934 = vmatmul.mubr.msk.f32.gmra.mxu1 %vm927_vm2, %v5909_v26  ;;  %4922 = vmatprep.mubr.msk.f32.mxu0 %vm927_vm2, %v5914_v27 }
  0xfa   : > { %4936 = vmatprep.mubr.msk.f32.mxu1 %vm927_vm2, %v5914_v27 }
  0xfb   : > { %v517_v29 = vpop.f32.mrf.mxu0 }
  0xfc   : > { %v587_v30 = vpop.f32.mrf.mxu1  ;;  %v518_v31 = vadd.f32 %v517_v29, %v5866_v13  ;;  %4923 = vmatmul.mubr.msk.f32.gmra.mxu0 %vm927_vm2, %v5927_v28 }
  0xfd   : > { %v588_v32 = vadd.f32 %v587_v30, %v5866_v13  ;;  %4937 = vmatmul.mubr.msk.f32.gmra.mxu1 %vm927_vm2, %v5927_v28  ;;  %4941 = vmatprep.mubr.msk.f32.mxu0 %vm927_vm2, %v5848_v8  ;;  %v4815_v33 = vpop.f32.mrf.mxu0 }
  0xfe   : > { %4955 = vmatprep.mubr.msk.f32.mxu1 %vm927_vm2, %v5848_v8  ;;  %v4834_v34 = vpop.f32.mrf.mxu1  ;;  %v873_v35 = vmax.f32 %v518_v31, 0.0  ;;  %v6105_v33 = vpop.permute.xlu1 %919 }
  0xff   : > { %v874_v36 = vmax.f32 %v588_v32, 0.0  ;;  %v6103_v32 = vpop.permute.xlu0 %924 }
 0x100   : > { %4939 = vmatprep.subr.mxu0 %v873_v35 }
 0x101   : > { %4953 = vmatprep.subr.mxu1 %v874_v36  ;;  %4940 = vmatpush3.msra.mxu0 %v873_v35 }
 0x102   : > { %4954 = vmatpush3.msra.mxu1 %v874_v36  ;;  %4942 = vmatmul.mubr.msk.f32.vlgmr.msra.gmra.mxu0 %vm927_vm2, %v5873_v22 }
 0x103   : > { %4956 = vmatmul.mubr.msk.f32.vlgmr.msra.gmra.mxu1 %vm927_vm2, %v5873_v22  ;;  %4944 = vmatprep.mubr.msk.f32.mxu0 %vm927_vm2, %v5878_v23 }
 0x104   : > { %4958 = vmatprep.mubr.msk.f32.mxu1 %vm927_vm2, %v5878_v23 }
 0x106   : > { %4945 = vmatmul.mubr.msk.f32.gmra.mxu0 %vm927_vm2, %v5891_v24 }
 0x107   : > { %4959 = vmatmul.mubr.msk.f32.gmra.mxu1 %vm927_vm2, %v5891_v24  ;;  %4947 = vmatprep.mubr.msk.f32.mxu0 %vm927_vm2, %v5896_v25 }
 0x108   : > { %4961 = vmatprep.mubr.msk.f32.mxu1 %vm927_vm2, %v5896_v25 }
 0x10a   : > { %4948 = vmatmul.mubr.msk.f32.gmra.mxu0 %vm927_vm2, %v5909_v26 }
 0x10b   : > { %4962 = vmatmul.mubr.msk.f32.gmra.mxu1 %vm927_vm2, %v5909_v26  ;;  %4950 = vmatprep.mubr.msk.f32.mxu0 %vm927_vm2, %v5914_v27 }
 0x10c   : > { %4964 = vmatprep.mubr.msk.f32.mxu1 %vm927_vm2, %v5914_v27 }
 0x10d   : > { %v657_v37 = vpop.f32.mrf.mxu0 }
 0x10e   : > { %v727_v38 = vpop.f32.mrf.mxu1  ;;  %v658_v39 = vadd.f32 %v657_v37, %v5866_v13  ;;  %4951 = vmatmul.mubr.msk.f32.gmra.mxu0 %vm927_vm2, %v5927_v28 }
 0x10f   : > { %v728_v40 = vadd.f32 %v727_v38, %v5866_v13  ;;  %4965 = vmatmul.mubr.msk.f32.gmra.mxu1 %vm927_vm2, %v5927_v28  ;;  %4969 = vmatprep.mubr.msk.f32.mxu0 %vm927_vm2, %v5848_v8  ;;  %v4853_v41 = vpop.f32.mrf.mxu0 }
 0x110   : > { %4983 = vmatprep.mubr.msk.f32.mxu1 %vm927_vm2, %v5848_v8  ;;  %v4872_v42 = vpop.f32.mrf.mxu1  ;;  %v875_v43 = vmax.f32 %v658_v39, 0.0 }
 0x111   : > { %v876_v44 = vmax.f32 %v728_v40, 0.0 }
 0x112   : > { %4967 = vmatprep.subr.mxu0 %v875_v43 }
 0x113   : > { %4981 = vmatprep.subr.mxu1 %v876_v44  ;;  %4968 = vmatpush3.msra.mxu0 %v875_v43 }
 0x114   : > { %4982 = vmatpush3.msra.mxu1 %v876_v44  ;;  %4970 = vmatmul.mubr.msk.f32.vlgmr.msra.gmra.mxu0 %vm927_vm2, %v5873_v22 }
 0x115   : > { %4984 = vmatmul.mubr.msk.f32.vlgmr.msra.gmra.mxu1 %vm927_vm2, %v5873_v22  ;;  %4972 = vmatprep.mubr.msk.f32.mxu0 %vm927_vm2, %v5878_v23 }
 0x116   : > { %4986 = vmatprep.mubr.msk.f32.mxu1 %vm927_vm2, %v5878_v23 }
 0x118   : > { %4973 = vmatmul.mubr.msk.f32.gmra.mxu0 %vm927_vm2, %v5891_v24 }
 0x119   : > { %4987 = vmatmul.mubr.msk.f32.gmra.mxu1 %vm927_vm2, %v5891_v24  ;;  %4975 = vmatprep.mubr.msk.f32.mxu0 %vm927_vm2, %v5896_v25 }
 0x11a   : > { %4989 = vmatprep.mubr.msk.f32.mxu1 %vm927_vm2, %v5896_v25 }
 0x11c   : > { %4976 = vmatmul.mubr.msk.f32.gmra.mxu0 %vm927_vm2, %v5909_v26 }
 0x11d   : > { %4990 = vmatmul.mubr.msk.f32.gmra.mxu1 %vm927_vm2, %v5909_v26  ;;  %4978 = vmatprep.mubr.msk.f32.mxu0 %vm927_vm2, %v5914_v27 }
 0x11e   : > { %4992 = vmatprep.mubr.msk.f32.mxu1 %vm927_vm2, %v5914_v27 }
 0x11f   : > { %v797_v45 = vpop.f32.mrf.mxu0 }
 0x120   : > { %v867_v46 = vpop.f32.mrf.mxu1  ;;  %v798_v47 = vadd.f32 %v797_v45, %v5866_v13  ;;  %4979 = vmatmul.mubr.msk.f32.gmra.mxu0 %vm927_vm2, %v5927_v28 }
 0x121   : > { %v868_v48 = vadd.f32 %v867_v46, %v5866_v13  ;;  %4993 = vmatmul.mubr.msk.f32.gmra.mxu1 %vm927_vm2, %v5927_v28  ;;  %4997 = vmatprep.mubr.msk.f32.mxu0 %vm927_vm2, %v5848_v8  ;;  %v4891_v49 = vpop.f32.mrf.mxu0 }
 0x122   : > { %5011 = vmatprep.mubr.msk.f32.mxu1 %vm927_vm2, %v5848_v8  ;;  %v4910_v50 = vpop.f32.mrf.mxu1  ;;  %v877_v51 = vmax.f32 %v798_v47, 0.0 }
 0x123   : > { %v878_v52 = vmax.f32 %v868_v48, 0.0 }
 0x124   : > { %4995 = vmatprep.subr.mxu0 %v877_v51 }
 0x125   : > { %5009 = vmatprep.subr.mxu1 %v878_v52  ;;  %4996 = vmatpush3.msra.mxu0 %v877_v51 }
 0x126   : > { %5010 = vmatpush3.msra.mxu1 %v878_v52  ;;  %4998 = vmatmul.mubr.msk.f32.vlgmr.msra.gmra.mxu0 %vm927_vm2, %v5873_v22 }
 0x127   : > { %5012 = vmatmul.mubr.msk.f32.vlgmr.msra.gmra.mxu1 %vm927_vm2, %v5873_v22  ;;  %5000 = vmatprep.mubr.msk.f32.mxu0 %vm927_vm2, %v5878_v23 }
 0x128   : > { %5014 = vmatprep.mubr.msk.f32.mxu1 %vm927_vm2, %v5878_v23 }
 0x12a   : > { %5001 = vmatmul.mubr.msk.f32.gmra.mxu0 %vm927_vm2, %v5891_v24 }
 0x12b   : > { %5015 = vmatmul.mubr.msk.f32.gmra.mxu1 %vm927_vm2, %v5891_v24  ;;  %5003 = vmatprep.mubr.msk.f32.mxu0 %vm927_vm2, %v5896_v25 }
 0x12c   : > { %5017 = vmatprep.mubr.msk.f32.mxu1 %vm927_vm2, %v5896_v25 }
 0x12e   : > { %5004 = vmatmul.mubr.msk.f32.gmra.mxu0 %vm927_vm2, %v5909_v26 }
 0x12f   : > { %5018 = vmatmul.mubr.msk.f32.gmra.mxu1 %vm927_vm2, %v5909_v26  ;;  %5006 = vmatprep.mubr.msk.f32.mxu0 %vm927_vm2, %v5914_v27 }
 0x130   : > { %5020 = vmatprep.mubr.msk.f32.mxu1 %vm927_vm2, %v5914_v27 }
 0x132   : > { %5007 = vmatmul.mubr.msk.f32.gmra.mxu0 %vm927_vm2, %v5927_v28 }
 0x133   : > { %5021 = vmatmul.mubr.msk.f32.gmra.mxu1 %vm927_vm2, %v5927_v28 }
 0x1b0   : > { %v4915_v55 = vpop.f32.mrf.mxu0 }
 0x1b1   : > { %v4929_v56 = vpop.f32.mrf.mxu1  ;;  %v6040_v57 = vadd.f32 %v4915_v55, %v6037_v54 }
 0x1b2   : > { %v6043_v58 = vadd.f32 %v4929_v56, %v6037_v54  ;;  %v1018_v59 = vpop.f32.mrf.mxu0 }
 0x1b3   : > { %v1123_v60 = vpop.f32.mrf.mxu1  ;;  %v6046_v61 = vadd.f32 %v1018_v59, %v6035_v53  ;;  %v1796_v1 = vsel %vm1792_vm3, %v6040_v57, -inf }
 0x1b4   : > { %v6049_v62 = vadd.f32 %v1123_v60, %v6035_v53  ;;  %v1820_v63 = vsel %vm1792_vm3, %v6043_v58, -inf  ;;  %1797 = vmax.xlane.f32.xlu0 %v1796_v1  ;;  %v4918_v3 = vpop.f32.mrf.mxu0 }
 0x1b5   : > { %1821 = vmax.xlane.f32.xlu1 %v1820_v63  ;;  %v4932_v2 = vpop.f32.mrf.mxu1  ;;  %v6060_v7 = vadd.f32 %v4918_v3, %v6055_v4  ;;  %v1793_v9 = vsel %vm1792_vm3, %v6046_v61, -inf }
 0x1b6   : > { %v1028_v6 = vpop.f32.mrf.mxu0  ;;  %v1817_v8 = vsel %vm1792_vm3, %v6049_v62, -inf  ;;  %v6070_v12 = vadd.f32 %v4932_v2, %v6055_v4 }
 0x1b7   : > { %v6063_v0 = vadd.f32 %v1028_v6, %v6057_v5  ;;  %v1133_v10 = vpop.f32.mrf.mxu1  ;;  %v1802_v15 = vsel %vm1792_vm3, %v6060_v7, -inf }
 0x1b8   : > { %1818 = vmax.xlane.f32.xlu0 %v1817_v8  ;;  %v4921_v11 = vpop.f32.mrf.mxu0  ;;  %v6073_v13 = vadd.f32 %v1133_v10, %v6057_v5  ;;  %v1826_v23 = vsel %vm1792_vm3, %v6070_v12, -inf }
 0x1b9   : > { %1794 = vmax.xlane.f32.xlu1 %v1793_v9  ;;  %v1799_v14 = vsel %vm1792_vm3, %v6063_v0, -inf  ;;  %v4935_v16 = vpop.f32.mrf.mxu1  ;;  %v6084_v20 = vadd.f32 %v4921_v11, %v6079_v18 }
 0x1ba   : > { %v1038_v17 = vpop.f32.mrf.mxu0  ;;  %v1823_v22 = vsel %vm1792_vm3, %v6073_v13, -inf  ;;  %v6094_v26 = vadd.f32 %v4935_v16, %v6079_v18 }
 0x1bb   : > { %v6087_v21 = vadd.f32 %v1038_v17, %v6081_v19  ;;  %v1143_v24 = vpop.f32.mrf.mxu1  ;;  %v1808_v29 = vsel %vm1792_vm3, %v6084_v20, -inf }
 0x1bc   : > { %1800 = vmax.xlane.f32.xlu0 %v1799_v14  ;;  %v4924_v25 = vpop.f32.mrf.mxu0  ;;  %v6097_v27 = vadd.f32 %v1143_v24, %v6081_v19  ;;  %v1832_v37 = vsel %vm1792_vm3, %v6094_v26, -inf }
 0x1bd   : > { %1803 = vmax.xlane.f32.xlu1 %v1802_v15  ;;  %v1805_v28 = vsel %vm1792_vm3, %v6087_v21, -inf  ;;  %v4938_v30 = vpop.f32.mrf.mxu1  ;;  %v6108_v34 = vadd.f32 %v4924_v25, %v6103_v32 }
 0x1be   : > { %v1048_v31 = vpop.f32.mrf.mxu0  ;;  %v1829_v36 = vsel %vm1792_vm3, %v6097_v27, -inf  ;;  %v6118_v40 = vadd.f32 %v4938_v30, %v6103_v32 }
 0x1bf   : > { %v6111_v35 = vadd.f32 %v1048_v31, %v6105_v33  ;;  %v1153_v38 = vpop.f32.mrf.mxu1  ;;  %v1814_v43 = vsel %vm1792_vm3, %v6108_v34, -inf }
 0x1c0   : > { %1824 = vmax.xlane.f32.xlu0 %v1823_v22  ;;  %v6121_v41 = vadd.f32 %v1153_v38, %v6105_v33  ;;  %v1838_v49 = vsel %vm1792_vm3, %v6118_v40, -inf }
 0x1c1   : > { %1827 = vmax.xlane.f32.xlu1 %v1826_v23  ;;  %v1811_v42 = vsel %vm1792_vm3, %v6111_v35, -inf }
 0x1c2   : > { %v4943_v39 = vpop.f32.mrf.mxu0  ;;  %v1835_v48 = vsel %vm1792_vm3, %v6121_v41, -inf }
 0x1c3   : > { %v4957_v44 = vpop.f32.mrf.mxu1  ;;  %v6128_v46 = vadd.f32 %v4943_v39, %v6037_v54 }
 0x1c4   : > { %1806 = vmax.xlane.f32.xlu0 %v1805_v28  ;;  %v1228_v45 = vpop.f32.mrf.mxu0  ;;  %v6138_v52 = vadd.f32 %v4957_v44, %v6037_v54 }
 0x1c5   : > { %1809 = vmax.xlane.f32.xlu1 %v1808_v29  ;;  %v6131_v47 = vadd.f32 %v1228_v45, %v6035_v53  ;;  %v1333_v50 = vpop.f32.mrf.mxu1  ;;  %v1844_v59 = vsel %vm1792_vm3, %v6128_v46, -inf }
 0x1c6   : > { %v4946_v51 = vpop.f32.mrf.mxu0  ;;  %v6141_v55 = vadd.f32 %v1333_v50, %v6035_v53  ;;  %v1868_v6 = vsel %vm1792_vm3, %v6138_v52, -inf }
 0x1c7   : > { %v1841_v56 = vsel %vm1792_vm3, %v6131_v47, -inf  ;;  %v4960_v60 = vpop.f32.mrf.mxu1  ;;  %v6148_v1 = vadd.f32 %v4946_v51, %v6055_v4 }
 0x1c8   : > { %1830 = vmax.xlane.f32.xlu0 %v1829_v36  ;;  %v1238_v63 = vpop.f32.mrf.mxu0  ;;  %v1865_v3 = vsel %vm1792_vm3, %v6141_v55, -inf  ;;  %v6158_v10 = vadd.f32 %v4960_v60, %v6055_v4 }
 0x1c9   : > { %1833 = vmax.xlane.f32.xlu1 %v1832_v37  ;;  %v6151_v2 = vadd.f32 %v1238_v63, %v6057_v5  ;;  %v1343_v8 = vpop.f32.mrf.mxu1  ;;  %v1850_v15 = vsel %vm1792_vm3, %v6148_v1, -inf }
 0x1ca   : > { %v4949_v9 = vpop.f32.mrf.mxu0  ;;  %v6161_v11 = vadd.f32 %v1343_v8, %v6057_v5  ;;  %v1874_v25 = vsel %vm1792_vm3, %v6158_v10, -inf }
 0x1cb   : > { %v1847_v14 = vsel %vm1792_vm3, %v6151_v2, -inf  ;;  %v4963_v16 = vpop.f32.mrf.mxu1  ;;  %v6168_v22 = vadd.f32 %v4949_v9, %v6079_v18 }
 0x1cc   : > { %1812 = vmax.xlane.f32.xlu0 %v1811_v42  ;;  %v1248_v17 = vpop.f32.mrf.mxu0  ;;  %v1871_v24 = vsel %vm1792_vm3, %v6161_v11, -inf  ;;  %v6178_v30 = vadd.f32 %v4963_v16, %v6079_v18 }
 0x1cd   : > { %1815 = vmax.xlane.f32.xlu1 %v1814_v43  ;;  %v6171_v23 = vadd.f32 %v1248_v17, %v6081_v19  ;;  %v1353_v28 = vpop.f32.mrf.mxu1  ;;  %v1856_v37 = vsel %vm1792_vm3, %v6168_v22, -inf }
 0x1ce   : > { %v4952_v29 = vpop.f32.mrf.mxu0  ;;  %v6181_v31 = vadd.f32 %v1353_v28, %v6081_v19  ;;  %v1880_v45 = vsel %vm1792_vm3, %v6178_v30, -inf }
 0x1cf   : > { %v1853_v36 = vsel %vm1792_vm3, %v6171_v23, -inf  ;;  %v4966_v38 = vpop.f32.mrf.mxu1  ;;  %v6188_v42 = vadd.f32 %v4952_v29, %v6103_v32 }
 0x1d0   : > { %1836 = vmax.xlane.f32.xlu0 %v1835_v48  ;;  %v1258_v39 = vpop.f32.mrf.mxu0  ;;  %v1877_v44 = vsel %vm1792_vm3, %v6181_v31, -inf  ;;  %v6198_v50 = vadd.f32 %v4966_v38, %v6103_v32 }
 0x1d1   : > { %1839 = vmax.xlane.f32.xlu1 %v1838_v49  ;;  %v6191_v43 = vadd.f32 %v1258_v39, %v6105_v33  ;;  %v1363_v48 = vpop.f32.mrf.mxu1 }
 0x1d2   : > { %v6201_v51 = vadd.f32 %v1363_v48, %v6105_v33  ;;  %v1886_v9 = vsel %vm1792_vm3, %v6198_v50, -inf }
 0x1d4   : > { %1842 = vmax.xlane.f32.xlu0 %v1841_v56  ;;  %v4971_v49 = vpop.f32.mrf.mxu0  ;;  %v1859_v56 = vsel %vm1792_vm3, %v6191_v43, -inf  ;;  %v1883_v8 = vsel %vm1792_vm3, %v6201_v51, -inf }
 0x1d5   : > { %1845 = vmax.xlane.f32.xlu1 %v1844_v59  ;;  %v1862_v59 = vsel %vm1792_vm3, %v6188_v42, -inf  ;;  %v4985_v60 = vpop.f32.mrf.mxu1 }
 0x1d6   : > { %v1438_v63 = vpop.f32.mrf.mxu0  ;;  %v6218_v16 = vadd.f32 %v4985_v60, %v6037_v54 }
 0x1d8   : > { %1866 = vmax.xlane.f32.xlu0 %v1865_v3  ;;  %v6208_v3 = vadd.f32 %v4971_v49, %v6037_v54  ;;  %v1916_v39 = vsel %vm1792_vm3, %v6218_v16, -inf }
 0x1d9   : > { %1869 = vmax.xlane.f32.xlu1 %v1868_v6  ;;  %v6211_v6 = vadd.f32 %v1438_v63, %v6035_v53 }
 0x1dc   : > { %1848 = vmax.xlane.f32.xlu0 %v1847_v14  ;;  %v1543_v14 = vpop.f32.mrf.mxu1 }
 0x1dd   : > { %1851 = vmax.xlane.f32.xlu1 %v1850_v15  ;;  %v4974_v15 = vpop.f32.mrf.mxu0  ;;  %v6221_v17 = vadd.f32 %v1543_v14, %v6035_v53 }
 0x1de   : > { %v4988_v28 = vpop.f32.mrf.mxu1 }
 0x1df   : > { %v1448_v29 = vpop.f32.mrf.mxu0  ;;  %v1913_v38 = vsel %vm1792_vm3, %v6221_v17, -inf  ;;  %v6238_v48 = vadd.f32 %v4988_v28, %v6055_v4 }
 0x1e0   : > { %1872 = vmax.xlane.f32.xlu0 %v1871_v24  ;;  %v1889_v24 = vsel %vm1792_vm3, %v6211_v6, -inf }
 0x1e1   : > { %1875 = vmax.xlane.f32.xlu1 %v1874_v25  ;;  %v1892_v25 = vsel %vm1792_vm3, %v6208_v3, -inf }
 0x1e4   : > { %1854 = vmax.xlane.f32.xlu0 %v1853_v36  ;;  %v6228_v36 = vadd.f32 %v4974_v15, %v6055_v4  ;;  %v1922_v15 = vsel %vm1792_vm3, %v6238_v48, -inf }
 0x1e5   : > { %1857 = vmax.xlane.f32.xlu1 %v1856_v37  ;;  %v6231_v37 = vadd.f32 %v1448_v29, %v6057_v5 }
 0x1e8   : > { %1878 = vmax.xlane.f32.xlu0 %v1877_v44  ;;  %v1553_v44 = vpop.f32.mrf.mxu1 }
 0x1e9   : > { %1881 = vmax.xlane.f32.xlu1 %v1880_v45  ;;  %v4977_v45 = vpop.f32.mrf.mxu0  ;;  %v6241_v49 = vadd.f32 %v1553_v44, %v6057_v5 }
 0x1ea   : > { %v4991_v60 = vpop.f32.mrf.mxu1 }
 0x1eb   : > { %v1458_v63 = vpop.f32.mrf.mxu0  ;;  %v1919_v14 = vsel %vm1792_vm3, %v6241_v49, -inf  ;;  %v6258_v28 = vadd.f32 %v4991_v60, %v6079_v18 }
 0x1ec   : > { %1860 = vmax.xlane.f32.xlu0 %v1859_v56  ;;  %v1895_v56 = vsel %vm1792_vm3, %v6231_v37, -inf }
 0x1ed   : > { %1863 = vmax.xlane.f32.xlu1 %v1862_v59  ;;  %v1898_v59 = vsel %vm1792_vm3, %v6228_v36, -inf  ;;  %8568 = vst [vmem:[#allocation5_spill] sm:$0xff] %v6258_v28 }
 0x1f0   : > { %1884 = vmax.xlane.f32.xlu0 %v1883_v8  ;;  %v6248_v8 = vadd.f32 %v4977_v45, %v6079_v18 }
 0x1f1   : > { %1887 = vmax.xlane.f32.xlu1 %v1886_v9  ;;  %v6251_v9 = vadd.f32 %v1458_v63, %v6081_v19  ;;  %v1928_v63 = vsel %vm1792_vm3, %v6258_v28, -inf }
 0x1f4   : > { %1890 = vmax.xlane.f32.xlu0 %v1889_v24  ;;  %v1563_v24 = vpop.f32.mrf.mxu1 }
 0x1f5   : > { %1893 = vmax.xlane.f32.xlu1 %v1892_v25  ;;  %v4980_v25 = vpop.f32.mrf.mxu0  ;;  %v6261_v29 = vadd.f32 %v1563_v24, %v6081_v19 }
 0x1f6   : > { %v4994_v44 = vpop.f32.mrf.mxu1 }
 0x1f7   : > { %8569 = vst [vmem:[#allocation6_spill] sm:$0xff] %v6261_v29  ;;  %v1468_v45 = vpop.f32.mrf.mxu0  ;;  %v1925_v60 = vsel %vm1792_vm3, %v6261_v29, -inf  ;;  %v6278_v24 = vadd.f32 %v4994_v44, %v6103_v32 }
 0x1f8   : > { %1914 = vmax.xlane.f32.xlu0 %v1913_v38  ;;  %v1901_v38 = vsel %vm1792_vm3, %v6251_v9, -inf }
 0x1f9   : > { %1917 = vmax.xlane.f32.xlu1 %v1916_v39  ;;  %v1904_v39 = vsel %vm1792_vm3, %v6248_v8, -inf  ;;  %8572 = vst [vmem:[#allocation9_spill] sm:$0xff] %v6278_v24 }
 0x1fc   : > { %1896 = vmax.xlane.f32.xlu0 %v1895_v56  ;;  %v6268_v56 = vadd.f32 %v4980_v25, %v6103_v32 }
 0x1fd   : > { %1899 = vmax.xlane.f32.xlu1 %v1898_v59  ;;  %v6271_v59 = vadd.f32 %v1468_v45, %v6105_v33 }
 0x1fe   : > { %8570 = vst [vmem:[#allocation7_spill] sm:$0xff] %v6268_v56 }
 0x1ff   : > { %8571 = vst [vmem:[#allocation8_spill] sm:$0xff] %v6271_v59  ;;  %v1907_v25 = vsel %vm1792_vm3, %v6271_v59, -inf }
 0x200   : > { %1920 = vmax.xlane.f32.xlu0 %v1919_v14  ;;  %v1573_v14 = vpop.f32.mrf.mxu1 }
 0x201   : > { %1923 = vmax.xlane.f32.xlu1 %v1922_v15  ;;  %v4999_v15 = vpop.f32.mrf.mxu0 }
 0x202   : > { %v5013_v45 = vpop.f32.mrf.mxu1  ;;  %v6288_v28 = vadd.f32 %v4999_v15, %v6037_v54 }
 0x203   : > { %v1648_v29 = vpop.f32.mrf.mxu0 }
 0x204   : > { %1902 = vmax.xlane.f32.xlu0 %v1901_v38  ;;  %v6281_v38 = vadd.f32 %v1573_v14, %v6105_v33  ;;  %v1753_v14 = vpop.f32.mrf.mxu1  ;;  %v1940_v15 = vsel %vm1792_vm3, %v6288_v28, -inf }
 0x205   : > { %1905 = vmax.xlane.f32.xlu1 %v1904_v39  ;;  %v1910_v39 = vsel %vm1792_vm3, %v6268_v56, -inf  ;;  %v5002_v59 = vpop.f32.mrf.mxu0  ;;  %v6298_v56 = vadd.f32 %v5013_v45, %v6037_v54 }
 0x206   : > { %8573 = vst [vmem:[#allocation10_spill] sm:$0xff] %v6281_v38  ;;  %v1931_v44 = vsel %vm1792_vm3, %v6281_v38, -inf }
 0x207   : > { %8574 = vst [vmem:[#allocation11_spill] sm:$0xff] %v6298_v56  ;;  %v1658_v38 = vpop.f32.mrf.mxu0  ;;  %v1964_v54 = vsel %vm1792_vm3, %v6298_v56, -inf }
 0x208   : > { %1926 = vmax.xlane.f32.xlu0 %v1925_v60  ;;  %v6291_v60 = vadd.f32 %v1648_v29, %v6035_v53 }
 0x209   : > { %1929 = vmax.xlane.f32.xlu1 %v1928_v63  ;;  %v1934_v63 = vsel %vm1792_vm3, %v6278_v24, -inf  ;;  %v6308_v24 = vadd.f32 %v5002_v59, %v6055_v4 }
 0x20a   : > { %v1937_v29 = vsel %vm1792_vm3, %v6291_v60, -inf }
 0x20c   : > { %1908 = vmax.xlane.f32.xlu0 %v1907_v25  ;;  %v6301_v25 = vadd.f32 %v1753_v14, %v6035_v53 }
 0x20d   : > { %1911 = vmax.xlane.f32.xlu1 %v1910_v39  ;;  %v5016_v39 = vpop.f32.mrf.mxu1 }
 0x20e   : > { %8575 = vst [vmem:[#allocation12_spill] sm:$0xff] %v6301_v25  ;;  %v1961_v53 = vsel %vm1792_vm3, %v6301_v25, -inf  ;;  %v6318_v14 = vadd.f32 %v5016_v39, %v6055_v4 }
 0x20f   : > { %v1763_v45 = vpop.f32.mrf.mxu1 }
 0x210   : > { %1932 = vmax.xlane.f32.xlu0 %v1931_v44  ;;  %v6311_v44 = vadd.f32 %v1658_v38, %v6057_v5  ;;  %8576 = vst [vmem:[#allocation13_spill] sm:$0xff] %v6318_v14  ;;  %v1946_v38 = vsel %vm1792_vm3, %v6308_v24, -inf }
 0x211   : > { %1935 = vmax.xlane.f32.xlu1 %v1934_v63  ;;  %v5005_v63 = vpop.f32.mrf.mxu0 }
 0x212   : > { %v1943_v59 = vsel %vm1792_vm3, %v6311_v44, -inf  ;;  %v6328_v56 = vadd.f32 %v5005_v63, %v6079_v18 }
 0x213   : > { %v1668_v25 = vpop.f32.mrf.mxu0 }
 0x214   : > { %1938 = vmax.xlane.f32.xlu0 %v1937_v29  ;;  %v6321_v29 = vadd.f32 %v1763_v45, %v6057_v5  ;;  %v1970_v5 = vsel %vm1792_vm3, %v6318_v14, -inf  ;;  %v1952_v63 = vsel %vm1792_vm3, %v6328_v56, -inf }
 0x215   : > { %1941 = vmax.xlane.f32.xlu1 %v1940_v15  ;;  %v5019_v15 = vpop.f32.mrf.mxu1 }
 0x216   : > { %8577 = vst [vmem:[#allocation14_spill] sm:$0xff] %v6321_v29  ;;  %v1967_v4 = vsel %vm1792_vm3, %v6321_v29, -inf  ;;  %v6338_v45 = vadd.f32 %v5019_v15, %v6079_v18 }
 0x217   : > { %v1773_v39 = vpop.f32.mrf.mxu1 }
 0x218   : > { %1962 = vmax.xlane.f32.xlu0 %v1961_v53  ;;  %v6331_v53 = vadd.f32 %v1668_v25, %v6081_v19  ;;  %8578 = vst [vmem:[#allocation15_spill] sm:$0xff] %v6338_v45 }
 0x219   : > { %1965 = vmax.xlane.f32.xlu1 %v1964_v54  ;;  %v5008_v54 = vpop.f32.mrf.mxu0 }
 0x21a   : > { %v1949_v25 = vsel %vm1792_vm3, %v6331_v53, -inf  ;;  %v6348_v14 = vadd.f32 %v5008_v54, %v6103_v32 }
 0x21b   : > { %v1678_v29 = vpop.f32.mrf.mxu0 }
 0x21c   : > { %1944 = vmax.xlane.f32.xlu0 %v1943_v59  ;;  %v6341_v59 = vadd.f32 %v1773_v39, %v6081_v19  ;;  %8579 = vst [vmem:[#allocation16_spill] sm:$0xff] %v6348_v14  ;;  %v1976_v19 = vsel %vm1792_vm3, %v6338_v45, -inf }
 0x21d   : > { %1947 = vmax.xlane.f32.xlu1 %v1946_v38  ;;  %v5022_v38 = vpop.f32.mrf.mxu1 }
 0x21e   : > { %v1973_v18 = vsel %vm1792_vm3, %v6341_v59, -inf }
 0x21f   : > { %v1783_v15 = vpop.f32.mrf.mxu1 }
 0x220   : > { %1968 = vmax.xlane.f32.xlu0 %v1967_v4  ;;  %v6351_v4 = vadd.f32 %v1678_v29, %v6105_v33  ;;  %v6361_v39 = vadd.f32 %v1783_v15, %v6105_v33  ;;  %v1958_v29 = vsel %vm1792_vm3, %v6348_v14, -inf }
 0x221   : > { %1971 = vmax.xlane.f32.xlu1 %v1970_v5  ;;  %v6358_v5 = vadd.f32 %v5022_v38, %v6103_v32 }
 0x222   : > { %8580 = vst [vmem:[#allocation17_spill] sm:$0xff] %v6351_v4  ;;  %8582 = vst [vmem:[#allocation19_spill] sm:$0xff] %v6361_v39  ;;  %v1955_v54 = vsel %vm1792_vm3, %v6351_v4, -inf }
 0x223   : > { %8581 = vst [vmem:[#allocation18_spill] sm:$0xff] %v6358_v5 }
 0x224   : > { %1950 = vmax.xlane.f32.xlu0 %v1949_v25  ;;  %v1979_v25 = vsel %vm1792_vm3, %v6361_v39, -inf }
 0x225   : > { %1953 = vmax.xlane.f32.xlu1 %v1952_v63  ;;  %v1982_v63 = vsel %vm1792_vm3, %v6358_v5, -inf }
 0x228   : > { %1974 = vmax.xlane.f32.xlu0 %v1973_v18 }
 0x229   : > { %1977 = vmax.xlane.f32.xlu1 %v1976_v19 }
 0x22c   : > { %1956 = vmax.xlane.f32.xlu0 %v1955_v54 }
 0x22d   : > { %1959 = vmax.xlane.f32.xlu1 %v1958_v29 }
 0x230   : > { %1980 = vmax.xlane.f32.xlu0 %v1979_v25 }
 0x231   : > { %1983 = vmax.xlane.f32.xlu1 %v1982_v63 }
 0x23d   : > { %v1798_v38 = vpop.xlane.xlu0 %1797 }
 0x23e   : > { %v1822_v32 = vpop.xlane.xlu1 %1821  ;;  %v1986_v18 = vsub.f32 %v6040_v57, %v1798_v38 }
 0x23f   : > { %v1994_v33 = vsub.f32 %v6043_v58, %v1822_v32 }
 0x240   : > { %v2051_v19 = vmul.f32 1.442695, %v1986_v18 }
 0x241   : > { %v2067_v15 = vmul.f32 1.442695, %v1994_v33  ;;  %v1819_v4 = vpop.xlane.xlu0 %1818 }
 0x242   : > { %v1795_v14 = vpop.xlane.xlu1 %1794  ;;  %v1993_v54 = vsub.f32 %v6049_v62, %v1819_v4  ;;  %5067 = vpow2.f32 %v2051_v19 }
 0x243   : > { %v1985_v29 = vsub.f32 %v6046_v61, %v1795_v14  ;;  %5069 = vpow2.f32 %v2067_v15 }
 0x244   : > { %v2065_v5 = vmul.f32 1.442695, %v1993_v54 }
 0x245   : > { %v2049_v39 = vmul.f32 1.442695, %v1985_v29  ;;  %v1801_v25 = vpop.xlane.xlu0 %1800 }
 0x246   : > { %v1804_v63 = vpop.xlane.xlu1 %1803  ;;  %v1987_v45 = vsub.f32 %v6063_v0, %v1801_v25 }
 0x247   : > { %v1988_v58 = vsub.f32 %v6060_v7, %v1804_v63  ;;  %5071 = vpow2.f32 %v2049_v39 }
 0x248   : > { %5073 = vpow2.f32 %v2065_v5  ;;  %v2053_v32 = vmul.f32 1.442695, %v1987_v45 }
 0x249   : > { %v2055_v57 = vmul.f32 1.442695, %v1988_v58  ;;  %v1825_v38 = vpop.xlane.xlu0 %1824 }
 0x24a   : > { %v1828_v33 = vpop.xlane.xlu1 %1827  ;;  %v1995_v62 = vsub.f32 %v6073_v13, %v1825_v38 }
 0x24b   : > { %v1996_v61 = vsub.f32 %v6070_v12, %v1828_v33  ;;  %5075 = vpow2.f32 %v2055_v57 }
 0x24c   : > { %5077 = vpow2.f32 %v2053_v32  ;;  %v2069_v4 = vmul.f32 1.442695, %v1995_v62 }
 0x24d   : > { %v2071_v14 = vmul.f32 1.442695, %v1996_v61  ;;  %v1807_v18 = vpop.xlane.xlu0 %1806 }
 0x24e   : > { %v1810_v19 = vpop.xlane.xlu1 %1809  ;;  %v1989_v0 = vsub.f32 %v6087_v21, %v1807_v18 }
 0x24f   : > { %v1990_v7 = vsub.f32 %v6084_v20, %v1810_v19  ;;  %5079 = vpow2.f32 %v2071_v14  ;;  %v6381_v39 = vpop.eup %5067 }
 0x250   : > { %5081 = vpow2.f32 %v2069_v4  ;;  %v2057_v5 = vmul.f32 1.442695, %v1989_v0  ;;  %v2180_v12 = vsel %vm1792_vm3, %v6381_v39, 0.0  ;;  %v6385_v54 = vpop.eup %5069 }
 0x251   : > { %v2059_v45 = vmul.f32 1.442695, %v1990_v7  ;;  %v1831_v15 = vpop.xlane.xlu0 %1830  ;;  %2181 = vadd.xlane.f32.xlu1 %v2180_v12  ;;  %v2204_v57 = vsel %vm1792_vm3, %v6385_v54, 0.0 }
 0x252   : > { %v1834_v13 = vpop.xlane.xlu1 %1833  ;;  %v1997_v29 = vsub.f32 %v6097_v27, %v1831_v15 }
 0x253   : > { %v1998_v21 = vsub.f32 %v6094_v26, %v1834_v13  ;;  %5083 = vpow2.f32 %v2059_v45 }
 0x254   : > { %v6389_v20 = vpop.eup %5071  ;;  %5085 = vpow2.f32 %v2057_v5  ;;  %v2073_v63 = vmul.f32 1.442695, %v1997_v29 }
 0x255   : > { %v2075_v25 = vmul.f32 1.442695, %v1998_v21  ;;  %v1813_v58 = vpop.xlane.xlu0 %1812  ;;  %v2177_v32 = vsel %vm1792_vm3, %v6389_v20, 0.0  ;;  %v6395_v33 = vpop.eup %5073  ;;  %2205 = vadd.xlane.f32.xlu1 %v2204_v57 }
 0x256   : > { %v1816_v38 = vpop.xlane.xlu1 %1815  ;;  %v1991_v27 = vsub.f32 %v6111_v35, %v1813_v58  ;;  %2178 = vadd.xlane.f32.xlu0 %v2177_v32  ;;  %v2201_v18 = vsel %vm1792_vm3, %v6395_v33, 0.0 }
 0x257   : > { %v1992_v26 = vsub.f32 %v6108_v34, %v1816_v38  ;;  %5087 = vpow2.f32 %v2075_v25 }
 0x258   : > { %v6399_v62 = vpop.eup %5075  ;;  %5089 = vpow2.f32 %v2073_v63  ;;  %v2061_v14 = vmul.f32 1.442695, %v1991_v27 }
 0x259   : > { %v2063_v61 = vmul.f32 1.442695, %v1992_v26  ;;  %v1837_v4 = vpop.xlane.xlu0 %1836  ;;  %v2186_v19 = vsel %vm1792_vm3, %v6399_v62, 0.0  ;;  %v6405_v7 = vpop.eup %5077 }
 0x25a   : > { %v1840_v0 = vpop.xlane.xlu1 %1839  ;;  %v1999_v35 = vsub.f32 %v6121_v41, %v1837_v4  ;;  %2202 = vadd.xlane.f32.xlu0 %v2201_v18  ;;  %2187 = vadd.xlane.f32.xlu1 %v2186_v19  ;;  %v2183_v13 = vsel %vm1792_vm3, %v6405_v7, 0.0 }
 0x25b   : > { %v2000_v34 = vsub.f32 %v6118_v40, %v1840_v0  ;;  %5091 = vpow2.f32 %v2063_v61 }
 0x25c   : > { %v6409_v45 = vpop.eup %5079  ;;  %5093 = vpow2.f32 %v2061_v14  ;;  %v2077_v15 = vmul.f32 1.442695, %v1999_v35 }
 0x25d   : > { %v2079_v5 = vmul.f32 1.442695, %v2000_v34  ;;  %v1843_v12 = vpop.xlane.xlu0 %1842  ;;  %v2210_v29 = vsel %vm1792_vm3, %v6409_v45, 0.0  ;;  %v6415_v25 = vpop.eup %5081 }
 0x25e   : > { %v1846_v21 = vpop.xlane.xlu1 %1845  ;;  %v2001_v41 = vsub.f32 %v6131_v47, %v1843_v12  ;;  %2184 = vadd.xlane.f32.xlu0 %v2183_v13  ;;  %2211 = vadd.xlane.f32.xlu1 %v2210_v29  ;;  %v2207_v38 = vsel %vm1792_vm3, %v6415_v25, 0.0 }
 0x25f   : > { %v2002_v40 = vsub.f32 %v6128_v46, %v1846_v21  ;;  %5095 = vpow2.f32 %v2079_v5 }
 0x260   : > { %v6419_v63 = vpop.eup %5083  ;;  %5097 = vpow2.f32 %v2077_v15  ;;  %v2081_v57 = vmul.f32 1.442695, %v2001_v41 }
 0x261   : > { %v2083_v58 = vmul.f32 1.442695, %v2002_v40  ;;  %v1867_v32 = vpop.xlane.xlu0 %1866  ;;  %v2192_v27 = vsel %vm1792_vm3, %v6419_v63, 0.0  ;;  %v6425_v61 = vpop.eup %5085 }
 0x262   : > { %v1870_v26 = vpop.xlane.xlu1 %1869  ;;  %v2009_v47 = vsub.f32 %v6141_v55, %v1867_v32  ;;  %2208 = vadd.xlane.f32.xlu0 %v2207_v38  ;;  %2193 = vadd.xlane.f32.xlu1 %v2192_v27  ;;  %v2189_v0 = vsel %vm1792_vm3, %v6425_v61, 0.0 }
 0x263   : > { %v2010_v46 = vsub.f32 %v6138_v52, %v1870_v26  ;;  %5099 = vpow2.f32 %v2083_v58 }
 0x264   : > { %v6429_v14 = vpop.eup %5087  ;;  %5101 = vpow2.f32 %v2081_v57  ;;  %v2097_v18 = vmul.f32 1.442695, %v2009_v47 }
 0x265   : > { %v2099_v4 = vmul.f32 1.442695, %v2010_v46  ;;  %v1849_v19 = vpop.xlane.xlu0 %1848  ;;  %v2216_v35 = vsel %vm1792_vm3, %v6429_v14, 0.0  ;;  %v6435_v5 = vpop.eup %5089 }
 0x266   : > { %v1852_v34 = vpop.xlane.xlu1 %1851  ;;  %v2003_v55 = vsub.f32 %v6151_v2, %v1849_v19  ;;  %2190 = vadd.xlane.f32.xlu0 %v2189_v0  ;;  %2217 = vadd.xlane.f32.xlu1 %v2216_v35  ;;  %v2213_v21 = vsel %vm1792_vm3, %v6435_v5, 0.0 }
 0x267   : > { %v2004_v52 = vsub.f32 %v6148_v1, %v1852_v34  ;;  %5103 = vpow2.f32 %v2099_v4 }
 0x268   : > { %v6439_v15 = vpop.eup %5091  ;;  %5105 = vpow2.f32 %v2097_v18  ;;  %v2085_v13 = vmul.f32 1.442695, %v2003_v55 }
 0x269   : > { %v2087_v12 = vmul.f32 1.442695, %v2004_v52  ;;  %v1873_v29 = vpop.xlane.xlu0 %1872  ;;  %v2198_v41 = vsel %vm1792_vm3, %v6439_v15, 0.0  ;;  %v6445_v58 = vpop.eup %5093 }
 0x26a   : > { %v1876_v40 = vpop.xlane.xlu1 %1875  ;;  %v2011_v2 = vsub.f32 %v6161_v11, %v1873_v29  ;;  %2214 = vadd.xlane.f32.xlu0 %v2213_v21  ;;  %2199 = vadd.xlane.f32.xlu1 %v2198_v41  ;;  %v2195_v26 = vsel %vm1792_vm3, %v6445_v58, 0.0 }
 0x26b   : > { %v2012_v1 = vsub.f32 %v6158_v10, %v1876_v40  ;;  %5107 = vpow2.f32 %v2087_v12 }
 0x26c   : > { %v6449_v57 = vpop.eup %5095  ;;  %5109 = vpow2.f32 %v2085_v13  ;;  %v2101_v38 = vmul.f32 1.442695, %v2011_v2 }
 0x26d   : > { %v2103_v32 = vmul.f32 1.442695, %v2012_v1  ;;  %v1855_v27 = vpop.xlane.xlu0 %1854  ;;  %v2222_v47 = vsel %vm1792_vm3, %v6449_v57, 0.0  ;;  %v6455_v4 = vpop.eup %5097 }
 0x26e   : > { %v1858_v46 = vpop.xlane.xlu1 %1857  ;;  %v2005_v11 = vsub.f32 %v6171_v23, %v1855_v27  ;;  %2196 = vadd.xlane.f32.xlu0 %v2195_v26  ;;  %2223 = vadd.xlane.f32.xlu1 %v2222_v47  ;;  %v2219_v34 = vsel %vm1792_vm3, %v6455_v4, 0.0 }
 0x26f   : > { %v2006_v10 = vsub.f32 %v6168_v22, %v1858_v46  ;;  %5111 = vpow2.f32 %v2103_v32 }
 0x270   : > { %v6459_v18 = vpop.eup %5099  ;;  %5113 = vpow2.f32 %v2101_v38  ;;  %v2089_v0 = vmul.f32 1.442695, %v2005_v11 }
 0x271   : > { %v2091_v19 = vmul.f32 1.442695, %v2006_v10  ;;  %v1879_v35 = vpop.xlane.xlu0 %1878  ;;  %v2228_v55 = vsel %vm1792_vm3, %v6459_v18, 0.0  ;;  %v6465_v12 = vpop.eup %5101 }
 0x272   : > { %v1882_v52 = vpop.xlane.xlu1 %1881  ;;  %v2013_v23 = vsub.f32 %v6181_v31, %v1879_v35  ;;  %2220 = vadd.xlane.f32.xlu0 %v2219_v34  ;;  %2229 = vadd.xlane.f32.xlu1 %v2228_v55  ;;  %v2225_v40 = vsel %vm1792_vm3, %v6465_v12, 0.0 }
 0x273   : > { %v2014_v22 = vsub.f32 %v6178_v30, %v1882_v52  ;;  %5115 = vpow2.f32 %v2091_v19 }
 0x274   : > { %v6469_v13 = vpop.eup %5103  ;;  %5117 = vpow2.f32 %v2089_v0  ;;  %v2105_v21 = vmul.f32 1.442695, %v2013_v23 }
 0x275   : > { %v2107_v29 = vmul.f32 1.442695, %v2014_v22  ;;  %v1861_v41 = vpop.xlane.xlu0 %1860  ;;  %v2252_v2 = vsel %vm1792_vm3, %v6469_v13, 0.0  ;;  %v6475_v32 = vpop.eup %5105 }
 0x276   : > { %v1864_v1 = vpop.xlane.xlu1 %1863  ;;  %v2007_v31 = vsub.f32 %v6191_v43, %v1861_v41  ;;  %2226 = vadd.xlane.f32.xlu0 %v2225_v40  ;;  %2253 = vadd.xlane.f32.xlu1 %v2252_v2  ;;  %v2249_v46 = vsel %vm1792_vm3, %v6475_v32, 0.0 }
 0x277   : > { %v2008_v30 = vsub.f32 %v6188_v42, %v1864_v1  ;;  %5119 = vpow2.f32 %v2107_v29 }
 0x278   : > { %v6479_v38 = vpop.eup %5107  ;;  %5121 = vpow2.f32 %v2105_v21  ;;  %v2093_v26 = vmul.f32 1.442695, %v2007_v31 }
 0x279   : > { %v2095_v27 = vmul.f32 1.442695, %v2008_v30  ;;  %v1885_v47 = vpop.xlane.xlu0 %1884  ;;  %v2234_v11 = vsel %vm1792_vm3, %v6479_v38, 0.0  ;;  %v6485_v19 = vpop.eup %5109 }
 0x27a   : > { %v1888_v10 = vpop.xlane.xlu1 %1887  ;;  %v2015_v43 = vsub.f32 %v6201_v51, %v1885_v47  ;;  %2250 = vadd.xlane.f32.xlu0 %v2249_v46  ;;  %2235 = vadd.xlane.f32.xlu1 %v2234_v11  ;;  %v2231_v52 = vsel %vm1792_vm3, %v6485_v19, 0.0 }
 0x27b   : > { %v2016_v42 = vsub.f32 %v6198_v50, %v1888_v10  ;;  %5123 = vpow2.f32 %v2095_v27 }
 0x27c   : > { %v6489_v0 = vpop.eup %5111  ;;  %5125 = vpow2.f32 %v2093_v26  ;;  %v2109_v34 = vmul.f32 1.442695, %v2015_v43 }
 0x27d   : > { %v2111_v35 = vmul.f32 1.442695, %v2016_v42  ;;  %v1891_v55 = vpop.xlane.xlu0 %1890  ;;  %v2258_v23 = vsel %vm1792_vm3, %v6489_v0, 0.0  ;;  %v6495_v29 = vpop.eup %5113 }
 0x27e   : > { %v1894_v22 = vpop.xlane.xlu1 %1893  ;;  %v2017_v51 = vsub.f32 %v6211_v6, %v1891_v55  ;;  %2232 = vadd.xlane.f32.xlu0 %v2231_v52  ;;  %2259 = vadd.xlane.f32.xlu1 %v2258_v23  ;;  %v2255_v1 = vsel %vm1792_vm3, %v6495_v29, 0.0 }
 0x27f   : > { %v2018_v50 = vsub.f32 %v6208_v3, %v1894_v22  ;;  %5127 = vpow2.f32 %v2111_v35 }
 0x280   : > { %v6499_v21 = vpop.eup %5115  ;;  %5129 = vpow2.f32 %v2109_v34  ;;  %v2113_v40 = vmul.f32 1.442695, %v2017_v51 }
 0x281   : > { %v2115_v41 = vmul.f32 1.442695, %v2018_v50  ;;  %v1915_v2 = vpop.xlane.xlu0 %1914  ;;  %v2240_v31 = vsel %vm1792_vm3, %v6499_v21, 0.0  ;;  %v6505_v27 = vpop.eup %5117 }
 0x282   : > { %v1918_v30 = vpop.xlane.xlu1 %1917  ;;  %v2025_v6 = vsub.f32 %v6221_v17, %v1915_v2  ;;  %2256 = vadd.xlane.f32.xlu0 %v2255_v1  ;;  %2241 = vadd.xlane.f32.xlu1 %v2240_v31  ;;  %v2237_v10 = vsel %vm1792_vm3, %v6505_v27, 0.0 }
 0x283   : > { %v2026_v3 = vsub.f32 %v6218_v16, %v1918_v30  ;;  %5131 = vpow2.f32 %v2115_v41 }
 0x284   : > { %v6509_v26 = vpop.eup %5119  ;;  %5133 = vpow2.f32 %v2113_v40  ;;  %v2129_v46 = vmul.f32 1.442695, %v2025_v6 }
 0x285   : > { %v2131_v47 = vmul.f32 1.442695, %v2026_v3  ;;  %v1897_v11 = vpop.xlane.xlu0 %1896  ;;  %v2264_v43 = vsel %vm1792_vm3, %v6509_v26, 0.0  ;;  %v6515_v35 = vpop.eup %5121 }
 0x286   : > { %v1900_v42 = vpop.xlane.xlu1 %1899  ;;  %v2019_v17 = vsub.f32 %v6231_v37, %v1897_v11  ;;  %2238 = vadd.xlane.f32.xlu0 %v2237_v10  ;;  %2265 = vadd.xlane.f32.xlu1 %v2264_v43  ;;  %v2261_v22 = vsel %vm1792_vm3, %v6515_v35, 0.0 }
 0x287   : > { %v2020_v16 = vsub.f32 %v6228_v36, %v1900_v42  ;;  %5135 = vpow2.f32 %v2131_v47 }
 0x288   : > { %v6519_v34 = vpop.eup %5123  ;;  %5137 = vpow2.f32 %v2129_v46  ;;  %v2117_v52 = vmul.f32 1.442695, %v2019_v17 }
 0x289   : > { %v2119_v55 = vmul.f32 1.442695, %v2020_v16  ;;  %v1921_v23 = vpop.xlane.xlu0 %1920  ;;  %v2246_v51 = vsel %vm1792_vm3, %v6519_v34, 0.0  ;;  %v6525_v41 = vpop.eup %5125 }
 0x28a   : > { %v1924_v50 = vpop.xlane.xlu1 %1923  ;;  %v2027_v37 = vsub.f32 %v6241_v49, %v1921_v23  ;;  %2262 = vadd.xlane.f32.xlu0 %v2261_v22  ;;  %2247 = vadd.xlane.f32.xlu1 %v2246_v51  ;;  %v2243_v30 = vsel %vm1792_vm3, %v6525_v41, 0.0 }
 0x28b   : > { %v2028_v36 = vsub.f32 %v6238_v48, %v1924_v50  ;;  %5139 = vpow2.f32 %v2119_v55 }
 0x28c   : > { %v6529_v40 = vpop.eup %5127  ;;  %5141 = vpow2.f32 %v2117_v52  ;;  %v2133_v1 = vmul.f32 1.442695, %v2027_v37 }
 0x28d   : > { %v2135_v2 = vmul.f32 1.442695, %v2028_v36  ;;  %v1903_v31 = vpop.xlane.xlu0 %1902  ;;  %v2270_v6 = vsel %vm1792_vm3, %v6529_v40, 0.0  ;;  %v6535_v47 = vpop.eup %5129 }
 0x28e   : > { %v1906_v3 = vpop.xlane.xlu1 %1905  ;;  %v2021_v49 = vsub.f32 %v6251_v9, %v1903_v31  ;;  %2244 = vadd.xlane.f32.xlu0 %v2243_v30  ;;  %2271 = vadd.xlane.f32.xlu1 %v2270_v6  ;;  %v2267_v42 = vsel %vm1792_vm3, %v6535_v47, 0.0  ;;  %v8583_v9 = vld [vmem:[#allocation6_spill] sm:$0xff]  ;;  %v8585_v30 = vld [vmem:[#allocation8_spill] sm:$0xff] }
 0x28f   : > { %v2022_v48 = vsub.f32 %v6248_v8, %v1906_v3  ;;  %5143 = vpow2.f32 %v2135_v2  ;;  %v8584_v8 = vld [vmem:[#allocation5_spill] sm:$0xff]  ;;  %v8586_v3 = vld [vmem:[#allocation7_spill] sm:$0xff] }
 0x290   : > { %v6539_v46 = vpop.eup %5131  ;;  %5145 = vpow2.f32 %v2133_v1  ;;  %v2121_v10 = vmul.f32 1.442695, %v2021_v49 }
 0x291   : > { %v2123_v11 = vmul.f32 1.442695, %v2022_v48  ;;  %v1927_v43 = vpop.xlane.xlu0 %1926  ;;  %v2276_v17 = vsel %vm1792_vm3, %v6539_v46, 0.0  ;;  %v6545_v55 = vpop.eup %5133 }
 0x292   : > { %v1930_v16 = vpop.xlane.xlu1 %1929  ;;  %v2029_v52 = vsub.f32 %v8583_v9, %v1927_v43  ;;  %2268 = vadd.xlane.f32.xlu0 %v2267_v42  ;;  %2277 = vadd.xlane.f32.xlu1 %v2276_v17  ;;  %v2273_v36 = vsel %vm1792_vm3, %v6545_v55, 0.0 }
 0x293   : > { %v2030_v23 = vsub.f32 %v8584_v8, %v1930_v16  ;;  %5147 = vpow2.f32 %v2123_v11 }
 0x294   : > { %v6549_v22 = vpop.eup %5135  ;;  %5149 = vpow2.f32 %v2121_v10  ;;  %v2137_v50 = vmul.f32 1.442695, %v2029_v52  ;;  %v8587_v52 = vld [vmem:[#allocation10_spill] sm:$0xff] }
 0x295   : > { %v2139_v51 = vmul.f32 1.442695, %v2030_v23  ;;  %v1909_v37 = vpop.xlane.xlu0 %1908  ;;  %v2300_v2 = vsel %vm1792_vm3, %v6549_v22, 0.0  ;;  %v6555_v31 = vpop.eup %5137  ;;  %v8588_v23 = vld [vmem:[#allocation9_spill] sm:$0xff] }
 0x296   : > { %v1912_v1 = vpop.xlane.xlu1 %1911  ;;  %v2023_v6 = vsub.f32 %v8585_v30, %v1909_v37  ;;  %2274 = vadd.xlane.f32.xlu0 %v2273_v36  ;;  %2301 = vadd.xlane.f32.xlu1 %v2300_v2  ;;  %v2297_v42 = vsel %vm1792_vm3, %v6555_v31, 0.0 }
 0x297   : > { %v2024_v49 = vsub.f32 %v8586_v3, %v1912_v1  ;;  %5151 = vpow2.f32 %v2139_v51 }
 0x298   : > { %v6559_v48 = vpop.eup %5139  ;;  %5153 = vpow2.f32 %v2137_v50  ;;  %v2125_v10 = vmul.f32 1.442695, %v2023_v6 }
 0x299   : > { %v2127_v11 = vmul.f32 1.442695, %v2024_v49  ;;  %v1933_v43 = vpop.xlane.xlu0 %1932  ;;  %v2282_v17 = vsel %vm1792_vm3, %v6559_v48, 0.0  ;;  %v6565_v9 = vpop.eup %5141 }
 0x29a   : > { %v1936_v16 = vpop.xlane.xlu1 %1935  ;;  %v2031_v8 = vsub.f32 %v8587_v52, %v1933_v43  ;;  %2298 = vadd.xlane.f32.xlu0 %v2297_v42  ;;  %2283 = vadd.xlane.f32.xlu1 %v2282_v17  ;;  %v2279_v1 = vsel %vm1792_vm3, %v6565_v9, 0.0 }
 0x29b   : > { %v2032_v51 = vsub.f32 %v8588_v23, %v1936_v16  ;;  %5155 = vpow2.f32 %v2127_v11 }
 0x29c   : > { %v6569_v37 = vpop.eup %5143  ;;  %5157 = vpow2.f32 %v2125_v10  ;;  %v2141_v36 = vmul.f32 1.442695, %v2031_v8 }
 0x29d   : > { %v2143_v50 = vmul.f32 1.442695, %v2032_v51  ;;  %v1939_v2 = vpop.xlane.xlu0 %1938  ;;  %v2306_v30 = vsel %vm1792_vm3, %v6569_v37, 0.0  ;;  %v6575_v3 = vpop.eup %5145 }
 0x29e   : > { %v1942_v6 = vpop.xlane.xlu1 %1941  ;;  %v2033_v49 = vsub.f32 %v6291_v60, %v1939_v2  ;;  %2280 = vadd.xlane.f32.xlu0 %v2279_v1  ;;  %2307 = vadd.xlane.f32.xlu1 %v2306_v30  ;;  %v2303_v16 = vsel %vm1792_vm3, %v6575_v3, 0.0  ;;  %v8590_v60 = vld [vmem:[#allocation12_spill] sm:$0xff] }
 0x29f   : > { %v2034_v11 = vsub.f32 %v6288_v28, %v1942_v6  ;;  %5159 = vpow2.f32 %v2143_v50  ;;  %v8591_v28 = vld [vmem:[#allocation11_spill] sm:$0xff] }
 0x2a0   : > { %v6579_v43 = vpop.eup %5147  ;;  %5161 = vpow2.f32 %v2141_v36  ;;  %v2145_v42 = vmul.f32 1.442695, %v2033_v49 }
 0x2a1   : > { %8589 = vst [vmem:[#allocation6_spill] sm:$0xff] %v6579_v43  ;;  %v2147_v10 = vmul.f32 1.442695, %v2034_v11  ;;  %v1963_v17 = vpop.xlane.xlu0 %1962  ;;  %v2288_v52 = vsel %vm1792_vm3, %v6579_v43, 0.0  ;;  %v6585_v23 = vpop.eup %5149 }
 0x2a2   : > { %v1966_v8 = vpop.xlane.xlu1 %1965  ;;  %v2041_v51 = vsub.f32 %v8590_v60, %v1963_v17  ;;  %2304 = vadd.xlane.f32.xlu0 %v2303_v16  ;;  %2289 = vadd.xlane.f32.xlu1 %v2288_v52  ;;  %v2285_v6 = vsel %vm1792_vm3, %v6585_v23, 0.0 }
 0x2a3   : > { %v2042_v50 = vsub.f32 %v8591_v28, %v1966_v8  ;;  %5163 = vpow2.f32 %v2147_v10 }
 0x2a4   : > { %v6589_v2 = vpop.eup %5151  ;;  %5165 = vpow2.f32 %v2145_v42  ;;  %v2161_v1 = vmul.f32 1.442695, %v2041_v51 }
 0x2a5   : > { %v2163_v36 = vmul.f32 1.442695, %v2042_v50  ;;  %v1945_v30 = vpop.xlane.xlu0 %1944  ;;  %v2312_v49 = vsel %vm1792_vm3, %v6589_v2, 0.0  ;;  %v6595_v43 = vpop.eup %5153 }
 0x2a6   : > { %v1948_v11 = vpop.xlane.xlu1 %1947  ;;  %8592 = vst [vmem:[#allocation5_spill] sm:$0xff] %v6595_v43  ;;  %v2035_v17 = vsub.f32 %v6311_v44, %v1945_v30  ;;  %2286 = vadd.xlane.f32.xlu0 %v2285_v6  ;;  %2313 = vadd.xlane.f32.xlu1 %v2312_v49  ;;  %v2309_v60 = vsel %vm1792_vm3, %v6595_v43, 0.0  ;;  %v8595_v44 = vld [vmem:[#allocation14_spill] sm:$0xff] }
 0x2a7   : > { %v2036_v10 = vsub.f32 %v6308_v24, %v1948_v11  ;;  %5167 = vpow2.f32 %v2163_v36  ;;  %v8596_v24 = vld [vmem:[#allocation13_spill] sm:$0xff] }
 0x2a8   : > { %v6599_v16 = vpop.eup %5155  ;;  %5169 = vpow2.f32 %v2161_v1  ;;  %v2149_v52 = vmul.f32 1.442695, %v2035_v17 }
 0x2a9   : > { %8593 = vst [vmem:[#allocation8_spill] sm:$0xff] %v6599_v16  ;;  %v2151_v42 = vmul.f32 1.442695, %v2036_v10  ;;  %v1969_v8 = vpop.xlane.xlu0 %1968  ;;  %v2294_v51 = vsel %vm1792_vm3, %v6599_v16, 0.0  ;;  %v6605_v50 = vpop.eup %5157 }
 0x2aa   : > { %v1972_v28 = vpop.xlane.xlu1 %1971  ;;  %8594 = vst [vmem:[#allocation7_spill] sm:$0xff] %v6605_v50  ;;  %v2043_v30 = vsub.f32 %v8595_v44, %v1969_v8  ;;  %2310 = vadd.xlane.f32.xlu0 %v2309_v60  ;;  %2295 = vadd.xlane.f32.xlu1 %v2294_v51  ;;  %v2291_v17 = vsel %vm1792_vm3, %v6605_v50, 0.0 }
 0x2ab   : > { %v2044_v36 = vsub.f32 %v8596_v24, %v1972_v28  ;;  %5171 = vpow2.f32 %v2151_v42 }
 0x2ac   : > { %v6609_v6 = vpop.eup %5159  ;;  %5173 = vpow2.f32 %v2149_v52  ;;  %v2165_v49 = vmul.f32 1.442695, %v2043_v30 }
 0x2ad   : > { %8597 = vst [vmem:[#allocation10_spill] sm:$0xff] %v6609_v6  ;;  %v2167_v1 = vmul.f32 1.442695, %v2044_v36  ;;  %v1951_v11 = vpop.xlane.xlu0 %1950  ;;  %v2318_v10 = vsel %vm1792_vm3, %v6609_v6, 0.0  ;;  %v6615_v43 = vpop.eup %5161 }
 0x2ae   : > { %v1954_v16 = vpop.xlane.xlu1 %1953  ;;  %8598 = vst [vmem:[#allocation9_spill] sm:$0xff] %v6615_v43  ;;  %v2037_v8 = vsub.f32 %v6331_v53, %v1951_v11  ;;  %2292 = vadd.xlane.f32.xlu0 %v2291_v17  ;;  %2319 = vadd.xlane.f32.xlu1 %v2318_v10  ;;  %v2315_v44 = vsel %vm1792_vm3, %v6615_v43, 0.0 }
 0x2af   : > { %v2038_v42 = vsub.f32 %v6328_v56, %v1954_v16  ;;  %5175 = vpow2.f32 %v2167_v1  ;;  %v8601_v56 = vld [vmem:[#allocation15_spill] sm:$0xff] }
 0x2b0   : > { %v6619_v60 = vpop.eup %5163  ;;  %5177 = vpow2.f32 %v2165_v49  ;;  %v2153_v51 = vmul.f32 1.442695, %v2037_v8 }
 0x2b1   : > { %8599 = vst [vmem:[#allocation12_spill] sm:$0xff] %v6619_v60  ;;  %v2155_v52 = vmul.f32 1.442695, %v2038_v42  ;;  %v1975_v28 = vpop.xlane.xlu0 %1974  ;;  %v2324_v30 = vsel %vm1792_vm3, %v6619_v60, 0.0  ;;  %v6625_v36 = vpop.eup %5165 }
 0x2b2   : > { %v1978_v24 = vpop.xlane.xlu1 %1977  ;;  %8600 = vst [vmem:[#allocation11_spill] sm:$0xff] %v6625_v36  ;;  %v2045_v53 = vsub.f32 %v6341_v59, %v1975_v28  ;;  %2316 = vadd.xlane.f32.xlu0 %v2315_v44  ;;  %2325 = vadd.xlane.f32.xlu1 %v2324_v30  ;;  %v2321_v10 = vsel %vm1792_vm3, %v6625_v36, 0.0  ;;  %v8604_v59 = vld [vmem:[#allocation17_spill] sm:$0xff] }
 0x2b3   : > { %v2046_v16 = vsub.f32 %v8601_v56, %v1978_v24  ;;  %5179 = vpow2.f32 %v2155_v52  ;;  %v8605_v52 = vld [vmem:[#allocation16_spill] sm:$0xff] }
 0x2b4   : > { %v6629_v1 = vpop.eup %5167  ;;  %5181 = vpow2.f32 %v2153_v51  ;;  %v2169_v11 = vmul.f32 1.442695, %v2045_v53 }
 0x2b5   : > { %8602 = vst [vmem:[#allocation14_spill] sm:$0xff] %v6629_v1  ;;  %v2171_v49 = vmul.f32 1.442695, %v2046_v16  ;;  %v1957_v17 = vpop.xlane.xlu0 %1956  ;;  %v2348_v8 = vsel %vm1792_vm3, %v6629_v1, 0.0  ;;  %v6635_v60 = vpop.eup %5169 }
 0x2b6   : > { %v1960_v42 = vpop.xlane.xlu1 %1959  ;;  %8603 = vst [vmem:[#allocation13_spill] sm:$0xff] %v6635_v60  ;;  %v2039_v28 = vsub.f32 %v8604_v59, %v1957_v17  ;;  %2322 = vadd.xlane.f32.xlu0 %v2321_v10  ;;  %2349 = vadd.xlane.f32.xlu1 %v2348_v8  ;;  %v2345_v56 = vsel %vm1792_vm3, %v6635_v60, 0.0  ;;  %v8608_v17 = vld [vmem:[#allocation19_spill] sm:$0xff] }
 0x2b7   : > { %v2040_v44 = vsub.f32 %v8605_v52, %v1960_v42  ;;  %5183 = vpow2.f32 %v2171_v49  ;;  %v8609_v49 = vld [vmem:[#allocation18_spill] sm:$0xff]  ;;  %v5454_v60 = vld [vmem:[%s5672_s11 + $0x40] sm:$0xff] }
 0x2b8   : > { %v6639_v30 = vpop.eup %5171  ;;  %5185 = vpow2.f32 %v2169_v11  ;;  %v2157_v24 = vmul.f32 1.442695, %v2039_v28 }
 0x2b9   : > { %8606 = vst [vmem:[#allocation15_spill] sm:$0xff] %v6639_v30  ;;  %v2159_v51 = vmul.f32 1.442695, %v2040_v44  ;;  %v1981_v53 = vpop.xlane.xlu0 %1980  ;;  %v2330_v16 = vsel %vm1792_vm3, %v6639_v30, 0.0  ;;  %v6645_v36 = vpop.eup %5173 }
 0x2ba   : > { %v1984_v1 = vpop.xlane.xlu1 %1983  ;;  %8607 = vst [vmem:[#allocation17_spill] sm:$0xff] %v6645_v36  ;;  %v2047_v10 = vsub.f32 %v8608_v17, %v1981_v53  ;;  %2346 = vadd.xlane.f32.xlu0 %v2345_v56  ;;  %2331 = vadd.xlane.f32.xlu1 %v2330_v16  ;;  %v2327_v28 = vsel %vm1792_vm3, %v6645_v36, 0.0 }
 0x2bb   : > { %v2048_v8 = vsub.f32 %v8609_v49, %v1984_v1  ;;  %5187 = vpow2.f32 %v2159_v51 }
 0x2bc   : > { %v6649_v42 = vpop.eup %5175  ;;  %5189 = vpow2.f32 %v2157_v24  ;;  %v2173_v59 = vmul.f32 1.442695, %v2047_v10 }
 0x2bd   : > { %8610 = vst [vmem:[#allocation16_spill] sm:$0xff] %v6649_v42  ;;  %v2175_v11 = vmul.f32 1.442695, %v2048_v8  ;;  %v2354_v52 = vsel %vm1792_vm3, %v6649_v42, 0.0  ;;  %v6655_v44 = vpop.eup %5177 }
 0x2be   : > { %8611 = vst [vmem:[#allocation19_spill] sm:$0xff] %v6655_v44  ;;  %2328 = vadd.xlane.f32.xlu0 %v2327_v28  ;;  %2355 = vadd.xlane.f32.xlu1 %v2354_v52  ;;  %v2351_v1 = vsel %vm1792_vm3, %v6655_v44, 0.0  ;;  %v5453_v44 = vld [vmem:[%s5672_s11 + $0x48] sm:$0xff] }
 0x2bf   : > { %5191 = vpow2.f32 %v2175_v11 }
 0x2c0   : > { %v6657_v53 = vpop.eup %5179  ;;  %5193 = vpow2.f32 %v2173_v59 }
 0x2c1   : > { %8612 = vst [vmem:[#allocation18_spill] sm:$0xff] %v6657_v53  ;;  %v2336_v51 = vsel %vm1792_vm3, %v6657_v53, 0.0  ;;  %v6663_v24 = vpop.eup %5181 }
 0x2c2   : > { %8613 = vst [vmem:[#allocation20_spill] sm:$0xff] %v6663_v24  ;;  %2352 = vadd.xlane.f32.xlu0 %v2351_v1  ;;  %2337 = vadd.xlane.f32.xlu1 %v2336_v51  ;;  %v2333_v16 = vsel %vm1792_vm3, %v6663_v24, 0.0 }
 0x2c4   : > { %v6665_v56 = vpop.eup %5183 }
 0x2c5   : > { %8614 = vst [vmem:[#allocation21_spill] sm:$0xff] %v6665_v56  ;;  %v2360_v17 = vsel %vm1792_vm3, %v6665_v56, 0.0  ;;  %v6671_v10 = vpop.eup %5185 }
 0x2c6   : > { %8615 = vst [vmem:[#allocation22_spill] sm:$0xff] %v6671_v10  ;;  %2334 = vadd.xlane.f32.xlu0 %v2333_v16  ;;  %2361 = vadd.xlane.f32.xlu1 %v2360_v17  ;;  %v2357_v8 = vsel %vm1792_vm3, %v6671_v10, 0.0 }
 0x2c8   : > { %v6673_v49 = vpop.eup %5187 }
 0x2c9   : > { %8616 = vst [vmem:[#allocation23_spill] sm:$0xff] %v6673_v49  ;;  %v2342_v11 = vsel %vm1792_vm3, %v6673_v49, 0.0  ;;  %v6679_v59 = vpop.eup %5189 }
 0x2ca   : > { %8617 = vst [vmem:[#allocation24_spill] sm:$0xff] %v6679_v59  ;;  %2358 = vadd.xlane.f32.xlu0 %v2357_v8  ;;  %2343 = vadd.xlane.f32.xlu1 %v2342_v11  ;;  %v2339_v52 = vsel %vm1792_vm3, %v6679_v59, 0.0 }
 0x2cc   : > { %v6681_v28 = vpop.eup %5191 }
 0x2cd   : > { %8618 = vst [vmem:[#allocation25_spill] sm:$0xff] %v6681_v28  ;;  %v2366_v1 = vsel %vm1792_vm3, %v6681_v28, 0.0  ;;  %v6687_v51 = vpop.eup %5193 }
 0x2ce   : > { %8619 = vst [vmem:[#allocation26_spill] sm:$0xff] %v6687_v51  ;;  %2340 = vadd.xlane.f32.xlu0 %v2339_v52  ;;  %2367 = vadd.xlane.f32.xlu1 %v2366_v1  ;;  %v2363_v16 = vsel %vm1792_vm3, %v6687_v51, 0.0 }
 0x2d2   : > { %2364 = vadd.xlane.f32.xlu0 %v2363_v16 }
 0x2da   : > { %v2182_v17 = vpop.xlane.xlu1 %2181 }
 0x2db   : > { %5195 = vrcp.f32 %v2182_v17  ;;  %v5451_v17 = vld [vmem:[%s5672_s11 + $0x8] sm:$0xff] }
 0x2de   : > { %v2206_v11 = vpop.xlane.xlu1 %2205 }
 0x2df   : > { %v2179_v8 = vpop.xlane.xlu0 %2178 }
 0x2e0   : > { %5197 = vrcp.f32 %v2179_v8 }
 0x2e1   : > { %5199 = vrcp.f32 %v2206_v11 }
 0x2e3   : > { %v2203_v49 = vpop.xlane.xlu0 %2202  ;;  %v2188_v59 = vpop.xlane.xlu1 %2187 }
 0x2e4   : > { %5201 = vrcp.f32 %v2203_v49 }
 0x2e5   : > { %5203 = vrcp.f32 %v2188_v59 }
 0x2e7   : > { %v2185_v28 = vpop.xlane.xlu0 %2184  ;;  %v2212_v10 = vpop.xlane.xlu1 %2211 }
 0x2e8   : > { %v5196_v56 = vpop.eup %5195  ;;  %5205 = vrcp.f32 %v2185_v28 }
 0x2e9   : > { %v2434_v52 = vmul.f32 %v5196_v56, %v6381_v39  ;;  %5207 = vrcp.f32 %v2212_v10  ;;  %v5452_v39 = vld [vmem:[%s5672_s11] sm:$0xff] }
 0x2eb   : > { %v2209_v1 = vpop.xlane.xlu0 %2208  ;;  %v2194_v16 = vpop.xlane.xlu1 %2193  ;;  %v2498_v51 = vmul.f32 %v5451_v17, %v2434_v52 }
 0x2ec   : > { %5209 = vrcp.f32 %v2209_v1 }
 0x2ed   : > { %v5198_v24 = vpop.eup %5197  ;;  %v2564_v11 = vsel %vm1792_vm3, %v2498_v51, 0.0  ;;  %5211 = vrcp.f32 %v2194_v16 }
 0x2ee   : > { %v5200_v8 = vpop.eup %5199  ;;  %v2433_v49 = vmul.f32 %v5198_v24, %v6389_v20  ;;  %2565 = vadd.xlane.f32.xlu1 %v2564_v11  ;;  %v2754_v24 = vmul.f32 %v5451_v17, %v2498_v51 }
 0x2ef   : > { %v2191_v59 = vpop.xlane.xlu0 %2190  ;;  %v2218_v53 = vpop.xlane.xlu1 %2217  ;;  %v2442_v28 = vmul.f32 %v5200_v8, %v6385_v54 }
 0x2f0   : > { %v2497_v56 = vmul.f32 %v5452_v39, %v2433_v49  ;;  %v2820_v6 = vsel %vm1792_vm3, %v2754_v24, 0.0  ;;  %5213 = vrcp.f32 %v2191_v59 }
 0x2f1   : > { %v5202_v10 = vpop.eup %5201  ;;  %v2506_v42 = vmul.f32 %v5453_v44, %v2442_v28  ;;  %5215 = vrcp.f32 %v2218_v53 }
 0x2f2   : > { %v2561_v52 = vsel %vm1792_vm3, %v2497_v56, 0.0  ;;  %v2441_v36 = vmul.f32 %v5202_v10, %v6395_v33  ;;  %v5204_v11 = vpop.eup %5203  ;;  %v2753_v8 = vmul.f32 %v5452_v39, %v2497_v56 }
 0x2f3   : > { %2562 = vadd.xlane.f32.xlu0 %v2561_v52  ;;  %v2215_v1 = vpop.xlane.xlu0 %2214  ;;  %v2588_v30 = vsel %vm1792_vm3, %v2506_v42, 0.0  ;;  %v2200_v20 = vpop.xlane.xlu1 %2199  ;;  %v2762_v10 = vmul.f32 %v5453_v44, %v2506_v42  ;;  %v2436_v52 = vmul.f32 %v5204_v11, %v6399_v62  ;;  %v5455_v42 = vld [vmem:[%s5672_s11 + $0x18] sm:$0xff] }
 0x2f4   : > { %2589 = vadd.xlane.f32.xlu1 %v2588_v30  ;;  %v2505_v43 = vmul.f32 %v5454_v60, %v2441_v36  ;;  %v2817_v36 = vsel %vm1792_vm3, %v2753_v8, 0.0  ;;  %5217 = vrcp.f32 %v2215_v1  ;;  %v5457_v11 = vld [vmem:[%s5672_s11 + $0x58] sm:$0xff] }
 0x2f5   : > { %v5206_v49 = vpop.eup %5205  ;;  %v2844_v39 = vsel %vm1792_vm3, %v2762_v10, 0.0  ;;  %v2500_v62 = vmul.f32 %v5455_v42, %v2436_v52  ;;  %5219 = vrcp.f32 %v2200_v20 }
 0x2f6   : > { %v2585_v54 = vsel %vm1792_vm3, %v2505_v43, 0.0  ;;  %v5208_v50 = vpop.eup %5207  ;;  %v2761_v30 = vmul.f32 %v5454_v60, %v2505_v43  ;;  %v2435_v51 = vmul.f32 %v5206_v49, %v6405_v7  ;;  %v5456_v60 = vld [vmem:[%s5672_s11 + $0x10] sm:$0xff] }
 0x2f7   : > { %2586 = vadd.xlane.f32.xlu0 %v2585_v54  ;;  %v2197_v28 = vpop.xlane.xlu0 %2196  ;;  %v2224_v33 = vpop.xlane.xlu1 %2223  ;;  %v2570_v59 = vsel %vm1792_vm3, %v2500_v62, 0.0  ;;  %v2756_v10 = vmul.f32 %v5455_v42, %v2500_v62 }
 0x2f8   : > { %2821 = vadd.xlane.f32.xlu1 %v2820_v6  ;;  %v2444_v6 = vmul.f32 %v5208_v50, %v6409_v45  ;;  %v2841_v43 = vsel %vm1792_vm3, %v2761_v30, 0.0  ;;  %v2499_v7 = vmul.f32 %v5456_v60, %v2435_v51  ;;  %v5458_v50 = vld [vmem:[%s5672_s11 + $0x50] sm:$0xff]  ;;  %5221 = vrcp.f32 %v2224_v33 }
 0x2f9   : > { %v5210_v17 = vpop.eup %5209  ;;  %v2826_v20 = vsel %vm1792_vm3, %v2756_v10, 0.0  ;;  %5223 = vrcp.f32 %v2197_v28 }
 0x2fa   : > { %v2443_v44 = vmul.f32 %v5210_v17, %v6415_v25  ;;  %v2508_v54 = vmul.f32 %v5457_v11, %v2444_v6  ;;  %v2567_v45 = vsel %vm1792_vm3, %v2499_v7, 0.0  ;;  %v5212_v52 = vpop.eup %5211  ;;  %v2755_v30 = vmul.f32 %v5456_v60, %v2499_v7 }
 0x2fb   : > { %2818 = vadd.xlane.f32.xlu0 %v2817_v36  ;;  %v2221_v16 = vpop.xlane.xlu0 %2220  ;;  %v6708_v56 = vpop.xlane.xlu1 %2229 }
 0x2fc   : > { %2845 = vadd.xlane.f32.xlu1 %v2844_v39  ;;  %v2507_v1 = vmul.f32 %v5458_v50, %v2443_v44  ;;  %v2594_v25 = vsel %vm1792_vm3, %v2508_v54, 0.0  ;;  %v2764_v6 = vmul.f32 %v5457_v11, %v2508_v54  ;;  %v2823_v42 = vsel %vm1792_vm3, %v2755_v30, 0.0  ;;  %v5459_v11 = vld [vmem:[%s5672_s11 + $0x28] sm:$0xff] }
 0x2fd   : > { %v5214_v51 = vpop.eup %5213  ;;  %5225 = vrcp.f32 %v2221_v16  ;;  %v5462_v16 = vld [vmem:[%s5672_s11 + $0x60] sm:$0xff] }
 0x2fe   : > { %v2591_v36 = vsel %vm1792_vm3, %v2507_v1, 0.0  ;;  %v5216_v44 = vpop.eup %5215  ;;  %v2763_v62 = vmul.f32 %v5458_v50, %v2507_v1  ;;  %v2437_v33 = vmul.f32 %v5214_v51, %v6425_v61  ;;  %v5460_v50 = vld [vmem:[%s5672_s11 + $0x20] sm:$0xff]  ;;  %5227 = vrcp.f32 %v6708_v56 }
 0x2ff   : > { %2842 = vadd.xlane.f32.xlu0 %v2841_v43  ;;  %v6715_v53 = vpop.xlane.xlu0 %2226  ;;  %v6718_v24 = vpop.xlane.xlu1 %2253  ;;  %v2438_v43 = vmul.f32 %v5212_v52, %v6419_v63  ;;  %v2446_v54 = vmul.f32 %v5216_v44, %v6429_v14 }
 0x300   : > { %2571 = vadd.xlane.f32.xlu1 %v2570_v59  ;;  %v2850_v59 = vsel %vm1792_vm3, %v2764_v6, 0.0  ;;  %v2847_v28 = vsel %vm1792_vm3, %v2763_v62, 0.0  ;;  %v2501_v61 = vmul.f32 %v5460_v50, %v2437_v33  ;;  %5229 = vrcp.f32 %v6715_v53 }
 0x301   : > { %v5218_v60 = vpop.eup %5217  ;;  %v2502_v63 = vmul.f32 %v5459_v11, %v2438_v43  ;;  %5231 = vrcp.f32 %v6718_v24 }
 0x302   : > { %v2445_v1 = vmul.f32 %v5218_v60, %v6435_v5  ;;  %v5220_v51 = vpop.eup %5219  ;;  %v2573_v14 = vsel %vm1792_vm3, %v2501_v61, 0.0 }
 0x303   : > { %2568 = vadd.xlane.f32.xlu0 %v2567_v45  ;;  %v6723_v8 = vpop.xlane.xlu0 %2250  ;;  %v6726_v49 = vpop.xlane.xlu1 %2235  ;;  %v2576_v10 = vsel %vm1792_vm3, %v2502_v63, 0.0  ;;  %v2758_v44 = vmul.f32 %v5459_v11, %v2502_v63 }
 0x304   : > { %2595 = vadd.xlane.f32.xlu1 %v2594_v25  ;;  %5233 = vrcp.f32 %v6723_v8  ;;  %v5466_v8 = vld [vmem:[%s5672_s11 + $0x70] sm:$0xff] }
 0x305   : > { %v5222_v62 = vpop.eup %5221  ;;  %5235 = vrcp.f32 %v6726_v49 }
 0x307   : > { %2592 = vadd.xlane.f32.xlu0 %v2591_v36  ;;  %v6729_v17 = vpop.xlane.xlu0 %2232  ;;  %v6732_v39 = vpop.xlane.xlu1 %2259  ;;  %v5461_v36 = vld [vmem:[%s5672_s11 + $0x68] sm:$0xff] }
 0x308   : > { %2827 = vadd.xlane.f32.xlu1 %v2826_v20  ;;  %v2510_v30 = vmul.f32 %v5461_v36, %v2446_v54  ;;  %v2509_v20 = vmul.f32 %v5462_v16, %v2445_v1  ;;  %5237 = vrcp.f32 %v6732_v39 }
 0x309   : > { %5239 = vrcp.f32 %v6729_v17 }
 0x30a   : > { %v2600_v5 = vsel %vm1792_vm3, %v2510_v30, 0.0  ;;  %v2597_v33 = vsel %vm1792_vm3, %v2509_v20, 0.0  ;;  %v2766_v60 = vmul.f32 %v5461_v36, %v2510_v30  ;;  %v2757_v36 = vmul.f32 %v5460_v50, %v2501_v61  ;;  %v5465_v50 = vld [vmem:[%s5672_s11 + $0x30] sm:$0xff] }
 0x30b   : > { %2824 = vadd.xlane.f32.xlu0 %v2823_v42  ;;  %v6737_v7 = vpop.xlane.xlu0 %2256  ;;  %v6740_v45 = vpop.xlane.xlu1 %2241  ;;  %v2440_v42 = vmul.f32 %v5220_v51, %v6439_v15  ;;  %v2448_v15 = vmul.f32 %v5222_v62, %v6449_v57  ;;  %v5464_v57 = vld [vmem:[%s5672_s11 + $0x78] sm:$0xff]  ;;  %v2765_v62 = vmul.f32 %v5462_v16, %v2509_v20 }
 0x30c   : > { %2851 = vadd.xlane.f32.xlu1 %v2850_v59  ;;  %v5224_v59 = vpop.eup %5223  ;;  %v2856_v63 = vsel %vm1792_vm3, %v2766_v60, 0.0  ;;  %v2829_v53 = vsel %vm1792_vm3, %v2757_v36, 0.0  ;;  %5241 = vrcp.f32 %v6737_v7 }
 0x30d   : > { %v2439_v56 = vmul.f32 %v5224_v59, %v6445_v58  ;;  %v5226_v30 = vpop.eup %5225  ;;  %5243 = vrcp.f32 %v6740_v45 }
 0x30e   : > { %v2447_v61 = vmul.f32 %v5226_v30, %v6455_v4  ;;  %v2853_v4 = vsel %vm1792_vm3, %v2765_v62, 0.0  ;;  %v5228_v49 = vpop.eup %5227 }
 0x30f   : > { %2848 = vadd.xlane.f32.xlu0 %v2847_v28  ;;  %v6747_v25 = vpop.xlane.xlu0 %2238  ;;  %v6750_v52 = vpop.xlane.xlu1 %2265  ;;  %v2832_v28 = vsel %vm1792_vm3, %v2758_v44, 0.0  ;;  %v2512_v44 = vmul.f32 %v5464_v57, %v2448_v15  ;;  %v2503_v58 = vmul.f32 %v5465_v50, %v2439_v56  ;;  %v2450_v39 = vmul.f32 %v5228_v49, %v6459_v18 }
 0x310   : > { %2577 = vadd.xlane.f32.xlu1 %v2576_v10  ;;  %v5463_v10 = vld [vmem:[%s5672_s11 + $0x38] sm:$0xff]  ;;  %v2511_v59 = vmul.f32 %v5466_v8, %v2447_v61  ;;  %v5230_v36 = vpop.eup %5229  ;;  %5245 = vrcp.f32 %v6750_v52 }
 0x311   : > { %v2504_v11 = vmul.f32 %v5463_v10, %v2440_v42  ;;  %v2606_v42 = vsel %vm1792_vm3, %v2512_v44, 0.0  ;;  %v2579_v60 = vsel %vm1792_vm3, %v2503_v58, 0.0  ;;  %v2759_v20 = vmul.f32 %v5465_v50, %v2503_v58 }
 0x312   : > { %v2603_v16 = vsel %vm1792_vm3, %v2511_v59, 0.0  ;;  %v2768_v30 = vmul.f32 %v5464_v57, %v2512_v44  ;;  %v2449_v50 = vmul.f32 %v5230_v36, %v6465_v12  ;;  %v5467_v57 = vld [vmem:[%s5672_s11 + $0x88] sm:$0xff]  ;;  %5247 = vrcp.f32 %v6747_v25 }
 0x313   : > { %2574 = vadd.xlane.f32.xlu0 %v2573_v14  ;;  %v6755_v6 = vpop.xlane.xlu0 %2262  ;;  %v6758_v43 = vpop.xlane.xlu1 %2247  ;;  %v2582_v14 = vsel %vm1792_vm3, %v2504_v11, 0.0  ;;  %v2514_v44 = vmul.f32 %v5467_v57, %v2450_v39 }
 0x314   : > { %2601 = vadd.xlane.f32.xlu1 %v2600_v5  ;;  %v2862_v61 = vsel %vm1792_vm3, %v2768_v30, 0.0  ;;  %5249 = vrcp.f32 %v6755_v6 }
 0x315   : > { %5251 = vrcp.f32 %v6758_v43 }
 0x317   : > { %2598 = vadd.xlane.f32.xlu0 %v2597_v33  ;;  %v6763_v54 = vpop.xlane.xlu0 %2244  ;;  %v6766_v1 = vpop.xlane.xlu1 %2271 }
 0x318   : > { %2833 = vadd.xlane.f32.xlu1 %v2832_v28  ;;  %v2760_v28 = vmul.f32 %v5463_v10, %v2504_v11  ;;  %v2835_v11 = vsel %vm1792_vm3, %v2759_v20, 0.0  ;;  %5253 = vrcp.f32 %v6766_v1 }
 0x319   : > { %5255 = vrcp.f32 %v6763_v54 }
 0x31a   : > { %v2838_v56 = vsel %vm1792_vm3, %v2760_v28, 0.0 }
 0x31b   : > { %v6774_v51 = vpop.xlane.xlu0 %2268  ;;  %2857 = vadd.xlane.f32.xlu0 %v2856_v63  ;;  %v6777_v5 = vpop.xlane.xlu1 %2277 }
 0x31c   : > { %2583 = vadd.xlane.f32.xlu1 %v2582_v14  ;;  %v5232_v14 = vpop.eup %5231  ;;  %5257 = vrcp.f32 %v6774_v51  ;;  %v5477_v51 = vld [vmem:[%s5672_s11 + $0xa0] sm:$0xff] }
 0x31d   : > { %v5234_v58 = vpop.eup %5233  ;;  %v2458_v18 = vmul.f32 %v5232_v14, %v6469_v13  ;;  %v5469_v13 = vld [vmem:[%s5672_s11 + $0xc8] sm:$0xff]  ;;  %5259 = vrcp.f32 %v6777_v5  ;;  %v3713_v5 = vlaneseq }
 0x31f   : > { %v6785_v24 = vpop.xlane.xlu0 %2274  ;;  %2830 = vadd.xlane.f32.xlu0 %v2829_v53  ;;  %v6788_v33 = vpop.xlane.xlu1 %2301  ;;  %v2767_v53 = vmul.f32 %v5466_v8, %v2511_v59  ;;  %v2457_v8 = vmul.f32 %v5234_v58, %v6475_v32  ;;  %v2612_v59 = vsel %vm1792_vm3, %v2514_v44, 0.0  ;;  %v5470_v32 = vld [vmem:[%s5672_s11 + $0xc0] sm:$0xff]  ;;  %v5472_v58 = vld [vmem:[%s5672_s11 + $0xd8] sm:$0xff] }
 0x320   : > { %2607 = vadd.xlane.f32.xlu1 %v2606_v42  ;;  %v5236_v42 = vpop.eup %5235  ;;  %5261 = vrcp.f32 %v6785_v24 }
 0x321   : > { %v2859_v17 = vsel %vm1792_vm3, %v2767_v53, 0.0  ;;  %v2452_v28 = vmul.f32 %v5236_v42, %v6479_v38  ;;  %v5238_v49 = vpop.eup %5237  ;;  %v2521_v36 = vmul.f32 %v5470_v32, %v2457_v8  ;;  %5263 = vrcp.f32 %v6788_v33 }
 0x322   : > { %v2460_v38 = vmul.f32 %v5238_v49, %v6489_v0  ;;  %v5240_v53 = vpop.eup %5239  ;;  %v6906_v33 = vand.u32 127, %v3713_v5 }
 0x323   : > { %2580 = vadd.xlane.f32.xlu0 %v2579_v60  ;;  %v6794_v15 = vpop.xlane.xlu0 %2298  ;;  %v6796_v63 = vpop.xlane.xlu1 %2283  ;;  %v5468_v60 = vld [vmem:[%s5672_s11 + $0x80] sm:$0xff]  ;;  %v2633_v14 = vsel %vm1792_vm3, %v2521_v36, 0.0  ;;  %v2451_v0 = vmul.f32 %v5240_v53, %v6485_v19  ;;  %v5475_v53 = vld [vmem:[%s5672_s11 + $0xa8] sm:$0xff] }
 0x324   : > { %2854 = vadd.xlane.f32.xlu1 %v2853_v4  ;;  %v2513_v12 = vmul.f32 %v5468_v60, %v2449_v50  ;;  %v2522_v4 = vmul.f32 %v5469_v13, %v2458_v18  ;;  %5265 = vrcp.f32 %v6794_v15 }
 0x325   : > { %5267 = vrcp.f32 %v6796_v63  ;;  %v6917_v63 = vshrl.u32 %v3713_v5, 7  ;;  %v3747_v5 = vadd.s32 4294967256, %v6906_v33 }
 0x326   : > { %v2609_v20 = vsel %vm1792_vm3, %v2513_v12, 0.0  ;;  %v2636_v45 = vsel %vm1792_vm3, %v2522_v4, 0.0  ;;  %v2778_v42 = vmul.f32 %v5469_v13, %v2522_v4 }
 0x327   : > { %2604 = vadd.xlane.f32.xlu0 %v2603_v16  ;;  %v6802_v10 = vpop.xlane.xlu0 %2280  ;;  %v6809_v62 = vpop.xlane.xlu1 %2307 }
 0x328   : > { %2839 = vadd.xlane.f32.xlu1 %v2838_v56  ;;  %v5471_v56 = vld [vmem:[%s5672_s11 + $0x98] sm:$0xff]  ;;  %v2892_v49 = vsel %vm1792_vm3, %v2778_v42, 0.0  ;;  %v5476_v42 = vld [vmem:[%s5672_s11 + $0xe8] sm:$0xff]  ;;  %5269 = vrcp.f32 %v6802_v10  ;;  %v3719_v10 = vadd.s32 4294967288, %v6906_v33 }
 0x329   : > { %v2516_v30 = vmul.f32 %v5471_v56, %v2452_v28  ;;  %5271 = vrcp.f32 %v6809_v62  ;;  %v5482_v62 = vld [vmem:[%s5672_s11 + $0xf0] sm:$0xff] }
 0x32b   : > { %2836 = vadd.xlane.f32.xlu0 %v2835_v11  ;;  %v6819_v16 = vpop.xlane.xlu0 %2304  ;;  %v6821_v7 = vpop.xlane.xlu1 %2289  ;;  %v2770_v11 = vmul.f32 %v5467_v57, %v2514_v44  ;;  %v2618_v50 = vsel %vm1792_vm3, %v2516_v30, 0.0  ;;  %v2769_v57 = vmul.f32 %v5468_v60, %v2513_v12  ;;  %v2777_v60 = vmul.f32 %v5470_v32, %v2521_v36 }
 0x32c   : > { %2863 = vadd.xlane.f32.xlu1 %v2862_v61  ;;  %v2524_v61 = vmul.f32 %v5472_v58, %v2460_v38 }
 0x32d   : > { %v2868_v18 = vsel %vm1792_vm3, %v2770_v11, 0.0  ;;  %v2865_v4 = vsel %vm1792_vm3, %v2769_v57, 0.0 }
 0x32e   : > { %v2642_v8 = vsel %vm1792_vm3, %v2524_v61, 0.0 }
 0x32f   : > { %2860 = vadd.xlane.f32.xlu0 %v2859_v17  ;;  %v6829_v39 = vpop.xlane.xlu0 %2286  ;;  %v6834_v52 = vpop.xlane.xlu1 %2313 }
 0x330   : > { %2613 = vadd.xlane.f32.xlu1 %v2612_v59  ;;  %v5242_v17 = vpop.eup %5241  ;;  %5273 = vrcp.f32 %v6819_v16 }
 0x331   : > { %v5244_v44 = vpop.eup %5243  ;;  %v2459_v19 = vmul.f32 %v5242_v17, %v6495_v29  ;;  %v2889_v29 = vsel %vm1792_vm3, %v2777_v60, 0.0  ;;  %5275 = vrcp.f32 %v6821_v7  ;;  %v6929_v7 = vsub.s32 %v3719_v10, %v6917_v63 }
 0x332   : > { %v2454_v12 = vmul.f32 %v5244_v44, %v6499_v21 }
 0x333   : > { %2610 = vadd.xlane.f32.xlu0 %v2609_v20  ;;  %v6839_v59 = vpop.xlane.xlu0 %2310  ;;  %v6842_v28 = vpop.xlane.xlu1 %2295  ;;  %v5473_v20 = vld [vmem:[%s5672_s11 + $0x90] sm:$0xff]  ;;  %8620 = vst [vmem:[#allocation27_spill] sm:$0xff] %v6929_v7 }
 0x334   : > { %2637 = vadd.xlane.f32.xlu1 %v2636_v45  ;;  %v2515_v13 = vmul.f32 %v5473_v20, %v2451_v0  ;;  %v5246_v45 = vpop.eup %5245  ;;  %v2518_v32 = vmul.f32 %v5475_v53, %v2454_v12  ;;  %5277 = vrcp.f32 %v6829_v39 }
 0x335   : > { %v2462_v21 = vmul.f32 %v5246_v45, %v6509_v26  ;;  %v5248_v57 = vpop.eup %5247  ;;  %5279 = vrcp.f32 %v6834_v52  ;;  %v3726_v52 = vadd.s32 4294967280, %v6906_v33 }
 0x336   : > { %v2615_v38 = vsel %vm1792_vm3, %v2515_v13, 0.0  ;;  %v2453_v54 = vmul.f32 %v5248_v57, %v6505_v27 }
 0x337   : > { %2634 = vadd.xlane.f32.xlu0 %v2633_v14  ;;  %v6850_v25 = vpop.xlane.xlu0 %2292  ;;  %v5474_v14 = vld [vmem:[%s5672_s11 + $0xd0] sm:$0xff]  ;;  %v6858_v36 = vpop.xlane.xlu1 %2319  ;;  %v2526_v43 = vmul.f32 %v5476_v42, %v2462_v21 }
 0x338   : > { %2619 = vadd.xlane.f32.xlu1 %v2618_v50  ;;  %v2523_v11 = vmul.f32 %v5474_v14, %v2459_v19  ;;  %v2772_v50 = vmul.f32 %v5471_v56, %v2516_v30  ;;  %v5250_v19 = vpop.eup %5249  ;;  %v2517_v45 = vmul.f32 %v5477_v51, %v2453_v54  ;;  %5281 = vrcp.f32 %v6839_v59 }
 0x339   : > { %v2648_v56 = vsel %vm1792_vm3, %v2526_v43, 0.0  ;;  %v3740_v59 = vadd.s32 4294967264, %v6906_v33 }
 0x33a   : > { %v2639_v6 = vsel %vm1792_vm3, %v2523_v11, 0.0  ;;  %v2874_v26 = vsel %vm1792_vm3, %v2772_v50, 0.0  ;;  %v2779_v1 = vmul.f32 %v5474_v14, %v2523_v11 }
 0x33b   : > { %2869 = vadd.xlane.f32.xlu0 %v2868_v18  ;;  %v2624_v18 = vsel %vm1792_vm3, %v2518_v32, 0.0  ;;  %v6864_v0 = vpop.xlane.xlu0 %2316  ;;  %v6867_v17 = vpop.xlane.xlu1 %2325 }
 0x33c   : > { %2643 = vadd.xlane.f32.xlu1 %v2642_v8  ;;  %v2780_v8 = vmul.f32 %v5472_v58, %v2524_v61  ;;  %v2895_v58 = vsel %vm1792_vm3, %v2779_v1, 0.0  ;;  %v2774_v61 = vmul.f32 %v5475_v53, %v2518_v32  ;;  %v2621_v53 = vsel %vm1792_vm3, %v2517_v45, 0.0  ;;  %v5478_v32 = vld [vmem:[%s5672_s11 + $0xe0] sm:$0xff] }
 0x33e   : > { %v2898_v44 = vsel %vm1792_vm3, %v2780_v8, 0.0  ;;  %v2880_v27 = vsel %vm1792_vm3, %v2774_v61, 0.0 }
 0x33f   : > { %2893 = vadd.xlane.f32.xlu0 %v2892_v49  ;;  %v6872_v30 = vpop.xlane.xlu0 %2322  ;;  %v2771_v49 = vmul.f32 %v5473_v20, %v2515_v13  ;;  %v6877_v60 = vpop.xlane.xlu1 %2349  ;;  %v2782_v20 = vmul.f32 %v5476_v42, %v2526_v43 }
 0x340   : > { %2866 = vadd.xlane.f32.xlu1 %v2865_v4  ;;  %v5252_v4 = vpop.eup %5251  ;;  %5283 = vrcp.f32 %v6842_v28 }
 0x341   : > { %v2871_v12 = vsel %vm1792_vm3, %v2771_v49, 0.0  ;;  %v2456_v13 = vmul.f32 %v5252_v4, %v6519_v34  ;;  %v5254_v14 = vpop.eup %5253  ;;  %v5479_v34 = vld [vmem:[%s5672_s11 + $0xb8] sm:$0xff]  ;;  %5285 = vrcp.f32 %v6850_v25  ;;  %v3754_v25 = vadd.s32 4294967248, %v6906_v33 }
 0x343   : > { %2616 = vadd.xlane.f32.xlu0 %v2615_v38  ;;  %v2461_v38 = vmul.f32 %v5250_v19, %v6515_v35  ;;  %v6884_v11 = vpop.xlane.xlu0 %2346  ;;  %v5256_v35 = vpop.eup %5255  ;;  %v2520_v50 = vmul.f32 %v5479_v34, %v2456_v13  ;;  %v2773_v19 = vmul.f32 %v5477_v51, %v2517_v45  ;;  %5287 = vrcp.f32 %v6858_v36  ;;  %v5486_v36 = vld [vmem:[%s5672_s11 + $0x140] sm:$0xff] }
 0x344   : > { %2890 = vadd.xlane.f32.xlu1 %v2889_v29  ;;  %v6887_v29 = vpop.xlane.xlu1 %2331  ;;  %v2455_v24 = vmul.f32 %v5256_v35, %v6525_v41  ;;  %v5258_v8 = vpop.eup %5257  ;;  %v5481_v41 = vld [vmem:[%s5672_s11 + $0xb0] sm:$0xff]  ;;  %5289 = vrcp.f32 %v6864_v0 }
 0x345   : > { %v2525_v21 = vmul.f32 %v5478_v32, %v2461_v38  ;;  %v2630_v57 = vsel %vm1792_vm3, %v2520_v50, 0.0  ;;  %v2463_v54 = vmul.f32 %v5258_v8, %v6535_v47  ;;  %v2877_v51 = vsel %vm1792_vm3, %v2773_v19, 0.0  ;;  %v5484_v19 = vld [vmem:[%s5672_s11 + $0x100] sm:$0xff] }
 0x346   : > { %v2519_v49 = vmul.f32 %v5481_v41, %v2455_v24  ;;  %v2776_v45 = vmul.f32 %v5479_v34, %v2520_v50 }
 0x347   : > { %2640 = vadd.xlane.f32.xlu0 %v2639_v6  ;;  %v2904_v6 = vsel %vm1792_vm3, %v2782_v20, 0.0  ;;  %v6896_v42 = vpop.xlane.xlu0 %2328  ;;  %v2645_v43 = vsel %vm1792_vm3, %v2525_v21, 0.0  ;;  %v2527_v4 = vmul.f32 %v5482_v62, %v2463_v54  ;;  %v4125_v20 = vadd.s32 4294967224, %v6906_v33 }
 0x348   : > { %2625 = vadd.xlane.f32.xlu1 %v2624_v18  ;;  %v2464_v18 = vmul.f32 %v5254_v14, %v6529_v40  ;;  %v6903_v40 = vpop.xlane.xlu1 %2355  ;;  %v2627_v47 = vsel %vm1792_vm3, %v2519_v49, 0.0  ;;  %v2775_v14 = vmul.f32 %v5481_v41, %v2519_v49  ;;  %v6967_v49 = vsub.s32 %v3726_v52, %v6917_v63 }
 0x349   : > { %v2651_v39 = vsel %vm1792_vm3, %v2527_v4, 0.0 }
 0x34a   : > { %v2883_v8 = vsel %vm1792_vm3, %v2775_v14, 0.0 }
 0x34b   : > { %2875 = vadd.xlane.f32.xlu0 %v2874_v26  ;;  %v2781_v26 = vmul.f32 %v5478_v32, %v2525_v21  ;;  %v2886_v32 = vsel %vm1792_vm3, %v2776_v45, 0.0 }
 0x34c   : > { %2649 = vadd.xlane.f32.xlu1 %v2648_v56  ;;  %v5480_v56 = vld [vmem:[%s5672_s11 + $0xf8] sm:$0xff]  ;;  %v6921_v61 = vpop.xlane.xlu1 %2337 }
 0x34d   : > { %v2528_v1 = vmul.f32 %v5480_v56, %v2464_v18 }
 0x34f   : > { %2899 = vadd.xlane.f32.xlu0 %v2898_v44  ;;  %v2901_v44 = vsel %vm1792_vm3, %v2781_v26, 0.0  ;;  %v2654_v15 = vsel %vm1792_vm3, %v2528_v1, 0.0  ;;  %v2784_v21 = vmul.f32 %v5480_v56, %v2528_v1  ;;  %v6952_v26 = vsub.s32 %v4125_v20, %v6917_v63  ;;  %v5483_v1 = vld [vmem:[%s5672_s11 + $0x108] sm:$0xff] }
 0x350   : > { %2896 = vadd.xlane.f32.xlu1 %v2895_v58  ;;  %v6914_v58 = vpop.xlane.xlu0 %2352  ;;  %v6945_v34 = vpop.xlane.xlu1 %2361 }
 0x351   : > { %v2910_v28 = vsel %vm1792_vm3, %v2784_v21, 0.0 }
 0x353   : > { %2872 = vadd.xlane.f32.xlu0 %v2871_v12  ;;  %v5260_v12 = vpop.eup %5259  ;;  %5291 = vrcp.f32 %v6867_v17 }
 0x354   : > { %2881 = vadd.xlane.f32.xlu1 %v2880_v27  ;;  %v5262_v16 = vpop.eup %5261  ;;  %v6933_v27 = vsub.s32 %v6906_v33, %v6917_v63  ;;  %v6936_v13 = vpop.xlane.xlu0 %2334  ;;  %v2466_v35 = vmul.f32 %v5260_v12, %v6539_v46  ;;  %v4139_v46 = vadd.s32 4294967208, %v6906_v33  ;;  %v3761_v12 = vadd.s32 4294967240, %v6906_v33 }
 0x355   : > { %v5264_v38 = vpop.eup %5263  ;;  %v2465_v50 = vmul.f32 %v5262_v16, %v6545_v55  ;;  %v2783_v55 = vmul.f32 %v5482_v62, %v2527_v4  ;;  %v6974_v4 = vsub.s32 %v3747_v5, %v6917_v63  ;;  %5293 = vrcp.f32 %v6872_v30 }
 0x356   : > { %8621 = vst [vmem:[#allocation28_spill] sm:$0xff] %v6933_v27  ;;  %v2474_v18 = vmul.f32 %v5264_v38, %v6549_v22  ;;  %v6980_v16 = vsub.s32 %v4139_v46, %v6917_v63  ;;  %v6983_v38 = vsub.s32 %v3740_v59, %v6917_v63  ;;  %5295 = vrcp.f32 %v6877_v60 }
 0x357   : > { %2622 = vadd.xlane.f32.xlu0 %v2621_v53  ;;  %v3733_v53 = vadd.s32 4294967272, %v6906_v33  ;;  %v2529_v10 = vmul.f32 %v5484_v19, %v2465_v50  ;;  %v2907_v14 = vsel %vm1792_vm3, %v2783_v55, 0.0  ;;  %v6998_v50 = vsub.s32 %v3761_v12, %v6917_v63 }
 0x358   : > { %2905 = vadd.xlane.f32.xlu1 %v2904_v6  ;;  %v4120_v6 = vadd.s32 4294967232, %v6906_v33 }
 0x359   : > { %v6958_v22 = vsub.s32 %v3733_v53, %v6917_v63 }
 0x35a   : > { %v6964_v41 = vsub.s32 %v4120_v6, %v6917_v63 }
 0x35b   : > { %2646 = vadd.xlane.f32.xlu0 %v2645_v43  ;;  %v5266_v43 = vpop.eup %5265  ;;  %5297 = vrcp.f32 %v6884_v11 }
 0x35c   : > { %2631 = vadd.xlane.f32.xlu1 %v2630_v57  ;;  %v5268_v24 = vpop.eup %5267  ;;  %v4132_v57 = vadd.s32 4294967216, %v6906_v33  ;;  %5299 = vrcp.f32 %v6887_v29 }
 0x35d   : > { %v5270_v56 = vpop.eup %5269  ;;  %v2468_v45 = vmul.f32 %v5268_v24, %v6559_v48  ;;  %v2657_v24 = vsel %vm1792_vm3, %v2529_v10, 0.0  ;;  %5301 = vrcp.f32 %v6896_v42  ;;  %v4167_v42 = vadd.s32 4294967176, %v6906_v33 }
 0x35e   : > { %v5272_v54 = vpop.eup %5271  ;;  %v2467_v53 = vmul.f32 %v5270_v56, %v6565_v9  ;;  %v2785_v9 = vmul.f32 %v5484_v19, %v2529_v10  ;;  %5303 = vrcp.f32 %v6903_v40  ;;  %v5499_v40 = vld [vmem:[%s5672_s11 + $0x188] sm:$0xff] }
 0x35f   : > { %2902 = vadd.xlane.f32.xlu0 %v2901_v44  ;;  %v2530_v44 = vmul.f32 %v5483_v1, %v2466_v35  ;;  %v5274_v20 = vpop.eup %5273 }
 0x360   : > { %2655 = vadd.xlane.f32.xlu1 %v2654_v15  ;;  %v6969_v15 = vpop.xlane.xlu0 %2358  ;;  %v5276_v48 = vpop.eup %5275  ;;  %v2913_v19 = vsel %vm1792_vm3, %v2785_v9, 0.0 }
 0x361   : > { %v2660_v52 = vsel %vm1792_vm3, %v2530_v44, 0.0  ;;  %v5278_v21 = vpop.eup %5277  ;;  %v2786_v35 = vmul.f32 %v5483_v1, %v2530_v44 }
 0x362   : > { %v2469_v44 = vmul.f32 %v5278_v21, %v6585_v23 }
 0x363   : > { %2628 = vadd.xlane.f32.xlu0 %v2627_v47  ;;  %v5485_v47 = vld [vmem:[%s5672_s11 + $0x148] sm:$0xff] }
 0x364   : > { %2878 = vadd.xlane.f32.xlu1 %v2877_v51  ;;  %v2538_v62 = vmul.f32 %v5485_v47, %v2474_v18  ;;  %v2473_v51 = vmul.f32 %v5266_v43, %v6555_v31  ;;  %v6991_v31 = vsub.s32 %v4132_v57, %v6917_v63  ;;  %v5280_v18 = vpop.eup %5279  ;;  %v5487_v43 = vld [vmem:[%s5672_s11 + $0x118] sm:$0xff]  ;;  %v7005_v59 = vpop.xlane.xlu0 %2340 }
 0x365   : > { %v2532_v46 = vmul.f32 %v5487_v43, %v2468_v45  ;;  %v8622_v57 = vld [vmem:[#allocation6_spill] sm:$0xff]  ;;  %v2478_v10 = vmul.f32 %v5280_v18, %v6589_v2  ;;  %v8624_v18 = vld [vmem:[#allocation5_spill] sm:$0xff] }
 0x366   : > { %v2794_v6 = vmul.f32 %v5485_v47, %v2538_v62  ;;  %v2537_v5 = vmul.f32 %v5486_v36, %v2473_v51  ;;  %v2470_v56 = vmul.f32 %v5276_v48, %v8622_v57  ;;  %v2684_v0 = vsel %vm1792_vm3, %v2538_v62, 0.0  ;;  %v5282_v62 = vpop.eup %5281  ;;  %v5490_v51 = vld [vmem:[%s5672_s11 + $0x150] sm:$0xff]  ;;  %v5491_v48 = vld [vmem:[%s5672_s11 + $0x128] sm:$0xff] }
 0x367   : > { %2652 = vadd.xlane.f32.xlu0 %v2651_v39  ;;  %v6986_v39 = vpop.xlane.xlu1 %2343  ;;  %v4153_v47 = vadd.s32 4294967192, %v6906_v33  ;;  %v2666_v30 = vsel %vm1792_vm3, %v2532_v46, 0.0  ;;  %v8626_v57 = vld [vmem:[#allocation8_spill] sm:$0xff] }
 0x368   : > { %2887 = vadd.xlane.f32.xlu1 %v2886_v32  ;;  %v2476_v32 = vmul.f32 %v5272_v54, %v6569_v37  ;;  %v2475_v37 = vmul.f32 %v5274_v20, %v6575_v3  ;;  %v7014_v3 = vsub.s32 %v3754_v25, %v6917_v63  ;;  %v2916_v54 = vsel %vm1792_vm3, %v2786_v35, 0.0  ;;  %v5492_v25 = vld [vmem:[%s5672_s11 + $0x120] sm:$0xff]  ;;  %v7030_v9 = vpop.xlane.xlu0 %2364 }
 0x369   : > { %v2940_v23 = vsel %vm1792_vm3, %v2794_v6, 0.0  ;;  %v2793_v12 = vmul.f32 %v5486_v36, %v2537_v5  ;;  %v2788_v20 = vmul.f32 %v5487_v43, %v2532_v46  ;;  %v2533_v21 = vmul.f32 %v5492_v25, %v2469_v44  ;;  %8623 = vst [vmem:[#allocation6_spill] sm:$0xff] %v7030_v9  ;;  %v8631_v9 = vld [vmem:[#allocation12_spill] sm:$0xff] }
 0x36a   : > { %v2539_v45 = vmul.f32 %v5490_v51, %v2475_v37  ;;  %v4146_v35 = vadd.s32 4294967200, %v6906_v33  ;;  %v2477_v36 = vmul.f32 %v5282_v62, %v8624_v18  ;;  %v7036_v37 = vsub.s32 %v4153_v47, %v6917_v63  ;;  %v8628_v18 = vld [vmem:[#allocation7_spill] sm:$0xff] }
 0x36b   : > { %2884 = vadd.xlane.f32.xlu0 %v2883_v8  ;;  %v5488_v8 = vld [vmem:[%s5672_s11 + $0x110] sm:$0xff]  ;;  %v7016_v17 = vpop.xlane.xlu1 %2367  ;;  %v2937_v60 = vsel %vm1792_vm3, %v2793_v12, 0.0  ;;  %v2789_v62 = vmul.f32 %v5492_v25, %v2533_v21  ;;  %v7069_v11 = vsel %vm1792_vm3, %v2533_v21, 0.0  ;;  %v8629_v21 = vld [vmem:[#allocation10_spill] sm:$0xff] }
 0x36c   : > { %2911 = vadd.xlane.f32.xlu1 %v2910_v28  ;;  %v2531_v55 = vmul.f32 %v5488_v8, %v2467_v53  ;;  %v5489_v28 = vld [vmem:[%s5672_s11 + $0x158] sm:$0xff]  ;;  %v2681_v53 = vsel %vm1792_vm3, %v2537_v5, 0.0  ;;  %v5493_v5 = vld [vmem:[%s5672_s11 + $0x168] sm:$0xff]  ;;  %8625 = vst [vmem:[#allocation5_spill] sm:$0xff] %v7036_v37  ;;  %v7055_v12 = vsub.s32 %v4146_v35, %v6917_v63 }
 0x36d   : > { %v2540_v1 = vmul.f32 %v5489_v28, %v2476_v32  ;;  %v2542_v43 = vmul.f32 %v5493_v5, %v2478_v10  ;;  %v7049_v10 = vsel %vm1792_vm3, %v2539_v45, 0.0 }
 0x36e   : > { %v2787_v32 = vmul.f32 %v5488_v8, %v2531_v55  ;;  %v2795_v8 = vmul.f32 %v5490_v51, %v2539_v45  ;;  %8627 = vst [vmem:[#allocation8_spill] sm:$0xff] %v7055_v12 }
 0x36f   : > { %2908 = vadd.xlane.f32.xlu0 %v2907_v14  ;;  %v5284_v14 = vpop.eup %5283  ;;  %v2796_v2 = vmul.f32 %v5489_v28, %v2540_v1  ;;  %v2690_v46 = vsel %vm1792_vm3, %v2540_v1, 0.0  ;;  %v2798_v45 = vmul.f32 %v5493_v5, %v2542_v43 }
 0x370   : > { %2661 = vadd.xlane.f32.xlu1 %v2660_v52  ;;  %v2534_v52 = vmul.f32 %v5491_v48, %v2470_v56  ;;  %v2472_v56 = vmul.f32 %v5284_v14, %v8626_v57  ;;  %v7046_v28 = vsel %vm1792_vm3, %v2787_v32, 0.0  ;;  %v7065_v32 = vsel %vm1792_vm3, %v2795_v8, 0.0 }
 0x371   : > { %v7052_v47 = vsel %vm1792_vm3, %v2796_v2, 0.0  ;;  %v5495_v2 = vld [vmem:[%s5672_s11 + $0x138] sm:$0xff]  ;;  %v7083_v57 = vsel %vm1792_vm3, %v2789_v62, 0.0  ;;  %v8630_v62 = vld [vmem:[#allocation9_spill] sm:$0xff] }
 0x372   : > { %v2790_v44 = vmul.f32 %v5491_v48, %v2534_v52  ;;  %v7059_v51 = vsel %vm1792_vm3, %v2534_v52, 0.0  ;;  %v2536_v25 = vmul.f32 %v5495_v2, %v2472_v56 }
 0x373   : > { %2658 = vadd.xlane.f32.xlu0 %v2657_v24  ;;  %v7040_v24 = vsel %vm1792_vm3, %v2788_v20, 0.0 }
 0x374   : > { %2685 = vadd.xlane.f32.xlu1 %v2684_v0  ;;  %v2663_v0 = vsel %vm1792_vm3, %v2531_v55, 0.0  ;;  %v7075_v52 = vsel %vm1792_vm3, %v2790_v44, 0.0  ;;  %v2792_v12 = vmul.f32 %v5495_v2, %v2536_v25 }
 0x377   : > { %2682 = vadd.xlane.f32.xlu0 %v2681_v53  ;;  %v2566_v6 = vpop.xlane.xlu1 %2565 }
 0x378   : > { %2917 = vadd.xlane.f32.xlu1 %v2916_v54  ;;  %v5286_v54 = vpop.eup %5285  ;;  %v3723_v14 = vrot.slane %v2566_v6, %v6929_v7 }
 0x379   : > { %v5288_v55 = vpop.eup %5287 }
 0x37a   : > { %v5290_v35 = vpop.eup %5289  ;;  %v2480_v56 = vmul.f32 %v5288_v55, %v8629_v21  ;;  %v7097_v21 = vsel %vm1792_vm3, %v2536_v25, 0.0 }
 0x37b   : > { %2914 = vadd.xlane.f32.xlu0 %v2913_v19  ;;  %v5494_v19 = vld [vmem:[%s5672_s11 + $0x160] sm:$0xff]  ;;  %v5292_v5 = vpop.eup %5291 }
 0x37c   : > { %2941 = vadd.xlane.f32.xlu1 %v2940_v23  ;;  %v2563_v1 = vpop.xlane.xlu0 %2562  ;;  %v2541_v20 = vmul.f32 %v5494_v19, %v2477_v36  ;;  %v7072_v23 = vsel %vm1792_vm3, %v2542_v43, 0.0  ;;  %v2471_v36 = vmul.f32 %v5286_v54, %v8628_v18  ;;  %v3010_v43 = vmul.f32 %v2566_v6, %v2566_v6  ;;  %v5496_v6 = vld [vmem:[%s5672_s11 + $0x130] sm:$0xff] }
 0x37d   : > { %v3718_v53 = vrot.slane %v2563_v1, %v6933_v27  ;;  %v2590_v48 = vpop.xlane.xlu1 %2589  ;;  %v7090_v18 = vsel %vm1792_vm3, %v2798_v45, 0.0  ;;  %v3009_v45 = vmul.f32 %v2563_v1, %v2563_v1 }
 0x37e   : > { %v7087_v44 = vsel %vm1792_vm3, %v2541_v20, 0.0  ;;  %v2797_v54 = vmul.f32 %v5494_v19, %v2541_v20  ;;  %v3775_v29 = vrot.slane %v2590_v48, %v6929_v7  ;;  %v2482_v19 = vmul.f32 %v5292_v5, %v8631_v9  ;;  %v5294_v20 = vpop.eup %5293 }
 0x37f   : > { %v7080_v8 = vsel %vm8560_vm4, %v3723_v14, %v3718_v53  ;;  %2938 = vadd.xlane.f32.xlu0 %v2937_v60  ;;  %v2479_v53 = vmul.f32 %v5290_v35, %v8630_v62  ;;  %v5296_v2 = vpop.eup %5295  ;;  %v3018_v1 = vmul.f32 %v2590_v48, %v2590_v48 }
 0x380   : > { %2667 = vadd.xlane.f32.xlu1 %v2666_v30  ;;  %v2587_v37 = vpop.xlane.xlu0 %2586  ;;  %v2535_v30 = vmul.f32 %v5496_v6, %v2471_v36  ;;  %v7109_v9 = vsel %vm1792_vm3, %v2797_v54, 0.0 }
 0x381   : > { %v3771_v60 = vrot.slane %v2587_v37, %v6933_v27  ;;  %v2822_v14 = vpop.xlane.xlu1 %2821  ;;  %v5497_v27 = vld [vmem:[%s5672_s11 + $0x178] sm:$0xff] }
 0x382   : > { %v3074_v55 = vsub.f32 %v2822_v14, %v3010_v43  ;;  %v2544_v35 = vmul.f32 %v5497_v27, %v2480_v56  ;;  %v7114_v56 = vsel %vm1792_vm3, %v2792_v12, 0.0  ;;  %v8632_v14 = vld [vmem:[#allocation11_spill] sm:$0xff]  ;;  %v3017_v12 = vmul.f32 %v2587_v37, %v2587_v37 }
 0x383   : > { %v7102_v7 = vsel %vm8560_vm4, %v3775_v29, %v3771_v60  ;;  %2664 = vadd.xlane.f32.xlu0 %v2663_v0  ;;  %v5498_v0 = vld [vmem:[%s5672_s11 + $0x170] sm:$0xff]  ;;  %v2791_v60 = vmul.f32 %v5496_v6, %v2535_v30  ;;  %v2481_v54 = vmul.f32 %v5294_v20, %v8632_v14  ;;  %v4160_v6 = vadd.s32 4294967184, %v6906_v33  ;;  %v5298_v20 = vpop.eup %5297 }
 0x384   : > { %v7106_v36 = vmax.f32 %v3074_v55, 0.0001  ;;  %2691 = vadd.xlane.f32.xlu1 %v2690_v46  ;;  %v2819_v25 = vpop.xlane.xlu0 %2818  ;;  %v2543_v29 = vmul.f32 %v5498_v0, %v2479_v53  ;;  %v2546_v46 = vmul.f32 %v5499_v40, %v2482_v19  ;;  %v2800_v48 = vmul.f32 %v5497_v27, %v2544_v35  ;;  %v5300_v14 = vpop.eup %5299 }
 0x385   : > { %v3073_v5 = vsub.f32 %v2819_v25, %v3009_v45  ;;  %v2846_v43 = vpop.xlane.xlu1 %2845  ;;  %v8633_v45 = vld [vmem:[#allocation14_spill] sm:$0xff]  ;;  %v7126_v19 = vsel %vm1792_vm3, %v2535_v30, 0.0  ;;  %v7131_v27 = vsel %vm1792_vm3, %v2544_v35, 0.0  ;;  %v7145_v35 = vsel %vm1792_vm3, %v2791_v60, 0.0 }
 0x386   : > { %5305 = vrsqrt.f32 %v7106_v36  ;;  %v3082_v55 = vsub.f32 %v2846_v43, %v3018_v1  ;;  %v2490_v53 = vmul.f32 %v5296_v2, %v8633_v45  ;;  %v7134_v2 = vsub.s32 %v4167_v42, %v6917_v63  ;;  %v5500_v1 = vld [vmem:[%s5672_s11 + $0x180] sm:$0xff]  ;;  %v5501_v43 = vld [vmem:[%s5672_s11 + $0x1c8] sm:$0xff] }
 0x387   : > { %v7119_v62 = vmax.f32 %v3073_v5, 0.0001  ;;  %2688 = vadd.xlane.f32.xlu0 %v7049_v10  ;;  %5307 = vrcp.f32 %v6914_v58  ;;  %v2799_v58 = vmul.f32 %v5498_v0, %v2543_v29  ;;  %v2545_v30 = vmul.f32 %v5500_v1, %v2481_v54 }
 0x388   : > { %2923 = vadd.xlane.f32.xlu1 %v7040_v24  ;;  %v2843_v25 = vpop.xlane.xlu0 %2842  ;;  %8634 = vst [vmem:[#allocation7_spill] sm:$0xff] %v7134_v2  ;;  %v7136_v37 = vmax.f32 %v3082_v55, 0.0001  ;;  %v2802_v5 = vmul.f32 %v5499_v40, %v2546_v46  ;;  %v7142_v33 = vsel %vm1792_vm3, %v2800_v48, 0.0  ;;  %v2554_v42 = vmul.f32 %v5501_v43, %v2490_v53  ;;  %v8636_v53 = vld [vmem:[#allocation15_spill] sm:$0xff] }
 0x389   : > { %5309 = vrsqrt.f32 %v7119_v62  ;;  %v2572_v10 = vpop.xlane.xlu1 %2571  ;;  %v3081_v24 = vsub.f32 %v2843_v25, %v3017_v12  ;;  %v7151_v40 = vsel %vm1792_vm3, %v2543_v29, 0.0  ;;  %v7162_v45 = vsel %vm1792_vm3, %v2546_v46, 0.0  ;;  %v5302_v25 = vpop.eup %5301 }
 0x38a   : > { %5311 = vrcp.f32 %v6921_v61  ;;  %v7154_v61 = vsub.s32 %v4160_v6, %v6917_v63  ;;  %v7169_v63 = vsel %vm1792_vm3, %v2802_v5, 0.0  ;;  %v2801_v29 = vmul.f32 %v5500_v1, %v2545_v30  ;;  %v5304_v5 = vpop.eup %5303 }
 0x38b   : > { %2944 = vadd.xlane.f32.xlu0 %v7065_v32  ;;  %5313 = vrsqrt.f32 %v7136_v37  ;;  %v8635_v32 = vld [vmem:[#allocation13_spill] sm:$0xff]  ;;  %v7158_v60 = vmax.f32 %v3081_v24, 0.0001  ;;  %v2484_v12 = vmul.f32 %v5300_v14, %v8636_v53  ;;  %v2810_v46 = vmul.f32 %v5501_v43, %v2554_v42  ;;  %v5502_v24 = vld [vmem:[%s5672_s11 + $0x1c0] sm:$0xff] }
 0x38c   : > { %2947 = vadd.xlane.f32.xlu1 %v7052_v47  ;;  %v2569_v0 = vpop.xlane.xlu0 %2568  ;;  %v2489_v54 = vmul.f32 %v5298_v20, %v8635_v32  ;;  %5315 = vrcp.f32 %v6936_v13  ;;  %v7166_v47 = vsel %vm1792_vm3, %v2799_v58, 0.0  ;;  %v3737_v13 = vrot.slane %v2572_v10, %v6958_v22 }
 0x38d   : > { %v3730_v55 = vrot.slane %v2569_v0, %v6967_v49  ;;  %v2596_v48 = vpop.xlane.xlu1 %2595  ;;  %5317 = vrcp.f32 %v6945_v34  ;;  %v3012_v6 = vmul.f32 %v2572_v10, %v2572_v10  ;;  %v7179_v58 = vsel %vm1792_vm3, %v2545_v30, 0.0 }
 0x38e   : > { %5319 = vrsqrt.f32 %v7158_v60  ;;  %v2553_v1 = vmul.f32 %v5502_v24, %v2489_v54  ;;  %v7193_v14 = vsel %vm1792_vm3, %v2801_v29, 0.0  ;;  %vm3210_vm8 = vcmp.eq.f32.partialorder %v7106_v36, inf }
 0x38f   : > { %2670 = vadd.xlane.f32.xlu0 %v7069_v11  ;;  %v3732_v34 = vsel %vm3731_vm5, %v3730_v55, %v7080_v8  ;;  %5321 = vrcp.f32 %v6969_v15  ;;  %v7188_v8 = vsel %vm1792_vm3, %v2554_v42, 0.0  ;;  %v3011_v15 = vmul.f32 %v2569_v0, %v2569_v0  ;;  %v5503_v55 = vld [vmem:[%s5672_s11 + $0x198] sm:$0xff] }
 0x390   : > { %2673 = vadd.xlane.f32.xlu1 %v7059_v51  ;;  %v2593_v20 = vpop.xlane.xlu0 %2592  ;;  %v7185_v10 = vsel %vm3738_vm6, %v3737_v13, %v3732_v34  ;;  %5323 = vrcp.f32 %v6986_v39  ;;  %v3785_v51 = vrot.slane %v2596_v48, %v6958_v22  ;;  %v2548_v13 = vmul.f32 %v5503_v55, %v2484_v12 }
 0x391   : > { %v3780_v11 = vrot.slane %v2593_v20, %v6967_v49  ;;  %v2828_v43 = vpop.xlane.xlu1 %2827  ;;  %v7200_v42 = vsel %vm1792_vm3, %v2810_v46, 0.0  ;;  %v7210_v0 = vsel %vm1792_vm3, %v2553_v1, 0.0  ;;  %v8637_v46 = vld [vmem:[#allocation17_spill] sm:$0xff]  ;;  %vm3212_vm10 = vcmp.eq.f32.partialorder %v7106_v36, 0.0 }
 0x392   : > { %v3076_v30 = vsub.f32 %v2828_v43, %v3012_v6  ;;  %v2483_v34 = vmul.f32 %v5302_v25, %v8637_v46  ;;  %v7227_v25 = vsel %vm1792_vm3, %v2548_v13, 0.0  ;;  %vm3203_vm12 = vcmp.eq.f32.partialorder %v7119_v62, inf }
 0x393   : > { %v5306_v32 = vpop.eup %5305  ;;  %v3781_v54 = vsel %vm3731_vm5, %v3780_v11, %v7102_v7  ;;  %2694 = vadd.xlane.f32.xlu0 %v7087_v44  ;;  %v7216_v11 = vmul.f32 %v5502_v24, %v2553_v1  ;;  %vm3205_vm13 = vcmp.eq.f32.partialorder %v7119_v62, 0.0  ;;  %vm3266_vm14 = vcmp.eq.f32.partialorder %v7136_v37, inf }
 0x394   : > { %v3209_v39 = vmul.f32 %v5306_v32, %v7106_v36  ;;  %v7203_v53 = vmax.f32 %v3076_v30, 0.0001  ;;  %2697 = vadd.xlane.f32.xlu1 %v7072_v23  ;;  %v2825_v29 = vpop.xlane.xlu0 %2824  ;;  %v7207_v6 = vsel %vm3738_vm6, %v3785_v51, %v3781_v54  ;;  %v7212_v7 = vpop.eup %5307  ;;  %v3213_v30 = vand.u32 2147483648, %v7106_v36 }
 0x395   : > { %v3075_v44 = vsub.f32 %v2825_v29, %v3011_v15  ;;  %v2852_v12 = vpop.xlane.xlu1 %2851  ;;  %v3020_v51 = vmul.f32 %v2596_v48, %v2596_v48  ;;  %v3206_v48 = vand.u32 2147483648, %v7119_v62  ;;  %vm3268_vm15 = vcmp.eq.f32.partialorder %v7136_v37, 0.0 }
 0x396   : > { %v5310_v43 = vpop.eup %5309  ;;  %v3211_v23 = vsel %vm3210_vm8, %v7106_v36, %v3209_v39  ;;  %5325 = vrsqrt.f32 %v7203_v53  ;;  %vm3259_vm0 = vcmp.eq.f32.partialorder %v7158_v60, inf  ;;  %vm3261_vm2 = vcmp.eq.f32.partialorder %v7158_v60, 0.0 }
 0x397   : > { %v3202_v32 = vmul.f32 %v5310_v43, %v7119_v62  ;;  %v7223_v54 = vmax.f32 %v3075_v44, 0.0001  ;;  %2926 = vadd.xlane.f32.xlu0 %v7083_v57  ;;  %v7229_v24 = vpop.eup %5311  ;;  %v3214_v1 = vsel %vm3212_vm10, %v3213_v30, %v3211_v23  ;;  %v3084_v15 = vsub.f32 %v2852_v12, %v3020_v51  ;;  %v8638_v12 = vld [vmem:[#allocation16_spill] sm:$0xff] }
 0x398   : > { %2920 = vadd.xlane.f32.xlu1 %v7046_v28  ;;  %v2849_v36 = vpop.xlane.xlu0 %2848  ;;  %v5314_v39 = vpop.eup %5313  ;;  %v3019_v57 = vmul.f32 %v2593_v20, %v2593_v20  ;;  %v2492_v51 = vmul.f32 %v5304_v5, %v8638_v12  ;;  %v4129_v2 = vrot.slane %v3214_v1, %v6952_v26  ;;  %vm8561_vm8 = vcmask 720512  }
 0x399   : > { %v3204_v29 = vsel %vm3203_vm12, %v7119_v62, %v3202_v32  ;;  %5327 = vrsqrt.f32 %v7223_v54  ;;  %v2578_v44 = vpop.xlane.xlu1 %2577  ;;  %v7237_v46 = vpop.eup %5315  ;;  %v3265_v23 = vmul.f32 %v5314_v39, %v7136_v37  ;;  %v7240_v30 = vmax.f32 %v3084_v15, 0.0001 }
 0x39a   : > { %v3207_v43 = vsel %vm3205_vm13, %v3206_v48, %v3204_v29  ;;  %v7243_v28 = vpop.eup %5317  ;;  %v3083_v62 = vsub.f32 %v2849_v36, %v3019_v57  ;;  %v3269_v39 = vand.u32 2147483648, %v7136_v37  ;;  %v2804_v15 = vmul.f32 %v5503_v55, %v2548_v13 }
 0x39b   : > { %v4124_v32 = vrot.slane %v3207_v43, %v6964_v41  ;;  %2950 = vadd.xlane.f32.xlu0 %v7109_v9  ;;  %v5320_v20 = vpop.eup %5319  ;;  %v3267_v48 = vsel %vm3266_vm14, %v7136_v37, %v3265_v23  ;;  %5329 = vrsqrt.f32 %v7240_v30  ;;  %v3262_v43 = vand.u32 2147483648, %v7158_v60  ;;  %v5504_v37 = vld [vmem:[%s5672_s11 + $0x190] sm:$0xff] }
 0x39c   : > { %2929 = vadd.xlane.f32.xlu1 %v7075_v52  ;;  %v7253_v5 = vpop.xlane.xlu0 %2574  ;;  %v3258_v9 = vmul.f32 %v5320_v20, %v7158_v60  ;;  %v7261_v29 = vpop.eup %5321  ;;  %v3270_v57 = vsel %vm3268_vm15, %v3269_v39, %v3267_v48  ;;  %v7264_v52 = vmax.f32 %v3083_v62, 0.0001  ;;  %5331 = vrcp.f32 %v7005_v59 }
 0x39d   : > { %v7256_v1 = vsel %vm8565_vm7, %v4129_v2, %v4124_v32  ;;  %v2602_v36 = vpop.xlane.xlu1 %2601  ;;  %v3744_v55 = vrot.slane %v7253_v5, %v6983_v38  ;;  %v7268_v13 = vpop.eup %5323  ;;  %v2547_v23 = vmul.f32 %v5504_v37, %v2483_v34  ;;  %v3014_v32 = vmul.f32 %v2578_v44, %v2578_v44 }
 0x39e   : > { %v3260_v2 = vsel %vm3259_vm0, %v7158_v60, %v3258_v9  ;;  %5333 = vrsqrt.f32 %v7264_v52  ;;  %v3751_v62 = vrot.slane %v2578_v44, %v6974_v4  ;;  %v4181_v59 = vrot.slane %v3270_v57, %v6952_v26 }
 0x39f   : > { %2676 = vadd.xlane.f32.xlu0 %v7126_v19  ;;  %v3263_v12 = vsel %vm3261_vm2, %v3262_v43, %v3260_v2  ;;  %v3746_v19 = vsel %vm3745_vm9, %v3744_v55, %v7185_v10  ;;  %v7286_v34 = vsel %vm1792_vm3, %v7216_v11, 0.0  ;;  %5335 = vrcp.f32 %v7016_v17  ;;  %v7300_v11 = vld [vmem:[%s5672_s11 + $0x1d8] sm:$0xff] }
 0x3a0   : > { %2953 = vadd.xlane.f32.xlu1 %v7090_v18  ;;  %v7278_v20 = vpop.xlane.xlu0 %2598  ;;  %v4177_v48 = vrot.slane %v3263_v12, %v6964_v41  ;;  %v7292_v39 = vsel %vm3752_vm11, %v3751_v62, %v3746_v19  ;;  %v3022_v10 = vmul.f32 %v2602_v36, %v2602_v36  ;;  %v3795_v43 = vrot.slane %v2602_v36, %v6974_v4 }
 0x3a1   : > { %v2834_v60 = vpop.xlane.xlu1 %2833  ;;  %v3790_v18 = vrot.slane %v7278_v20, %v6983_v38  ;;  %v7303_v17 = vmul.f32 %v7300_v11, %v2492_v51  ;;  %vm8559_vm10 = vcmask 786112   ;;  %vm3759_vm12 = vcmask 458112  }
 0x3a2   : > { %v3078_v44 = vsub.f32 %v2834_v60, %v3014_v32  ;;  %v7295_v57 = vsel %vm8565_vm7, %v4181_v59, %v4177_v48  ;;  %v7312_v36 = vsel %vm1792_vm3, %v2804_v15, 0.0  ;;  %vm3224_vm13 = vcmp.eq.f32.partialorder %v7203_v53, inf  ;;  %v8639_v48 = vld [vmem:[#allocation19_spill] sm:$0xff] }
 0x3a3   : > { %v5326_v9 = vpop.eup %5325  ;;  %2700 = vadd.xlane.f32.xlu0 %v7151_v40  ;;  %v3791_v2 = vsel %vm3745_vm9, %v3790_v18, %v7207_v6  ;;  %vm8563_vm14 = vcmask 523712   ;;  %v7321_v6 = vsel %vm1792_vm3, %v2547_v23, 0.0  ;;  %v2491_v15 = vmul.f32 %v7212_v7, %v8639_v48  ;;  %v5506_v48 = vld [vmem:[%s5672_s11 + $0x1d0] sm:$0xff] }
 0x3a4   : > { %v3223_v55 = vmul.f32 %v5326_v9, %v7203_v53  ;;  %v7308_v12 = vmax.f32 %v3078_v44, 0.0001  ;;  %2679 = vadd.xlane.f32.xlu1 %v7097_v21  ;;  %v2858_v32 = vpop.xlane.xlu0 %2857  ;;  %v7318_v62 = vsel %vm3752_vm11, %v3795_v43, %v3791_v2  ;;  %v7327_v19 = vmul.f32 %v5504_v37, %v2547_v23  ;;  %v8640_v9 = vld [vmem:[#allocation18_spill] sm:$0xff] }
 0x3a5   : > { %v3086_v40 = vsub.f32 %v2858_v32, %v3022_v10  ;;  %v7315_v51 = vpop.xlane.xlu1 %2583  ;;  %v3227_v60 = vand.u32 2147483648, %v7203_v53  ;;  %v7334_v44 = vsel %vm1792_vm3, %v7303_v17, 0.0  ;;  %v2486_v10 = vmul.f32 %v7229_v24, %v8640_v9 }
 0x3a6   : > { %v5328_v59 = vpop.eup %5327  ;;  %v3225_v21 = vsel %vm3224_vm13, %v7203_v53, %v3223_v55  ;;  %5337 = vrsqrt.f32 %v7308_v12  ;;  %vm3226_vm15 = vcmp.eq.f32.partialorder %v7203_v53, 0.0  ;;  %vm3217_vm0 = vcmp.eq.f32.partialorder %v7223_v54, inf }
 0x3a7   : > { %v3216_v18 = vmul.f32 %v5328_v59, %v7223_v54  ;;  %2935 = vadd.xlane.f32.xlu0 %v7114_v56  ;;  %v3220_v7 = vand.u32 2147483648, %v7223_v54  ;;  %v3013_v37 = vmul.f32 %v7253_v5, %v7253_v5  ;;  %v3228_v43 = vsel %vm3226_vm15, %v3227_v60, %v3225_v21 }
 0x3a8   : > { %2703 = vadd.xlane.f32.xlu1 %v7131_v27  ;;  %v2831_v56 = vpop.xlane.xlu0 %2830  ;;  %v5330_v23 = vpop.eup %5329  ;;  %vm3219_vm2 = vcmp.eq.f32.partialorder %v7223_v54, 0.0  ;;  %v7346_v24 = vmax.f32 %v3086_v40, 0.0001  ;;  %v7352_v9 = vmul.f32 %v5506_v48, %v2491_v15  ;;  %vm3280_vm13 = vcmp.eq.f32.partialorder %v7240_v30, inf }
 0x3a9   : > { %v3218_v55 = vsel %vm3217_vm0, %v7223_v54, %v3216_v18  ;;  %v7348_v2 = vpop.xlane.xlu1 %2607  ;;  %v3279_v32 = vmul.f32 %v5330_v23, %v7240_v30  ;;  %v3077_v59 = vsub.f32 %v2831_v56, %v3013_v37  ;;  %vm3282_vm15 = vcmp.eq.f32.partialorder %v7240_v30, 0.0  ;;  %v7359_v54 = vpop.eup %5331 }
 0x3aa   : > { %v3221_v53 = vsel %vm3219_vm2, %v3220_v7, %v3218_v55  ;;  %v3283_v5 = vand.u32 2147483648, %v7240_v30  ;;  %vm4041_vm0 = vcmask 1041409   ;;  %v4143_v40 = vrot.slane %v3228_v43, %v6980_v16 }
 0x3ab   : > { %v4136_v27 = vrot.slane %v3221_v53, %v6991_v31  ;;  %2959 = vadd.xlane.f32.xlu0 %v7142_v33  ;;  %vm3273_vm2 = vcmp.eq.f32.partialorder %v7264_v52, inf  ;;  %vm3275_vm1 = vcmp.eq.f32.partialorder %v7264_v52, 0.0  ;;  %v7364_v21 = vmax.f32 %v3077_v59, 0.0001  ;;  %v5334_v60 = vpop.eup %5333 }
 0x3ac   : > { %2709 = vadd.xlane.f32.xlu1 %v7162_v45  ;;  %v2581_v15 = vpop.xlane.xlu0 %2580  ;;  %v3281_v33 = vsel %vm3280_vm13, %v7240_v30, %v3279_v32  ;;  %5339 = vrsqrt.f32 %v7346_v24  ;;  %v3272_v56 = vmul.f32 %v5334_v60, %v7264_v52  ;;  %v3021_v23 = vmul.f32 %v7278_v20, %v7278_v20  ;;  %v7378_v43 = vpop.eup %5335 }
 0x3ad   : > { %v4138_v18 = vsel %vm8561_vm8, %v4136_v27, %v7256_v1  ;;  %v3758_v7 = vrot.slane %v2581_v15, %v7014_v3  ;;  %v2855_v37 = vpop.xlane.xlu1 %2854  ;;  %v3765_v45 = vrot.slane %v7315_v51, %v6998_v50  ;;  %5341 = vrsqrt.f32 %v7364_v21 }
 0x3ae   : > { %v3276_v1 = vand.u32 2147483648, %v7264_v52  ;;  %v3016_v55 = vmul.f32 %v7315_v51, %v7315_v51  ;;  %v7384_v53 = vsel %vm8559_vm10, %v4143_v40, %v4138_v18  ;;  %v3284_v20 = vsel %vm3282_vm15, %v3283_v5, %v3281_v33  ;;  %v8641_v40 = vld [vmem:[#allocation6_spill] sm:$0xff] }
 0x3af   : > { %v3760_v32 = vsel %vm3759_vm12, %v3758_v7, %v7292_v39  ;;  %2932 = vadd.xlane.f32.xlu0 %v7145_v35  ;;  %v3274_v59 = vsel %vm3273_vm2, %v7264_v52, %v3272_v56  ;;  %v3085_v60 = vsub.f32 %v2855_v37, %v3021_v23  ;;  %5343 = vrcp.f32 %v8641_v40  ;;  %v5507_v37 = vld [vmem:[%s5672_s11 + $0x1a8] sm:$0xff] }
 0x3b0   : > { %v3767_v27 = vsel %vm8563_vm14, %v3765_v45, %v3760_v32  ;;  %2733 = vadd.xlane.f32.xlu1 %v7188_v8  ;;  %v2605_v51 = vpop.xlane.xlu0 %2604  ;;  %v3277_v39 = vsel %vm3275_vm1, %v3276_v1, %v3274_v59  ;;  %v2812_v30 = vmul.f32 %v7300_v11, %v7303_v17  ;;  %v2550_v56 = vmul.f32 %v5507_v37, %v2486_v10  ;;  %v8642_v1 = vld [vmem:[#allocation20_spill] sm:$0xff]  ;;  %v8643_v59 = vld [vmem:[#allocation21_spill] sm:$0xff] }
 0x3b1   : > { %v3800_v35 = vrot.slane %v2605_v51, %v7014_v3  ;;  %v2840_v18 = vpop.xlane.xlu1 %2839  ;;  %v4186_v5 = vrot.slane %v3277_v39, %v6991_v31  ;;  %v7403_v33 = vmax.f32 %v3085_v60, 0.0001  ;;  %v4191_v23 = vrot.slane %v3284_v20, %v6980_v16 }
 0x3b2   : > { %v3080_v7 = vsub.f32 %v2840_v18, %v3016_v55  ;;  %v3805_v52 = vrot.slane %v7348_v2, %v6998_v50  ;;  %v2485_v11 = vmul.f32 %v7237_v46, %v8642_v1  ;;  %v3015_v55 = vmul.f32 %v2581_v15, %v2581_v15 }
 0x3b3   : > { %v5338_v8 = vpop.eup %5337  ;;  %v3801_v45 = vsel %vm3759_vm12, %v3800_v35, %v7318_v62  ;;  %2706 = vadd.xlane.f32.xlu0 %v7179_v58  ;;  %v4187_v17 = vsel %vm8561_vm8, %v4186_v5, %v7295_v57  ;;  %5345 = vrsqrt.f32 %v7403_v33  ;;  %v2811_v32 = vmul.f32 %v5506_v48, %v7352_v9 }
 0x3b4   : > { %2956 = vadd.xlane.f32.xlu1 %v7166_v47  ;;  %v2837_v10 = vpop.xlane.xlu0 %2836  ;;  %v7420_v20 = vsel %vm8559_vm10, %v4191_v23, %v4187_v17  ;;  %v3806_v58 = vsel %vm8563_vm14, %v3805_v52, %v3801_v45  ;;  %v3024_v46 = vmul.f32 %v7348_v2, %v7348_v2  ;;  %v2494_v57 = vmul.f32 %v7243_v28, %v8643_v59  ;;  %v5508_v28 = vld [vmem:[%s5672_s11 + $0x1a0] sm:$0xff]  ;;  %v5509_v52 = vld [vmem:[%s5672_s11 + $0x1e8] sm:$0xff] }
 0x3b5   : > { %v2864_v62 = vpop.xlane.xlu1 %2863  ;;  %v3237_v15 = vmul.f32 %v5338_v8, %v7308_v12  ;;  %v7429_v47 = vsel %vm4041_vm0, %v3806_v58, %v3767_v27  ;;  %v7431_v60 = vmax.f32 %v3080_v7, 0.0001  ;;  %v3079_v48 = vsub.f32 %v2837_v10, %v3015_v55  ;;  %v8645_v59 = vld [vmem:[#allocation27_spill] sm:$0xff] }
 0x3b6   : > { %vm8562_vm1 = vcmask 851712   ;;  %v3088_v40 = vsub.f32 %v2864_v62, %v3024_v46  ;;  %v7436_v39 = vsel %vm1792_vm3, %v7327_v19, 0.0  ;;  %v7439_v2 = vsel %vm1792_vm3, %v2812_v30, 0.0 }
 0x3b7   : > { %2730 = vadd.xlane.f32.xlu0 %v7210_v0  ;;  %v2549_v35 = vmul.f32 %v5508_v28, %v2485_v11  ;;  %5347 = vrsqrt.f32 %v7431_v60  ;;  %v3023_v27 = vmul.f32 %v2605_v51, %v2605_v51  ;;  %v7446_v5 = vsel %vm1792_vm3, %v7352_v9, 0.0 }
 0x3b8   : > { %2715 = vadd.xlane.f32.xlu1 %v7227_v25  ;;  %v2861_v18 = vpop.xlane.xlu0 %2860  ;;  %v7449_v0 = vsel %vm1792_vm3, %v2550_v56, 0.0  ;;  %vm8564_vm13 = vcmask 917312   ;;  %vm3238_vm15 = vcmp.eq.f32.partialorder %v7308_v12, inf  ;;  %v7452_v19 = vmax.f32 %v3079_v48, 0.0001 }
 0x3b9   : > { %v7454_v30 = vmax.f32 %v3088_v40, 0.0001  ;;  %v2614_v7 = vpop.xlane.xlu1 %2613  ;;  %v7456_v8 = vmul.f32 %v5507_v37, %v2550_v56  ;;  %v5340_v25 = vpop.eup %5339  ;;  %v3239_v51 = vsel %vm3238_vm15, %v7308_v12, %v3237_v15  ;;  %v3087_v23 = vsub.f32 %v2861_v18, %v3023_v27  ;;  %v8644_v37 = vld [vmem:[#allocation22_spill] sm:$0xff]  ;;  %v8647_v18 = vld [vmem:[#allocation8_spill] sm:$0xff] }
 0x3ba   : > { %v7460_v9 = vsel %vm1792_vm3, %v2811_v32, 0.0  ;;  %v2558_v45 = vmul.f32 %v5509_v52, %v2494_v57  ;;  %v5342_v1 = vpop.eup %5341  ;;  %v3241_v11 = vand.u32 2147483648, %v7308_v12  ;;  %5349 = vrsqrt.f32 %v7452_v19 }
 0x3bb   : > { %2965 = vadd.xlane.f32.xlu0 %v7169_v63  ;;  %v7467_v17 = vsel %vm1792_vm3, %v2549_v35, 0.0  ;;  %v2493_v56 = vmul.f32 %v7261_v29, %v8644_v37  ;;  %vm3240_vm2 = vcmp.eq.f32.partialorder %v7308_v12, 0.0  ;;  %v3230_v55 = vmul.f32 %v5342_v1, %v7364_v21 }
 0x3bc   : > { %vm3231_vm15 = vcmp.eq.f32.partialorder %v7364_v21, inf  ;;  %5351 = vrsqrt.f32 %v7454_v30  ;;  %2739 = vadd.xlane.f32.xlu1 %v7334_v44  ;;  %v7476_v10 = vpop.xlane.xlu0 %2610  ;;  %v3242_v32 = vsel %vm3240_vm2, %v3241_v11, %v3239_v51  ;;  %vm3233_vm10 = vcmp.eq.f32.partialorder %v7364_v21, 0.0  ;;  %v7484_v12 = vpop.eup %5343  ;;  %v8646_v44 = vld [vmem:[#allocation28_spill] sm:$0xff]  ;;  %v8649_v11 = vld [vmem:[#allocation5_spill] sm:$0xff] }
 0x3bd   : > { %v3234_v63 = vand.u32 2147483648, %v7364_v21  ;;  %v7480_v58 = vmax.f32 %v3087_v23, 0.0001  ;;  %v7482_v29 = vpop.xlane.xlu1 %2637  ;;  %v3293_v46 = vmul.f32 %v5340_v25, %v7346_v24  ;;  %v3232_v62 = vsel %vm3231_vm15, %v7364_v21, %v3230_v55  ;;  %v8648_v23 = vld [vmem:[#allocation23_spill] sm:$0xff] }
 0x3be   : > { %v3814_v57 = vrot.slane %v2614_v7, %v8645_v59  ;;  %v3810_v15 = vrot.slane %v7476_v10, %v8646_v44  ;;  %v7494_v40 = vsel %vm1792_vm3, %v2558_v45, 0.0  ;;  %v7496_v27 = vmul.f32 %v5508_v28, %v2549_v35 }
 0x3bf   : > { %v3235_v48 = vsel %vm3233_vm10, %v3234_v63, %v3232_v62  ;;  %5353 = vrsqrt.f32 %v7480_v58  ;;  %2989 = vadd.xlane.f32.xlu0 %v7200_v42  ;;  %vm3294_vm2 = vcmp.eq.f32.partialorder %v7346_v24, inf  ;;  %v2488_v1 = vmul.f32 %v7268_v13, %v8648_v23 }
 0x3c0   : > { %v4150_v25 = vrot.slane %v3235_v48, %v8647_v18  ;;  %v7501_v21 = vsel %vm8560_vm4, %v3814_v57, %v3810_v15  ;;  %2962 = vadd.xlane.f32.xlu1 %v7193_v14  ;;  %v7504_v51 = vpop.xlane.xlu0 %2634  ;;  %v5346_v42 = vpop.eup %5345  ;;  %v4157_v37 = vrot.slane %v3242_v32, %v8649_v11  ;;  %v3297_v28 = vand.u32 2147483648, %v7346_v24 }
 0x3c1   : > { %v3853_v35 = vrot.slane %v7482_v29, %v8645_v59  ;;  %v3849_v55 = vrot.slane %v7504_v51, %v8646_v44  ;;  %v7514_v63 = vpop.xlane.xlu1 %2619  ;;  %v3295_v14 = vsel %vm3294_vm2, %v7346_v24, %v3293_v46  ;;  %v3286_v13 = vmul.f32 %v5346_v42, %v7403_v33 }
 0x3c2   : > { %v4152_v62 = vsel %vm8562_vm1, %v4150_v25, %v7384_v53  ;;  %vm3287_vm10 = vcmp.eq.f32.partialorder %v7403_v33, inf  ;;  %v3290_v32 = vand.u32 2147483648, %v7403_v33  ;;  %v3026_v57 = vmul.f32 %v2614_v7, %v2614_v7 }
 0x3c3   : > { %v7523_v15 = vsel %vm8560_vm4, %v3853_v35, %v3849_v55  ;;  %2712 = vadd.xlane.f32.xlu0 %v7321_v6  ;;  %v7527_v48 = vsel %vm8564_vm13, %v4157_v37, %v4152_v62  ;;  %vm3296_vm15 = vcmp.eq.f32.partialorder %v7346_v24, 0.0  ;;  %v3288_v53 = vsel %vm3287_vm10, %v7403_v33, %v3286_v13  ;;  %v7538_v37 = vld [vmem:[%s5672_s11 + $0x1e0] sm:$0xff]  ;;  %v7546_v62 = vld [vmem:[%s5672_s11 + $0x1b8] sm:$0xff] }
 0x3c4   : > { %vm3289_vm2 = vcmp.eq.f32.partialorder %v7403_v33, 0.0  ;;  %2986 = vadd.xlane.f32.xlu1 %v7286_v34  ;;  %v2870_v46 = vpop.xlane.xlu0 %2869  ;;  %v7533_v25 = vmul.f32 %v5509_v52, %v2558_v45  ;;  %v5348_v7 = vpop.eup %5347  ;;  %v3298_v23 = vsel %vm3296_vm15, %v3297_v28, %v3295_v14  ;;  %v7541_v55 = vmul.f32 %v7538_v37, %v2493_v56  ;;  %v8650_v52 = vld [vmem:[#allocation24_spill] sm:$0xff] }
 0x3c5   : > { %v3291_v42 = vsel %vm3289_vm2, %v3290_v32, %v3288_v53  ;;  %v3090_v35 = vsub.f32 %v2870_v46, %v3026_v57  ;;  %v7535_v6 = vpop.xlane.xlu1 %2643  ;;  %v3251_v33 = vmul.f32 %v5348_v7, %v7431_v60  ;;  %v7549_v34 = vmul.f32 %v7546_v62, %v2488_v1 }
 0x3c6   : > { %v4196_v24 = vrot.slane %v3291_v42, %v8647_v18  ;;  %v7553_v45 = vmul.f32 %v7359_v54, %v8650_v52  ;;  %vm3252_vm10 = vcmp.eq.f32.partialorder %v7431_v60, inf  ;;  %vm3254_vm15 = vcmp.eq.f32.partialorder %v7431_v60, 0.0 }
 0x3c7   : > { %v3255_v56 = vand.u32 2147483648, %v7431_v60  ;;  %v7558_v28 = vmax.f32 %v3090_v35, 0.0001  ;;  %2736 = vadd.xlane.f32.xlu0 %v7446_v5  ;;  %v5350_v14 = vpop.eup %5349  ;;  %v4201_v13 = vrot.slane %v3298_v23, %v8649_v11  ;;  %vm3245_vm2 = vcmp.eq.f32.partialorder %v7452_v19, inf }
 0x3c8   : > { %v4197_v1 = vsel %vm8562_vm1, %v4196_v24, %v7420_v20  ;;  %vm3247_vm4 = vcmp.eq.f32.partialorder %v7452_v19, 0.0  ;;  %2971 = vadd.xlane.f32.xlu1 %v7312_v36  ;;  %v2894_v54 = vpop.xlane.xlu0 %2893  ;;  %vm4165_vm8 = vcmask 982912   ;;  %v3244_v57 = vmul.f32 %v5350_v14, %v7452_v19 }
 0x3c9   : > { %v5352_v32 = vpop.eup %5351  ;;  %v3025_v5 = vmul.f32 %v7476_v10, %v7476_v10  ;;  %v3034_v53 = vmul.f32 %v7482_v29, %v7482_v29  ;;  %5355 = vrsqrt.f32 %v7558_v28  ;;  %v2867_v20 = vpop.xlane.xlu1 %2866  ;;  %vm4172_vm1 = vcmask 1048512  }
 0x3ca   : > { %v3253_v46 = vsel %vm3252_vm10, %v7431_v60, %v3251_v33  ;;  %v3248_v36 = vand.u32 2147483648, %v7452_v19  ;;  %v3307_v7 = vmul.f32 %v5352_v32, %v7454_v30  ;;  %vm3308_vm14 = vcmp.eq.f32.partialorder %v7454_v30, inf }
 0x3cb   : > { %v3246_v10 = vsel %vm3245_vm2, %v7452_v19, %v3244_v57  ;;  %v3098_v23 = vsub.f32 %v2894_v54, %v3034_v53  ;;  %v3089_v29 = vsub.f32 %v2867_v20, %v3025_v5  ;;  %2968 = vadd.xlane.f32.xlu0 %v7436_v39  ;;  %v4202_v42 = vsel %vm8564_vm13, %v4201_v13, %v4197_v1  ;;  %v8651_v20 = vld [vmem:[#allocation25_spill] sm:$0xff] }
 0x3cc   : > { %v5354_v35 = vpop.eup %5353  ;;  %v3249_v24 = vsel %vm3247_vm4, %v3248_v36, %v3246_v10  ;;  %v3309_v33 = vsel %vm3308_vm14, %v7454_v30, %v3307_v7  ;;  %vm3310_vm10 = vcmp.eq.f32.partialorder %v7454_v30, 0.0  ;;  %v3311_v52 = vand.u32 2147483648, %v7454_v30  ;;  %2995 = vadd.xlane.f32.xlu1 %v7439_v2  ;;  %v7590_v14 = vpop.xlane.xlu0 %2616  ;;  %v8652_v10 = vld [vmem:[#allocation7_spill] sm:$0xff] }
 0x3cd   : > { %v3300_v54 = vmul.f32 %v5354_v35, %v7480_v58  ;;  %vm3301_vm2 = vcmp.eq.f32.partialorder %v7480_v58, inf  ;;  %vm3303_vm13 = vcmp.eq.f32.partialorder %v7480_v58, 0.0  ;;  %v7595_v39 = vmax.f32 %v3098_v23, 0.0001  ;;  %v2891_v19 = vpop.xlane.xlu1 %2890 }
 0x3ce   : > { %v3256_v13 = vsel %vm3254_vm15, %v3255_v56, %v3253_v46  ;;  %v3304_v1 = vand.u32 2147483648, %v7480_v58  ;;  %v7600_v32 = vmax.f32 %v3089_v29, 0.0001  ;;  %v3819_v2 = vrot.slane %v7590_v14, %v6967_v49 }
 0x3cf   : > { %v4164_v30 = vrot.slane %v3249_v24, %v7154_v61  ;;  %v3312_v57 = vsel %vm3310_vm10, %v3311_v52, %v3309_v33  ;;  %v3302_v5 = vsel %vm3301_vm2, %v7480_v58, %v3300_v54  ;;  %5357 = vrsqrt.f32 %v7595_v39  ;;  %2992 = vadd.xlane.f32.xlu0 %v7460_v9 }
 0x3d0   : > { %v3305_v53 = vsel %vm3303_vm13, %v3304_v1, %v3302_v5  ;;  %v3033_v60 = vmul.f32 %v7504_v51, %v7504_v51  ;;  %5359 = vrsqrt.f32 %v7600_v32  ;;  %2721 = vadd.xlane.f32.xlu1 %v7449_v0  ;;  %v2641_v56 = vpop.xlane.xlu0 %2640  ;;  %v2496_v46 = vmul.f32 %v7378_v43, %v8651_v20  ;;  %v7661_v5 = vld [vmem:[%s5672_s11 + $0x1f8] sm:$0xff] }
 0x3d1   : > { %v4206_v36 = vrot.slane %v3305_v53, %v7154_v61  ;;  %v3028_v58 = vmul.f32 %v7514_v63, %v7514_v63  ;;  %v3824_v9 = vrot.slane %v7514_v63, %v6958_v22  ;;  %v3820_v7 = vsel %vm3731_vm5, %v3819_v2, %v7501_v21  ;;  %v7621_v51 = vpop.xlane.xlu1 %2625 }
 0x3d2   : > { %v4171_v23 = vrot.slane %v3256_v13, %v8652_v10  ;;  %v4211_v0 = vrot.slane %v3312_v57, %v8652_v10  ;;  %v3097_v29 = vsub.f32 %v2891_v19, %v3033_v60  ;;  %v3858_v43 = vrot.slane %v2641_v56, %v6967_v49  ;;  %v5513_v60 = vld [vmem:[%s5672_s11 + $0x1b0] sm:$0xff] }
 0x3d3   : > { %v3863_v35 = vrot.slane %v7535_v6, %v6958_v22  ;;  %2718 = vadd.xlane.f32.xlu0 %v7467_v17  ;;  %v7630_v24 = vsel %vm3738_vm6, %v3824_v9, %v3820_v7  ;;  %v4166_v21 = vsel %vm4165_vm8, %v4164_v30, %v7527_v48  ;;  %v4207_v63 = vsel %vm4165_vm8, %v4206_v36, %v4202_v42  ;;  %v8653_v9 = vld [vmem:[#allocation26_spill] sm:$0xff] }
 0x3d4   : > { %v7635_v33 = vmax.f32 %v3097_v29, 0.0001  ;;  %v3859_v52 = vsel %vm3731_vm5, %v3858_v43, %v7523_v15  ;;  %2745 = vadd.xlane.f32.xlu1 %v7494_v40  ;;  %v2876_v54 = vpop.xlane.xlu0 %2875  ;;  %v4173_v19 = vsel %vm4172_vm1, %v4171_v23, %v4166_v21  ;;  %v4212_v17 = vsel %vm4172_vm1, %v4211_v0, %v4207_v63 }
 0x3d5   : > { %v3092_v13 = vsub.f32 %v2876_v54, %v3028_v58  ;;  %v7642_v1 = vpop.xlane.xlu1 %2649  ;;  %v2813_v48 = vmul.f32 %v7538_v37, %v7541_v55  ;;  %v7647_v42 = vsel %vm3738_vm6, %v3863_v35, %v3859_v52  ;;  %v7650_v15 = vsel %vm4041_vm0, %v4212_v17, %v4173_v19  ;;  %v5514_v54 = vld [vmem:[%s5672_s11 + $0x1f0] sm:$0xff]  ;;  %s218_s11 = sand.u32 1, %s5567_s19  }
 0x3d6   : > { %v5356_v40 = vpop.eup %5355  ;;  %5361 = vrsqrt.f32 %v7635_v33  ;;  %v2741_v2 = vsel %vm1792_vm3, %v7541_v55, 0.0  ;;  %v2808_v30 = vmul.f32 %v7546_v62, %v7549_v34  ;;  %v2726_v37 = vsel %vm1792_vm3, %v7549_v34, 0.0  ;;  %s8439_s16 = sshll.u32 %s218_s11, 3  ;;  %s4458_s22 = scalar_lea.sflag [#allocation3], %s218_s11 }
 0x3d7   : > { %v3321_v57 = vmul.f32 %v5356_v40, %v7558_v28  ;;  %2742 = vadd.xlane.f32.xlu0 %v2741_v2  ;;  %v7664_v53 = vmul.f32 %v7661_v5, %v2496_v46  ;;  %v7668_v20 = vmul.f32 %v5513_v60, %v7553_v45  ;;  %v3036_v55 = vmul.f32 %v7535_v6, %v7535_v6  ;;  %s220_s23 = scalar_lea.vmem [#allocation2], %s8439_s16 }
 0x3d8   : > { %v3035_v36 = vmul.f32 %v2641_v56, %v2641_v56  ;;  %2727 = vadd.xlane.f32.xlu1 %v2726_v37  ;;  %v2900_v62 = vpop.xlane.xlu0 %2899  ;;  %v2976_v58 = vsel %vm1792_vm3, %v7456_v8, 0.0  ;;  %v2495_v34 = vmul.f32 %v7484_v12, %v8653_v9  ;;  %v7676_v7 = vmax.f32 %v3092_v13, 0.0001  ;;  %s4471_s25 = sshll.u32 %s220_s23, 4  ;;  %s4472_s25 = int_to_ptr.vmem [resolvable:$true] %s4471_s25 }
 0x3d9   : > { %v2897_v46 = vpop.xlane.xlu1 %2896  ;;  %v3000_v23 = vsel %vm1792_vm3, %v7533_v25, 0.0  ;;  %v2997_v45 = vsel %vm1792_vm3, %v2813_v48, 0.0  ;;  %v2973_v6 = vsel %vm1792_vm3, %v7496_v27, 0.0  ;;  %vm3322_vm4 = vcmp.eq.f32.partialorder %v7558_v28, inf  ;;  %s5515_s7 = scalar_lea.vmem %s4472_s25, 128  ;;  %p5522_p0 = scmp.lt.s32.totalorder %s4472_s25, %s5520_s9 }
 0x3da   : > { %v3100_v56 = vsub.f32 %v2900_v62, %v3036_v55  ;;  %v3099_v0 = vsub.f32 %v2897_v46, %v3035_v36  ;;  %v2982_v8 = vsel %vm1792_vm3, %v2808_v30, 0.0  ;;  %v3323_v12 = vsel %vm3322_vm4, %v7558_v28, %v3321_v57  ;;  %p5516_p11 = scmp.ne.s32.totalorder %s4472_s25, %s5515_s7  ;;  %p5523_p1 = scmp.lt.s32.totalorder %s5521_s10, %s5515_s7 }
 0x3db   : > { %v3027_v29 = vmul.f32 %v7590_v14, %v7590_v14  ;;  %2977 = vadd.xlane.f32.xlu0 %v2976_v58  ;;  %v2750_v25 = vsel %vm1792_vm3, %v7664_v53, 0.0  ;;  %v7691_v43 = vmul.f32 %v5513_v60, %v7668_v20  ;;  %v3325_v35 = vand.u32 2147483648, %v7558_v28 }
 0x3dc   : > { %v5358_v27 = vpop.eup %5357  ;;  %v7694_v21 = vmax.f32 %v3100_v56, 0.0001  ;;  %v7696_v63 = vmax.f32 %v3099_v0, 0.0001  ;;  %2751 = vadd.xlane.f32.xlu1 %v2750_v25  ;;  %v2873_v52 = vpop.xlane.xlu0 %2872  ;;  %v7699_v19 = vmul.f32 %v5514_v54, %v2495_v34  ;;  %vm3324_vm14 = vcmp.eq.f32.partialorder %v7558_v28, 0.0  ;;  %p5517_p12 = pnand %p5516_p11, %p5649_p5  ;;  %p5524_p2 = por %p5523_p1, %p5522_p0 }
 0x3dd   : > { %v5360_v14 = vpop.eup %5359  ;;  %vm3378_vm0 = vcmp.eq.f32.partialorder %v7595_v39, inf  ;;  %5363 = vrsqrt.f32 %v7676_v7  ;;  %v3091_v17 = vsub.f32 %v2873_v52, %v3027_v29  ;;  %v2882_v13 = vpop.xlane.xlu1 %2881  ;;  %v3326_v48 = vsel %vm3324_vm14, %v3325_v35, %v3323_v12 }
 0x3de   : > { %v3377_v40 = vmul.f32 %v5358_v27, %v7595_v39  ;;  %v3314_v2 = vmul.f32 %v5360_v14, %v7600_v32  ;;  %5365 = vrsqrt.f32 %v7694_v21  ;;  %vm3315_vm13 = vcmp.eq.f32.partialorder %v7600_v32, inf  ;;  %p5518_p13 = pneg %p5517_p12 }
 0x3df   : > { %v3318_v30 = vand.u32 2147483648, %v7600_v32  ;;  %v3030_v28 = vmul.f32 %v7621_v51, %v7621_v51  ;;  %5367 = vrsqrt.f32 %v7696_v63  ;;  %3001 = vadd.xlane.f32.xlu0 %v3000_v23  ;;  %vm3380_vm15 = vcmp.eq.f32.partialorder %v7595_v39, 0.0 }
 0x3e0   : > { %v3316_v57 = vsel %vm3315_vm13, %v7600_v32, %v3314_v2  ;;  %vm3317_vm10 = vcmp.eq.f32.partialorder %v7600_v32, 0.0  ;;  %v3038_v37 = vmul.f32 %v7642_v1, %v7642_v1  ;;  %2998 = vadd.xlane.f32.xlu1 %v2997_v45  ;;  %v7717_v60 = vpop.xlane.xlu0 %2622  ;;  %v4220_v55 = vrot.slane %v3326_v48, %v6952_v26  ;;  %p5525_p3 = pnand %p5524_p2, %p5518_p13 }
 0x3e1   : > { %v3319_v36 = vsel %vm3317_vm10, %v3318_v30, %v3316_v57  ;;  %v7720_v62 = vmax.f32 %v3091_v17, 0.0001  ;;  %v3094_v58 = vsub.f32 %v2882_v13, %v3030_v28  ;;  %v2906_v9 = vpop.xlane.xlu1 %2905  ;;  %v3379_v34 = vsel %vm3378_vm0, %v7595_v39, %v3377_v40 }
 0x3e2   : > { %v4216_v46 = vrot.slane %v3319_v36, %v6964_v41  ;;  %v3829_v32 = vrot.slane %v7717_v60, %v6983_v38  ;;  %v3102_v23 = vsub.f32 %v2906_v9, %v3038_v37  ;;  %v3381_v56 = vand.u32 2147483648, %v7595_v39 }
 0x3e3   : > { %v5362_v45 = vpop.eup %5361  ;;  %vm3371_vm2 = vcmp.eq.f32.partialorder %v7635_v33, inf  ;;  %v3834_v0 = vrot.slane %v7621_v51, %v6974_v4  ;;  %5369 = vrsqrt.f32 %v7720_v62  ;;  %2974 = vadd.xlane.f32.xlu0 %v2973_v6  ;;  %v3374_v25 = vand.u32 2147483648, %v7635_v33 }
 0x3e4   : > { %v7734_v12 = vsel %vm8565_vm7, %v4220_v55, %v4216_v46  ;;  %v3370_v29 = vmul.f32 %v5362_v45, %v7635_v33  ;;  %v3830_v27 = vsel %vm3745_vm9, %v3829_v32, %v7630_v24  ;;  %2983 = vadd.xlane.f32.xlu1 %v2982_v8  ;;  %v2647_v35 = vpop.xlane.xlu0 %2646  ;;  %v3382_v52 = vsel %vm3380_vm15, %v3381_v56, %v3379_v34 }
 0x3e5   : > { %v7742_v14 = vmax.f32 %v3102_v23, 0.0001  ;;  %v3868_v51 = vrot.slane %v2647_v35, %v6983_v38  ;;  %v2632_v6 = vpop.xlane.xlu1 %2631  ;;  %v3835_v17 = vsel %vm3752_vm11, %v3834_v0, %v3830_v27  ;;  %vm3373_vm4 = vcmp.eq.f32.partialorder %v7635_v33, 0.0 }
 0x3e6   : > { %v3372_v13 = vsel %vm3371_vm2, %v7635_v33, %v3370_v29  ;;  %v2723_v48 = vsel %vm1792_vm3, %v7668_v20, 0.0  ;;  %v2816_v24 = vmul.f32 %v7661_v5, %v7664_v53  ;;  %v2979_v39 = vsel %vm1792_vm3, %v7691_v43, 0.0 }
 0x3e7   : > { %v3375_v8 = vsel %vm3373_vm4, %v3374_v25, %v3372_v13  ;;  %5371 = vrsqrt.f32 %v7742_v14  ;;  %2724 = vadd.xlane.f32.xlu0 %v2723_v48  ;;  %v2815_v40 = vmul.f32 %v5514_v54, %v7699_v19  ;;  %v4259_v2 = vrot.slane %v3382_v52, %v6952_v26 }
 0x3e8   : > { %v4255_v30 = vrot.slane %v3375_v8, %v6964_v41  ;;  %v3037_v33 = vmul.f32 %v2647_v35, %v2647_v35  ;;  %2980 = vadd.xlane.f32.xlu1 %v2979_v39  ;;  %v2903_v28 = vpop.xlane.xlu0 %2902  ;;  %v3873_v20 = vrot.slane %v7642_v1, %v6974_v4  ;;  %v7760_v5 = vmax.f32 %v3094_v58, 0.0001 }
 0x3e9   : > { %v3869_v53 = vsel %vm3745_vm9, %v3868_v51, %v7647_v42  ;;  %v7764_v57 = vpop.xlane.xlu1 %2655  ;;  %v2747_v55 = vsel %vm1792_vm3, %v7699_v19, 0.0  ;;  %v3006_v36 = vsel %vm1792_vm3, %v2816_v24, 0.0  ;;  %vm3336_vm14 = vcmp.eq.f32.partialorder %v7676_v7, inf }
 0x3ea   : > { %v5364_v43 = vpop.eup %5363  ;;  %v4260_v54 = vsel %vm8565_vm7, %v4259_v2, %v4255_v30  ;;  %v3101_v37 = vsub.f32 %v2903_v28, %v3037_v33  ;;  %vm4043_vm0 = vcmask 1042434   ;;  %v3003_v1 = vsel %vm1792_vm3, %v2815_v40, 0.0 }
 0x3eb   : > { %v5366_v9 = vpop.eup %5365  ;;  %2748 = vadd.xlane.f32.xlu0 %v2747_v55  ;;  %v3874_v42 = vsel %vm3752_vm11, %v3873_v20, %v3869_v53  ;;  %vm3392_vm13 = vcmp.eq.f32.partialorder %v7694_v21, inf  ;;  %v3395_v34 = vand.u32 2147483648, %v7694_v21  ;;  %vm3385_vm15 = vcmp.eq.f32.partialorder %v7696_v63, inf }
 0x3ec   : > { %v5368_v58 = vpop.eup %5367  ;;  %v7776_v46 = vmax.f32 %v3101_v37, 0.0001  ;;  %3007 = vadd.xlane.f32.xlu1 %v3006_v36  ;;  %v2629_v19 = vpop.xlane.xlu0 %2628  ;;  %vm3387_vm10 = vcmp.eq.f32.partialorder %v7696_v63, 0.0  ;;  %5373 = vrsqrt.f32 %v7760_v5  ;;  %vm3338_vm3 = vcmp.eq.f32.partialorder %v7676_v7, 0.0 }
 0x3ed   : > { %v3384_v32 = vmul.f32 %v5368_v58, %v7696_v63  ;;  %v3839_v23 = vrot.slane %v2629_v19, %v7014_v3  ;;  %v2879_v45 = vpop.xlane.xlu1 %2878  ;;  %v3388_v56 = vand.u32 2147483648, %v7696_v63  ;;  %v3029_v0 = vmul.f32 %v7717_v60, %v7717_v60 }
 0x3ee   : > { %v3844_v29 = vrot.slane %v2632_v6, %v6998_v50  ;;  %5375 = vrsqrt.f32 %v7776_v46  ;;  %v3335_v25 = vmul.f32 %v5364_v43, %v7676_v7  ;;  %v3391_v27 = vmul.f32 %v5366_v9, %v7694_v21 }
 0x3ef   : > { %v3386_v35 = vsel %vm3385_vm15, %v7696_v63, %v3384_v32  ;;  %v3840_v52 = vsel %vm3759_vm12, %v3839_v23, %v3835_v17  ;;  %3004 = vadd.xlane.f32.xlu0 %v3003_v1  ;;  %v3032_v48 = vmul.f32 %v2632_v6, %v2632_v6  ;;  %vm8654_vm2 = vcmask 523712  }
 0x3f0   : > { %v5370_v51 = vpop.eup %5369  ;;  %v3389_v13 = vsel %vm3387_vm10, %v3388_v56, %v3386_v35  ;;  %v3845_v60 = vsel %vm8654_vm2, %v3844_v29, %v3840_v52  ;;  %v3093_v24 = vsub.f32 %v2879_v45, %v3029_v0  ;;  %v2653_v8 = vpop.xlane.xlu0 %2652  ;;  %vm3329_vm4 = vcmp.eq.f32.partialorder %v7720_v62, inf }
 0x3f1   : > { %v4264_v39 = vrot.slane %v3389_v13, %v6991_v31  ;;  %v3328_v40 = vmul.f32 %v5370_v51, %v7720_v62  ;;  %v4044_v2 = vsel %vm4043_vm0, %v3845_v60, %v7429_v47  ;;  %v2888_v63 = vpop.xlane.xlu1 %2887  ;;  %vm4045_vm15 = vcmask 1043459  }
 0x3f2   : > { %v3332_v17 = vand.u32 2147483648, %v7720_v62  ;;  %v7801_v30 = vmax.f32 %v3093_v24, 0.0001  ;;  %v3878_v6 = vrot.slane %v2653_v8, %v7014_v3  ;;  %v3096_v33 = vsub.f32 %v2888_v63, %v3032_v48 }
 0x3f3   : > { %v3393_v28 = vsel %vm3392_vm13, %v7694_v21, %v3391_v27  ;;  %vm8655_vm10 = vcmask 720512   ;;  %v3330_v53 = vsel %vm3329_vm4, %v7720_v62, %v3328_v40  ;;  %vm3331_vm2 = vcmp.eq.f32.partialorder %v7720_v62, 0.0 }
 0x3f4   : > { %v4265_v20 = vsel %vm8655_vm10, %v4264_v39, %v4260_v54  ;;  %v5372_v47 = vpop.eup %5371  ;;  %v3337_v43 = vsel %vm3336_vm14, %v7676_v7, %v3335_v25  ;;  %v3333_v37 = vsel %vm3331_vm2, %v3332_v17, %v3330_v53  ;;  %v3031_v55 = vmul.f32 %v2629_v19, %v2629_v19  ;;  %v2885_v36 = vpop.xlane.xlu0 %2884  ;;  %vm8656_vm14 = vmmov %vm8655_vm10 }
 0x3f5   : > { %5377 = vrsqrt.f32 %v7801_v30  ;;  %v3339_v9 = vand.u32 2147483648, %v7676_v7  ;;  %vm3394_vm13 = vcmp.eq.f32.partialorder %v7694_v21, 0.0  ;;  %v4225_v54 = vrot.slane %v3333_v37, %v6991_v31  ;;  %v2912_v62 = vpop.xlane.xlu1 %2911 }
 0x3f6   : > { %v3883_v1 = vrot.slane %v7764_v57, %v6998_v50  ;;  %v3396_v58 = vsel %vm3394_vm13, %v3395_v34, %v3393_v28  ;;  %v3879_v32 = vsel %vm3759_vm12, %v3878_v6, %v3874_v42  ;;  %v7820_v23 = vmax.f32 %v3096_v33, 0.0001 }
 0x3f7   : > { %v3095_v45 = vsub.f32 %v2885_v36, %v3031_v55  ;;  %v3340_v19 = vsel %vm3338_vm3, %v3339_v9, %v3337_v43  ;;  %v4226_v56 = vsel %vm8656_vm14, %v4225_v54, %v7734_v12  ;;  %v3405_v21 = vmul.f32 %v5372_v47, %v7742_v14 }
 0x3f8   : > { %vm8657_vm4 = vcmask 523712   ;;  %vm3406_vm10 = vcmp.eq.f32.partialorder %v7742_v14, inf  ;;  %v3040_v34 = vmul.f32 %v7764_v57, %v7764_v57  ;;  %v3039_v29 = vmul.f32 %v2653_v8, %v2653_v8  ;;  %v2909_v42 = vpop.xlane.xlu0 %2908 }
 0x3f9   : > { %v3884_v0 = vsel %vm8657_vm4, %v3883_v1, %v3879_v32  ;;  %5379 = vrsqrt.f32 %v7820_v23  ;;  %v4269_v25 = vrot.slane %v3396_v58, %v6980_v16  ;;  %vm3408_vm3 = vcmp.eq.f32.partialorder %v7742_v14, 0.0  ;;  %v2662_v27 = vpop.xlane.xlu1 %2661  ;;  %v5374_v35 = vpop.eup %5373 }
 0x3fa   : > { %v3409_v7 = vand.u32 2147483648, %v7742_v14  ;;  %v7835_v12 = vmax.f32 %v3095_v45, 0.0001  ;;  %v4230_v52 = vrot.slane %v3340_v19, %v6980_v16  ;;  %vm3399_vm2 = vcmp.eq.f32.partialorder %v7776_v46, inf }
 0x3fb   : > { %v3104_v51 = vsub.f32 %v2912_v62, %v3040_v34  ;;  %v3103_v57 = vsub.f32 %v2909_v42, %v3039_v29  ;;  %v5376_v13 = vpop.eup %5375  ;;  %v3407_v48 = vsel %vm3406_vm10, %v7742_v14, %v3405_v21  ;;  %vm3401_vm13 = vcmp.eq.f32.partialorder %v7776_v46, 0.0 }
 0x3fc   : > { %v3402_v60 = vand.u32 2147483648, %v7776_v46  ;;  %5381 = vrsqrt.f32 %v7835_v12  ;;  %v3398_v24 = vmul.f32 %v5376_v13, %v7776_v46  ;;  %v2659_v40 = vpop.xlane.xlu0 %2658  ;;  %v7851_v63 = vsel %vm4045_vm15, %v3884_v0, %v4044_v2 }
 0x3fd   : > { %v7846_v8 = vmax.f32 %v3104_v51, 0.0001  ;;  %v7848_v39 = vmax.f32 %v3103_v57, 0.0001  ;;  %v3349_v17 = vmul.f32 %v5374_v35, %v7760_v5  ;;  %v3888_v6 = vrot.slane %v2659_v40, %v8646_v44  ;;  %v2686_v33 = vpop.xlane.xlu1 %2685 }
 0x3fe   : > { %vm8658_vm14 = vcmask 786112   ;;  %v3410_v47 = vsel %vm3408_vm3, %v3409_v7, %v3407_v48  ;;  %v3400_v43 = vsel %vm3399_vm2, %v7776_v46, %v3398_v24  ;;  %v3892_v2 = vrot.slane %v2662_v27, %v8645_v59 }
 0x3ff   : > { %v4231_v28 = vsel %vm8658_vm14, %v4230_v52, %v4226_v56  ;;  %vm8659_vm4 = vmmov %vm8658_vm14  ;;  %5383 = vrsqrt.f32 %v7846_v8  ;;  %vm3350_vm10 = vcmp.eq.f32.partialorder %v7760_v5, inf  ;;  %v3403_v37 = vsel %vm3401_vm13, %v3402_v60, %v3400_v43 }
 0x400   : > { %v4270_v53 = vsel %vm8659_vm4, %v4269_v25, %v4265_v20  ;;  %5385 = vrsqrt.f32 %v7848_v39  ;;  %v3353_v20 = vand.u32 2147483648, %v7760_v5  ;;  %v4274_v14 = vrot.slane %v3403_v37, %v8647_v18  ;;  %v2683_v9 = vpop.xlane.xlu0 %2682 }
 0x401   : > { %v3042_v55 = vmul.f32 %v2662_v27, %v2662_v27  ;;  %vm8660_vm3 = vcmask 130112   ;;  %v4279_v1 = vrot.slane %v3410_v47, %v8649_v11  ;;  %vm3343_vm2 = vcmp.eq.f32.partialorder %v7801_v30, inf  ;;  %v2918_v58 = vpop.xlane.xlu1 %2917 }
 0x402   : > { %v7871_v36 = vsel %vm8660_vm3, %v3892_v2, %v3888_v6  ;;  %v5378_v54 = vpop.eup %5377  ;;  %v3931_v62 = vrot.slane %v2686_v33, %v8645_v59  ;;  %v3927_v46 = vrot.slane %v2683_v9, %v8646_v44  ;;  %v3351_v32 = vsel %vm3350_vm10, %v7760_v5, %v3349_v17  ;;  %vm8662_vm14 = vmmov %vm8660_vm3 }
 0x403   : > { %v3342_v45 = vmul.f32 %v5378_v54, %v7801_v30  ;;  %v3106_v19 = vsub.f32 %v2918_v58, %v3042_v55  ;;  %vm8661_vm13 = vcmask 851712   ;;  %v3346_v21 = vand.u32 2147483648, %v7801_v30 }
 0x404   : > { %v4275_v56 = vsel %vm8661_vm13, %v4274_v14, %v4270_v53  ;;  %v3041_v0 = vmul.f32 %v2659_v40, %v2659_v40  ;;  %v7882_v34 = vsel %vm8662_vm14, %v3931_v62, %v3927_v46  ;;  %vm8663_vm4 = vcmask 917312   ;;  %v2915_v7 = vpop.xlane.xlu0 %2914 }
 0x405   : > { %v7885_v29 = vsel %vm8663_vm4, %v4279_v1, %v4275_v56  ;;  %vm3352_vm3 = vcmp.eq.f32.partialorder %v7760_v5, 0.0  ;;  %v3344_v42 = vsel %vm3343_vm2, %v7801_v30, %v3342_v45  ;;  %vm3345_vm10 = vcmp.eq.f32.partialorder %v7801_v30, 0.0  ;;  %v2942_v13 = vpop.xlane.xlu1 %2941 }
 0x406   : > { %v7890_v25 = vmax.f32 %v3106_v19, 0.0001  ;;  %v5380_v27 = vpop.eup %5379  ;;  %v7892_v35 = vsel %vm3352_vm3, %v3353_v20, %v3351_v32  ;;  %v3347_v52 = vsel %vm3345_vm10, %v3346_v21, %v3344_v42  ;;  %v3050_v51 = vmul.f32 %v2686_v33, %v2686_v33 }
 0x407   : > { %v3105_v57 = vsub.f32 %v2915_v7, %v3041_v0  ;;  %v4235_v48 = vrot.slane %v3347_v52, %v8647_v18  ;;  %v3363_v5 = vmul.f32 %v5380_v27, %v7820_v23  ;;  %v4240_v40 = vrot.slane %v7892_v35, %v8649_v11 }
 0x408   : > { %5387 = vrsqrt.f32 %v7890_v25  ;;  %v3114_v24 = vsub.f32 %v2942_v13, %v3050_v51  ;;  %vm3364_vm2 = vcmp.eq.f32.partialorder %v7820_v23, inf  ;;  %vm3366_vm13 = vcmp.eq.f32.partialorder %v7820_v23, 0.0  ;;  %v2939_v17 = vpop.xlane.xlu0 %2938 }
 0x409   : > { %v7897_v60 = vmax.f32 %v3105_v57, 0.0001  ;;  %v5382_v30 = vpop.eup %5381  ;;  %vm8664_vm14 = vcmask 851712   ;;  %v3367_v33 = vand.u32 2147483648, %v7820_v23  ;;  %v3049_v47 = vmul.f32 %v2683_v9, %v2683_v9  ;;  %v2668_v43 = vpop.xlane.xlu1 %2667 }
 0x40a   : > { %v4236_v6 = vsel %vm8664_vm14, %v4235_v48, %v4231_v28  ;;  %v3356_v53 = vmul.f32 %v5382_v30, %v7835_v12  ;;  %vm3357_vm4 = vcmp.eq.f32.partialorder %v7835_v12, inf  ;;  %vm3359_vm3 = vcmp.eq.f32.partialorder %v7835_v12, 0.0 }
 0x40b   : > { %5389 = vrsqrt.f32 %v7897_v60  ;;  %v3360_v2 = vand.u32 2147483648, %v7835_v12  ;;  %v7910_v37 = vmax.f32 %v3114_v24, 0.0001  ;;  %v3365_v14 = vsel %vm3364_vm2, %v7820_v23, %v3363_v5 }
 0x40c   : > { %v5384_v20 = vpop.eup %5383  ;;  %v3358_v28 = vsel %vm3357_vm4, %v7835_v12, %v3356_v53  ;;  %vm3420_vm10 = vcmp.eq.f32.partialorder %v7846_v8, inf  ;;  %v3113_v55 = vsub.f32 %v2939_v17, %v3049_v47  ;;  %vm3422_vm14 = vcmp.eq.f32.partialorder %v7846_v8, 0.0  ;;  %v7918_v62 = vpop.xlane.xlu0 %2664 }
 0x40d   : > { %v5386_v9 = vpop.eup %5385  ;;  %v3361_v54 = vsel %vm3359_vm3, %v3360_v2, %v3358_v28  ;;  %v3419_v1 = vmul.f32 %v5384_v20, %v7846_v8  ;;  %5391 = vrsqrt.f32 %v7910_v37  ;;  %v3423_v46 = vand.u32 2147483648, %v7846_v8  ;;  %v2692_v32 = vpop.xlane.xlu1 %2691 }
 0x40e   : > { %v3412_v58 = vmul.f32 %v5386_v9, %v7848_v39  ;;  %vm3413_vm2 = vcmp.eq.f32.partialorder %v7848_v39, inf  ;;  %v3416_v12 = vand.u32 2147483648, %v7848_v39  ;;  %v3368_v45 = vsel %vm3366_vm13, %v3367_v33, %v3365_v14 }
 0x40f   : > { %v3421_v19 = vsel %vm3420_vm10, %v7846_v8, %v3419_v1  ;;  %v7927_v56 = vmax.f32 %v3113_v55, 0.0001  ;;  %v3897_v21 = vrot.slane %v7918_v62, %v6967_v49  ;;  %v4245_v0 = vrot.slane %v3361_v54, %v7154_v61 }
 0x410   : > { %v3414_v42 = vsel %vm3413_vm2, %v7848_v39, %v3412_v58  ;;  %vm3415_vm4 = vcmp.eq.f32.partialorder %v7848_v39, 0.0  ;;  %v3044_v7 = vmul.f32 %v2668_v43, %v2668_v43  ;;  %v3424_v27 = vsel %vm3422_vm14, %v3423_v46, %v3421_v19  ;;  %v2689_v52 = vpop.xlane.xlu0 %2688 }
 0x411   : > { %v3417_v35 = vsel %vm3415_vm4, %v3416_v12, %v3414_v42  ;;  %5393 = vrsqrt.f32 %v7927_v56  ;;  %v3902_v23 = vrot.slane %v2668_v43, %v6958_v22  ;;  %v4250_v51 = vrot.slane %v3368_v45, %v8652_v10  ;;  %v2924_v39 = vpop.xlane.xlu1 %2923 }
 0x412   : > { %v4284_v57 = vrot.slane %v3417_v35, %v7154_v61  ;;  %v3898_v13 = vsel %vm3731_vm5, %v3897_v21, %v7871_v36  ;;  %v3941_v48 = vrot.slane %v2692_v32, %v6958_v22  ;;  %v3936_v5 = vrot.slane %v2689_v52, %v6967_v49 }
 0x413   : > { %v3108_v8 = vsub.f32 %v2924_v39, %v3044_v7  ;;  %v3903_v24 = vsel %vm3738_vm6, %v3902_v23, %v3898_v13  ;;  %vm8665_vm13 = vcmask 917312   ;;  %v3051_v33 = vmul.f32 %v2689_v52, %v2689_v52 }
 0x414   : > { %v4241_v30 = vsel %vm8665_vm13, %v4240_v40, %v4236_v6  ;;  %v4285_v47 = vsel %vm4165_vm8, %v4284_v57, %v7885_v29  ;;  %v4289_v43 = vrot.slane %v3424_v27, %v8652_v10  ;;  %vm3434_vm3 = vcmp.eq.f32.partialorder %v7890_v25, inf  ;;  %v2945_v20 = vpop.xlane.xlu0 %2944 }
 0x415   : > { %v5388_v17 = vpop.eup %5387  ;;  %v4246_v53 = vsel %vm4165_vm8, %v4245_v0, %v4241_v30  ;;  %v3937_v2 = vsel %vm3731_vm5, %v3936_v5, %v7882_v34  ;;  %v3115_v40 = vsub.f32 %v2945_v20, %v3051_v33  ;;  %v2948_v6 = vpop.xlane.xlu1 %2947  ;;  %v3437_v1 = vand.u32 2147483648, %v7890_v25 }
 0x416   : > { %v3433_v36 = vmul.f32 %v5388_v17, %v7890_v25  ;;  %v4251_v14 = vsel %vm4172_vm1, %v4250_v51, %v4246_v53  ;;  %v3942_v28 = vsel %vm3738_vm6, %v3941_v48, %v3937_v2  ;;  %v4290_v55 = vsel %vm4172_vm1, %v4289_v43, %v4285_v47 }
 0x417   : > { %v4448_v29 = vsel %vm4043_vm0, %v4251_v14, %v7650_v15  ;;  %v3052_v46 = vmul.f32 %v2692_v32, %v2692_v32  ;;  %vm3436_vm10 = vcmp.eq.f32.partialorder %v7890_v25, 0.0  ;;  %vm3427_vm14 = vcmp.eq.f32.partialorder %v7897_v60, inf }
 0x418   : > { %v5390_v9 = vpop.eup %5389  ;;  %v3435_v54 = vsel %vm3434_vm3, %v7890_v25, %v3433_v36  ;;  %v7964_v58 = vmax.f32 %v3115_v40, 0.0001  ;;  %v3430_v45 = vand.u32 2147483648, %v7897_v60  ;;  %v2671_v21 = vpop.xlane.xlu0 %2670  ;;  %v7968_v15 = vsel %vm4045_vm15, %v4290_v55, %v4448_v29 }
 0x419   : > { %v3426_v34 = vmul.f32 %v5390_v9, %v7897_v60  ;;  %v3438_v12 = vsel %vm3436_vm10, %v3437_v1, %v3435_v54  ;;  %v3116_v19 = vsub.f32 %v2948_v6, %v3052_v46  ;;  %vm3429_vm0 = vcmp.eq.f32.partialorder %v7897_v60, 0.0  ;;  %v2674_v25 = vpop.xlane.xlu1 %2673 }
 0x41a   : > { %v5392_v0 = vpop.eup %5391  ;;  %5395 = vrsqrt.f32 %v7964_v58  ;;  %v7974_v27 = vmax.f32 %v3108_v8, 0.0001  ;;  %v4298_v23 = vrot.slane %v3438_v12, %v6952_v26  ;;  %vm3490_vm15 = vcmp.eq.f32.partialorder %v7910_v37, inf }
 0x41b   : > { %v3428_v42 = vsel %vm3427_vm14, %v7897_v60, %v3426_v34  ;;  %v3489_v7 = vmul.f32 %v5392_v0, %v7910_v37  ;;  %v7976_v35 = vmax.f32 %v3116_v19, 0.0001  ;;  %v3907_v51 = vrot.slane %v2671_v21, %v6983_v38 }
 0x41c   : > { %v3431_v32 = vsel %vm3429_vm0, %v3430_v45, %v3428_v42  ;;  %vm3492_vm2 = vcmp.eq.f32.partialorder %v7910_v37, 0.0  ;;  %v2695_v57 = vpop.xlane.xlu0 %2694  ;;  %v3493_v39 = vand.u32 2147483648, %v7910_v37  ;;  %vm3483_vm4 = vcmp.eq.f32.partialorder %v7927_v56, inf }
 0x41d   : > { %v4294_v52 = vrot.slane %v3431_v32, %v6964_v41  ;;  %v3491_v60 = vsel %vm3490_vm15, %v7910_v37, %v3489_v7  ;;  %5397 = vrsqrt.f32 %v7976_v35  ;;  %v3908_v5 = vsel %vm3745_vm9, %v3907_v51, %v3903_v24  ;;  %v2698_v8 = vpop.xlane.xlu1 %2697 }
 0x41e   : > { %v5394_v13 = vpop.eup %5393  ;;  %v3486_v17 = vand.u32 2147483648, %v7927_v56  ;;  %5399 = vrsqrt.f32 %v7974_v27  ;;  %v3912_v33 = vrot.slane %v2674_v25, %v6974_v4  ;;  %v3494_v53 = vsel %vm3492_vm2, %v3493_v39, %v3491_v60 }
 0x41f   : > { %v7986_v48 = vsel %vm8565_vm7, %v4298_v23, %v4294_v52  ;;  %v3482_v30 = vmul.f32 %v5394_v13, %v7927_v56  ;;  %v3045_v47 = vmul.f32 %v2671_v21, %v2671_v21  ;;  %v3946_v43 = vrot.slane %v2695_v57, %v6983_v38 }
 0x420   : > { %v3951_v36 = vrot.slane %v2698_v8, %v6974_v4  ;;  %vm3485_vm13 = vcmp.eq.f32.partialorder %v7927_v56, 0.0  ;;  %v3043_v24 = vmul.f32 %v7918_v62, %v7918_v62  ;;  %v3913_v2 = vsel %vm3752_vm11, %v3912_v33, %v3908_v5  ;;  %v2927_v20 = vpop.xlane.xlu0 %2926 }
 0x421   : > { %v3484_v37 = vsel %vm3483_vm4, %v7927_v56, %v3482_v30  ;;  %v3947_v40 = vsel %vm3745_vm9, %v3946_v43, %v3942_v28  ;;  %v3109_v6 = vsub.f32 %v2927_v20, %v3045_v47  ;;  %v2921_v55 = vpop.xlane.xlu1 %2920  ;;  %v4337_v29 = vrot.slane %v3494_v53, %v6952_v26 }
 0x422   : > { %v3487_v14 = vsel %vm3485_vm13, %v3486_v17, %v3484_v37  ;;  %v3952_v54 = vsel %vm3752_vm11, %v3951_v36, %v3947_v40  ;;  %v3107_v1 = vsub.f32 %v2921_v55, %v3043_v24  ;;  %v3053_v12 = vmul.f32 %v2695_v57, %v2695_v57 }
 0x423   : > { %v4333_v9 = vrot.slane %v3487_v14, %v6964_v41  ;;  %v8006_v46 = vmax.f32 %v3109_v6, 0.0001  ;;  %v3046_v19 = vmul.f32 %v2674_v25, %v2674_v25  ;;  %vm3497_vm3 = vcmp.eq.f32.partialorder %v7964_v58, inf }
 0x424   : > { %v8009_v62 = vmax.f32 %v3107_v1, 0.0001  ;;  %v2951_v34 = vpop.xlane.xlu0 %2950  ;;  %v3500_v42 = vand.u32 2147483648, %v7964_v58  ;;  %v3054_v32 = vmul.f32 %v2698_v8, %v2698_v8  ;;  %vm3499_vm10 = vcmp.eq.f32.partialorder %v7964_v58, 0.0 }
 0x425   : > { %v4338_v56 = vsel %vm8565_vm7, %v4337_v29, %v4333_v9  ;;  %5401 = vrsqrt.f32 %v8006_v46  ;;  %v2930_v28 = vpop.xlane.xlu1 %2929  ;;  %v3117_v0 = vsub.f32 %v2951_v34, %v3053_v12  ;;  %vm3504_vm14 = vcmp.eq.f32.partialorder %v7976_v35, inf }
 0x426   : > { %5403 = vrsqrt.f32 %v8009_v62  ;;  %v3110_v7 = vsub.f32 %v2930_v28, %v3046_v19  ;;  %v3507_v33 = vand.u32 2147483648, %v7976_v35  ;;  %vm3506_vm0 = vcmp.eq.f32.partialorder %v7976_v35, 0.0 }
 0x427   : > { %v5396_v45 = vpop.eup %5395  ;;  %v8020_v60 = vmax.f32 %v3117_v0, 0.0001  ;;  %vm4047_vm15 = vcmask 1044484   ;;  %vm8666_vm2 = vcmask 720512   ;;  %vm3448_vm4 = vcmp.eq.f32.partialorder %v7974_v27, inf }
 0x428   : > { %v3496_v21 = vmul.f32 %v5396_v45, %v7964_v58  ;;  %v8016_v23 = vpop.xlane.xlu0 %2676  ;;  %v8025_v5 = vmax.f32 %v3110_v7, 0.0001  ;;  %vm8667_vm13 = vcmask 523712  }
 0x429   : > { %v3917_v25 = vrot.slane %v8016_v23, %v7014_v3  ;;  %v2954_v57 = vpop.xlane.xlu1 %2953  ;;  %5405 = vrsqrt.f32 %v8020_v60 }
 0x42a   : > { %v5398_v52 = vpop.eup %5397  ;;  %v3498_v51 = vsel %vm3497_vm3, %v7964_v58, %v3496_v21  ;;  %v3118_v8 = vsub.f32 %v2954_v57, %v3054_v32  ;;  %5407 = vrsqrt.f32 %v8025_v5  ;;  %vm8668_vm3 = vcmask 786112  }
 0x42b   : > { %v3501_v13 = vsel %vm3499_vm10, %v3500_v42, %v3498_v51  ;;  %v3503_v39 = vmul.f32 %v5398_v52, %v7976_v35  ;;  %v5400_v30 = vpop.eup %5399  ;;  %v3918_v43 = vsel %vm3759_vm12, %v3917_v25, %v3913_v2  ;;  %vm3450_vm10 = vcmp.eq.f32.partialorder %v7974_v27, 0.0 }
 0x42c   : > { %v4342_v17 = vrot.slane %v3501_v13, %v6991_v31  ;;  %v8034_v53 = vpop.xlane.xlu0 %2700  ;;  %v3447_v37 = vmul.f32 %v5400_v30, %v7974_v27  ;;  %v8039_v20 = vmax.f32 %v3118_v8, 0.0001  ;;  %v3444_v52 = vand.u32 2147483648, %v8009_v62 }
 0x42d   : > { %v3505_v58 = vsel %vm3504_vm14, %v7976_v35, %v3503_v39  ;;  %v2680_v36 = vpop.xlane.xlu1 %2679  ;;  %v3956_v14 = vrot.slane %v8034_v53, %v7014_v3  ;;  %vm4049_vm14 = vcmask 1045509   ;;  %v3047_v39 = vmul.f32 %v8016_v23, %v8016_v23 }
 0x42e   : > { %v3508_v47 = vsel %vm3506_vm0, %v3507_v33, %v3505_v58  ;;  %v3048_v40 = vmul.f32 %v2680_v36, %v2680_v36  ;;  %v3922_v35 = vrot.slane %v2680_v36, %v6998_v50  ;;  %v4343_v6 = vsel %vm8666_vm2, %v4342_v17, %v4338_v56 }
 0x42f   : > { %v4347_v24 = vrot.slane %v3508_v47, %v6980_v16  ;;  %5409 = vrsqrt.f32 %v8039_v20  ;;  %v3957_v55 = vsel %vm3759_vm12, %v3956_v14, %v3952_v54  ;;  %v3449_v28 = vsel %vm3448_vm4, %v7974_v27, %v3447_v37  ;;  %vm8669_vm4 = vmmov %vm8667_vm13 }
 0x430   : > { %v2936_v2 = vpop.xlane.xlu0 %2935  ;;  %v3923_v29 = vsel %vm8667_vm13, %v3922_v35, %v3918_v43  ;;  %v3451_v54 = vand.u32 2147483648, %v7974_v27  ;;  %vm3455_vm0 = vcmp.eq.f32.partialorder %v8006_v46, inf  ;;  %vm3441_vm2 = vcmp.eq.f32.partialorder %v8009_v62, inf }
 0x431   : > { %v3112_v9 = vsub.f32 %v2936_v2, %v3048_v40  ;;  %v2704_v1 = vpop.xlane.xlu1 %2703  ;;  %v8050_v34 = vsel %vm8668_vm3, %v4347_v24, %v4343_v6  ;;  %v4048_v56 = vsel %vm4047_vm15, %v3923_v29, %v7851_v63  ;;  %vm3457_vm13 = vcmp.eq.f32.partialorder %v8006_v46, 0.0 }
 0x432   : > { %v5402_v12 = vpop.eup %5401  ;;  %v3961_v45 = vrot.slane %v2704_v1, %v6998_v50  ;;  %v3452_v63 = vsel %vm3450_vm10, %v3451_v54, %v3449_v28  ;;  %v3056_v51 = vmul.f32 %v2704_v1, %v2704_v1  ;;  %vm3443_vm3 = vcmp.eq.f32.partialorder %v8009_v62, 0.0 }
 0x433   : > { %v5404_v19 = vpop.eup %5403  ;;  %v8058_v21 = vmax.f32 %v3112_v9, 0.0001  ;;  %v3454_v7 = vmul.f32 %v5402_v12, %v8006_v46  ;;  %v4308_v17 = vrot.slane %v3452_v63, %v6980_v16  ;;  %v3458_v33 = vand.u32 2147483648, %v8006_v46 }
 0x434   : > { %v3440_v0 = vmul.f32 %v5404_v19, %v8009_v62  ;;  %v3962_v42 = vsel %vm8669_vm4, %v3961_v45, %v3957_v55  ;;  %v8064_v32 = vpop.xlane.xlu0 %2959  ;;  %vm3511_vm10 = vcmp.eq.f32.partialorder %v8020_v60, inf  ;;  %vm8670_vm4 = vcmask 720512  }
 0x435   : > { %v8068_v27 = vpop.xlane.xlu1 %2709  ;;  %v8074_v57 = vsel %vm4049_vm14, %v3962_v42, %v4048_v56  ;;  %5411 = vrsqrt.f32 %v8058_v21  ;;  %v3120_v8 = vsub.f32 %v8064_v32, %v3056_v51  ;;  %v3456_v43 = vsel %vm3455_vm0, %v8006_v46, %v3454_v7 }
 0x436   : > { %v3442_v25 = vsel %vm3441_vm2, %v8009_v62, %v3440_v0  ;;  %v5406_v30 = vpop.eup %5405  ;;  %vm3513_vm2 = vcmp.eq.f32.partialorder %v8020_v60, 0.0  ;;  %v3514_v14 = vand.u32 2147483648, %v8020_v60  ;;  %vm3464_vm7 = vcmp.eq.f32.partialorder %v8025_v5, 0.0 }
 0x437   : > { %v3445_v13 = vsel %vm3443_vm3, %v3444_v52, %v3442_v25  ;;  %v5408_v47 = vpop.eup %5407  ;;  %v3510_v23 = vmul.f32 %v5406_v30, %v8020_v60  ;;  %vm3462_vm3 = vcmp.eq.f32.partialorder %v8025_v5, inf  ;;  %v3465_v6 = vand.u32 2147483648, %v8025_v5 }
 0x438   : > { %v4303_v58 = vrot.slane %v3445_v13, %v6991_v31  ;;  %v2933_v62 = vpop.xlane.xlu0 %2932  ;;  %v3461_v40 = vmul.f32 %v5408_v47, %v8025_v5  ;;  %v3055_v2 = vmul.f32 %v8034_v53, %v8034_v53  ;;  %v3459_v55 = vsel %vm3457_vm13, %v3458_v33, %v3456_v43 }
 0x439   : > { %v3111_v36 = vsub.f32 %v2933_v62, %v3047_v39  ;;  %v2734_v37 = vpop.xlane.xlu1 %2733  ;;  %v3512_v35 = vsel %vm3511_vm10, %v8020_v60, %v3510_v23  ;;  %v3970_v60 = vrot.slane %v8068_v27, %v8645_v59  ;;  %vm3518_vm0 = vcmp.eq.f32.partialorder %v8039_v20, inf }
 0x43a   : > { %v4304_v24 = vsel %vm8670_vm4, %v4303_v58, %v7986_v48  ;;  %v3515_v29 = vsel %vm3513_vm2, %v3514_v14, %v3512_v35  ;;  %v3463_v48 = vsel %vm3462_vm3, %v8025_v5, %v3461_v40  ;;  %vm3520_vm13 = vcmp.eq.f32.partialorder %v8039_v20, 0.0 }
 0x43b   : > { %v3175_v9 = vmax.f32 %v3111_v36, 0.0001  ;;  %v4352_v28 = vrot.slane %v3515_v29, %v8647_v18  ;;  %v3466_v56 = vsel %vm3464_vm7, %v3465_v6, %v3463_v48  ;;  %v4313_v46 = vrot.slane %v3459_v55, %v8647_v18 }
 0x43c   : > { %v2707_v1 = vpop.xlane.xlu0 %2706  ;;  %v5410_v12 = vpop.eup %5409  ;;  %v3521_v5 = vand.u32 2147483648, %v8039_v20  ;;  %vm8671_vm10 = vcmask 130112   ;;  %v4318_v42 = vrot.slane %v3466_v56, %v8649_v11  ;;  %vm8672_vm7 = vcmask 786112  }
 0x43d   : > { %v3966_v45 = vrot.slane %v2707_v1, %v8646_v44  ;;  %v2957_v19 = vpop.xlane.xlu1 %2956  ;;  %v3517_v53 = vmul.f32 %v5410_v12, %v8039_v20  ;;  %5413 = vrsqrt.f32 %v3175_v9  ;;  %v4309_v7 = vsel %vm8672_vm7, %v4308_v17, %v4304_v24  ;;  %vm8675_vm3 = vmmov %vm8671_vm10 }
 0x43e   : > { %v3119_v0 = vsub.f32 %v2957_v19, %v3055_v2  ;;  %vm8673_vm2 = vcmask 851712   ;;  %v4009_v33 = vrot.slane %v2734_v37, %v8645_v59  ;;  %v3058_v59 = vmul.f32 %v8068_v27, %v8068_v27 }
 0x43f   : > { %v3971_v54 = vsel %vm8671_vm10, %v3970_v60, %v3966_v45  ;;  %v3519_v32 = vsel %vm3518_vm0, %v8039_v20, %v3517_v53  ;;  %v4353_v52 = vsel %vm8673_vm2, %v4352_v28, %v8050_v34  ;;  %vm8674_vm4 = vmmov %vm8673_vm2  ;;  %v8125_v20 = vmax.f32 %v3120_v8, 0.0001 }
 0x440   : > { %v2731_v63 = vpop.xlane.xlu0 %2730  ;;  %v3522_v51 = vsel %vm3520_vm13, %v3521_v5, %v3519_v32  ;;  %v8117_v25 = vmax.f32 %v3119_v0, 0.0001  ;;  %v4314_v58 = vsel %vm8674_vm4, %v4313_v46, %v4309_v7  ;;  %vm8676_vm0 = vcmask 917312  }
 0x441   : > { %v4005_v13 = vrot.slane %v2731_v63, %v8646_v44  ;;  %v8120_v39 = vpop.xlane.xlu1 %2715  ;;  %v4357_v30 = vrot.slane %v3522_v51, %v8649_v11  ;;  %v4319_v47 = vsel %vm8676_vm0, %v4318_v42, %v4314_v58  ;;  %vm8677_vm13 = vmmov %vm8676_vm0  ;;  %vm3476_vm10 = vcmp.eq.f32.partialorder %v8058_v21, inf }
 0x442   : > { %5415 = vrsqrt.f32 %v8117_v25  ;;  %v5412_v17 = vpop.eup %5411  ;;  %vm3478_vm7 = vcmp.eq.f32.partialorder %v8058_v21, 0.0  ;;  %v3479_v35 = vand.u32 2147483648, %v8058_v21  ;;  %v3066_v2 = vmul.f32 %v2734_v37, %v2734_v37 }
 0x443   : > { %v4010_v34 = vsel %vm8675_vm3, %v4009_v33, %v4005_v13  ;;  %v8131_v44 = vsel %vm8677_vm13, %v4357_v30, %v4353_v52  ;;  %v3475_v23 = vmul.f32 %v5412_v17, %v8058_v21  ;;  %5417 = vrsqrt.f32 %v8125_v20 }
 0x444   : > { %v2966_v62 = vpop.xlane.xlu0 %2965  ;;  %v3057_v55 = vmul.f32 %v2707_v1, %v2707_v1  ;;  %vm3469_vm2 = vcmp.eq.f32.partialorder %v3175_v9, inf  ;;  %vm3471_vm4 = vcmp.eq.f32.partialorder %v3175_v9, 0.0  ;;  %v3472_v48 = vand.u32 2147483648, %v3175_v9 }
 0x445   : > { %v8133_v43 = vpop.xlane.xlu1 %2739  ;;  %v3122_v24 = vsub.f32 %v2966_v62, %v3058_v59  ;;  %v3477_v40 = vsel %vm3476_vm10, %v8058_v21, %v3475_v23  ;;  %v3065_v56 = vmul.f32 %v2731_v63, %v2731_v63  ;;  %vm3525_vm3 = vcmp.eq.f32.partialorder %v8117_v25, inf }
 0x446   : > { %v3480_v45 = vsel %vm3478_vm7, %v3479_v35, %v3477_v40  ;;  %v3980_v21 = vrot.slane %v8120_v39, %v6958_v22  ;;  %vm3527_vm0 = vcmp.eq.f32.partialorder %v8117_v25, 0.0  ;;  %v3528_v46 = vand.u32 2147483648, %v8117_v25 }
 0x447   : > { %v8144_v60 = vmax.f32 %v3122_v24, 0.0001  ;;  %v4019_v42 = vrot.slane %v8133_v43, %v6958_v22  ;;  %v4328_v7 = vrot.slane %v3480_v45, %v8652_v10  ;;  %v3060_v24 = vmul.f32 %v8120_v39, %v8120_v39 }
 0x448   : > { %v2990_v8 = vpop.xlane.xlu0 %2989 }
 0x449   : > { %v2963_v36 = vpop.xlane.xlu1 %2962  ;;  %v3130_v37 = vsub.f32 %v2990_v8, %v3066_v2  ;;  %5419 = vrsqrt.f32 %v8144_v60  ;;  %vm3548_vm13 = vcmp.eq.f32.partialorder %v8144_v60, 0.0 }
 0x44a   : > { %v5414_v14 = vpop.eup %5413  ;;  %v3121_v52 = vsub.f32 %v2963_v36, %v3057_v55  ;;  %v3068_v55 = vmul.f32 %v8133_v43, %v8133_v43 }
 0x44b   : > { %v3468_v6 = vmul.f32 %v5414_v14, %v3175_v9  ;;  %v8166_v30 = vmax.f32 %v3130_v37, 0.0001 }
 0x44c   : > { %v2713_v29 = vpop.xlane.xlu0 %2712 }
 0x44d   : > { %v3975_v27 = vrot.slane %v2713_v29, %v6967_v49  ;;  %v2987_v12 = vpop.xlane.xlu1 %2986  ;;  %v3470_v28 = vsel %vm3469_vm2, %v3175_v9, %v3468_v6  ;;  %5421 = vrsqrt.f32 %v8166_v30  ;;  %vm3604_vm10 = vcmp.eq.f32.partialorder %v8166_v30, 0.0 }
 0x44e   : > { %v3473_v19 = vsel %vm3471_vm4, %v3472_v48, %v3470_v28  ;;  %v3129_v58 = vsub.f32 %v2987_v12, %v3065_v56  ;;  %v3535_v48 = vand.u32 2147483648, %v8125_v20 }
 0x44f   : > { %v5416_v1 = vpop.eup %5415  ;;  %v4323_v53 = vrot.slane %v3473_v19, %v7154_v61  ;;  %v3976_v9 = vsel %vm3731_vm5, %v3975_v27, %v3971_v54 }
 0x450   : > { %v2737_v5 = vpop.xlane.xlu0 %2736  ;;  %v3524_v0 = vmul.f32 %v5416_v1, %v8117_v25  ;;  %v8160_v51 = vsel %vm3738_vm6, %v3980_v21, %v3976_v9  ;;  %v5418_v33 = vpop.eup %5417  ;;  %v8184_v14 = vmax.f32 %v3129_v58, 0.0001 }
 0x451   : > { %v4014_v32 = vrot.slane %v2737_v5, %v6967_v49  ;;  %v2972_v63 = vpop.xlane.xlu1 %2971  ;;  %v4324_v13 = vsel %vm4165_vm8, %v4323_v53, %v4319_v47  ;;  %v3531_v8 = vmul.f32 %v5418_v33, %v8125_v20 }
 0x452   : > { %v3526_v54 = vsel %vm3525_vm3, %v8117_v25, %v3524_v0  ;;  %v4329_v49 = vsel %vm4172_vm1, %v4328_v7, %v4324_v13  ;;  %v3059_v25 = vmul.f32 %v2713_v29, %v2713_v29  ;;  %v3067_v29 = vmul.f32 %v2737_v5, %v2737_v5 }
 0x453   : > { %v4015_v22 = vsel %vm3731_vm5, %v4014_v32, %v4010_v34  ;;  %v3529_v23 = vsel %vm3527_vm0, %v3528_v46, %v3526_v54  ;;  %v4450_v47 = vsel %vm4047_vm15, %v4329_v49, %v7968_v15  ;;  %v8179_v34 = vmax.f32 %v3121_v52, 0.0001 }
 0x454   : > { %v2969_v17 = vpop.xlane.xlu0 %2968  ;;  %v8171_v62 = vsel %vm3738_vm6, %v4019_v42, %v4015_v22  ;;  %v4362_v36 = vrot.slane %v3529_v23, %v7154_v61  ;;  %vm3532_vm5 = vcmp.eq.f32.partialorder %v8125_v20, inf  ;;  %v3124_v15 = vsub.f32 %v2972_v63, %v3060_v24 }
 0x455   : > { %v2996_v59 = vpop.xlane.xlu1 %2995  ;;  %v3533_v2 = vsel %vm3532_vm5, %v8125_v20, %v3531_v8  ;;  %5423 = vrsqrt.f32 %v8179_v34  ;;  %v3123_v39 = vsub.f32 %v2969_v17, %v3059_v25  ;;  %vm3534_vm6 = vcmp.eq.f32.partialorder %v8125_v20, 0.0 }
 0x456   : > { %v4363_v6 = vsel %vm4165_vm8, %v4362_v36, %v8131_v44  ;;  %5425 = vrsqrt.f32 %v8184_v14  ;;  %v3132_v12 = vsub.f32 %v2996_v59, %v3068_v55  ;;  %v8202_v44 = vmax.f32 %v3124_v15, 0.0001  ;;  %v5420_v43 = vpop.eup %5419 }
 0x457   : > { %v3536_v45 = vsel %vm3534_vm6, %v3535_v48, %v3533_v2  ;;  %v8204_v19 = vmax.f32 %v3123_v39, 0.0001  ;;  %v3545_v46 = vmul.f32 %v5420_v43, %v8144_v60  ;;  %vm3546_vm15 = vcmp.eq.f32.partialorder %v8144_v60, inf }
 0x458   : > { %v2993_v40 = vpop.xlane.xlu0 %2992  ;;  %v8208_v37 = vmax.f32 %v3132_v12, 0.0001  ;;  %v4367_v53 = vrot.slane %v3536_v45, %v8652_v10  ;;  %5427 = vrsqrt.f32 %v8202_v44  ;;  %v3549_v13 = vand.u32 2147483648, %v8144_v60 }
 0x459   : > { %v8186_v35 = vpop.xlane.xlu1 %2721  ;;  %v3131_v56 = vsub.f32 %v2993_v40, %v3067_v29  ;;  %5429 = vrsqrt.f32 %v8204_v19  ;;  %v3547_v52 = vsel %vm3546_vm15, %v8144_v60, %v3545_v46  ;;  %v3605_v49 = vand.u32 2147483648, %v8166_v30 }
 0x45a   : > { %v4368_v9 = vsel %vm4172_vm1, %v4367_v53, %v4363_v6  ;;  %v5422_v5 = vpop.eup %5421  ;;  %v3062_v0 = vmul.f32 %v8186_v35, %v8186_v35  ;;  %5431 = vrsqrt.f32 %v8208_v37  ;;  %vm3539_vm7 = vcmp.eq.f32.partialorder %v8179_v34, inf }
 0x45b   : > { %v8214_v20 = vmax.f32 %v3131_v56, 0.0001  ;;  %v8222_v32 = vsel %vm4049_vm14, %v4368_v9, %v4450_v47  ;;  %v3601_v54 = vmul.f32 %v5422_v5, %v8166_v30  ;;  %vm3602_vm14 = vcmp.eq.f32.partialorder %v8166_v30, inf }
 0x45c   : > { %v8197_v27 = vpop.xlane.xlu0 %2718  ;;  %v3542_v47 = vand.u32 2147483648, %v8179_v34  ;;  %vm3595_vm2 = vcmp.eq.f32.partialorder %v8184_v14, inf  ;;  %v3598_v59 = vand.u32 2147483648, %v8184_v14  ;;  %v8246_v36 = vsel %vm3548_vm13, %v3549_v13, %v3547_v52 }
 0x45d   : > { %v8200_v28 = vpop.xlane.xlu1 %2745  ;;  %5433 = vrsqrt.f32 %v8214_v20  ;;  %v3603_v15 = vsel %vm3602_vm14, %v8166_v30, %v3601_v54  ;;  %vm3541_vm4 = vcmp.eq.f32.partialorder %v8179_v34, 0.0  ;;  %vm3597_vm3 = vcmp.eq.f32.partialorder %v8184_v14, 0.0 }
 0x45e   : > { %v3070_v33 = vmul.f32 %v8200_v28, %v8200_v28  ;;  %v3061_v2 = vmul.f32 %v8197_v27, %v8197_v27  ;;  %v3985_v60 = vrot.slane %v8197_v27, %v6983_v38  ;;  %v3563_v39 = vand.u32 2147483648, %v8202_v44 }
 0x45f   : > { %v4376_v56 = vrot.slane %v8246_v36, %v6952_v26  ;;  %vm3560_vm0 = vcmp.eq.f32.partialorder %v8202_v44, inf  ;;  %v3990_v45 = vrot.slane %v8186_v35, %v6974_v4  ;;  %vm4051_vm5 = vcmask 1046534  }
 0x460   : > { %v8206_v21 = vpop.xlane.xlu0 %2742  ;;  %v8275_v46 = vsel %vm3604_vm10, %v3605_v49, %v3603_v15  ;;  %vm3553_vm6 = vcmp.eq.f32.partialorder %v8204_v19, inf  ;;  %v3986_v5 = vsel %vm3745_vm9, %v3985_v60, %v8160_v51  ;;  %vm3616_vm15 = vcmp.eq.f32.partialorder %v8208_v37, inf }
 0x461   : > { %v8210_v1 = vpop.xlane.xlu1 %2727  ;;  %v3069_v58 = vmul.f32 %v8206_v21, %v8206_v21  ;;  %v4024_v48 = vrot.slane %v8206_v21, %v6983_v38  ;;  %v3556_v38 = vand.u32 2147483648, %v8204_v19  ;;  %v3619_v21 = vand.u32 2147483648, %v8208_v37 }
 0x462   : > { %v5424_v22 = vpop.eup %5423  ;;  %v3064_v30 = vmul.f32 %v8210_v1, %v8210_v1  ;;  %vm4053_vm13 = vcmask 1047559   ;;  %vm3562_vm14 = vcmp.eq.f32.partialorder %v8202_v44, 0.0  ;;  %vm3555_vm10 = vcmp.eq.f32.partialorder %v8204_v19, 0.0 }
 0x463   : > { %v5426_v23 = vpop.eup %5425  ;;  %v3538_v6 = vmul.f32 %v5424_v22, %v8179_v34  ;;  %v4025_v52 = vsel %vm3745_vm9, %v4024_v48, %v8171_v62  ;;  %vm8678_vm9 = vcmask 523712  }
 0x464   : > { %v2978_v42 = vpop.xlane.xlu0 %2977  ;;  %v3594_v55 = vmul.f32 %v5426_v23, %v8184_v14 }
 0x465   : > { %v8225_v63 = vpop.xlane.xlu1 %2751  ;;  %v3126_v7 = vsub.f32 %v2978_v42, %v3062_v0  ;;  %v5428_v9 = vpop.eup %5427  ;;  %v3540_v35 = vsel %vm3539_vm7, %v8179_v34, %v3538_v6  ;;  %vm3609_vm7 = vcmp.eq.f32.partialorder %v8214_v20, inf }
 0x466   : > { %v5430_v0 = vpop.eup %5429  ;;  %v3596_v42 = vsel %vm3595_vm2, %v8184_v14, %v3594_v55  ;;  %v3559_v62 = vmul.f32 %v5428_v9, %v8202_v44  ;;  %v3543_v15 = vsel %vm3541_vm4, %v3542_v47, %v3540_v35  ;;  %v3072_v6 = vmul.f32 %v8225_v63, %v8225_v63 }
 0x467   : > { %v8248_v24 = vmax.f32 %v3126_v7, 0.0001  ;;  %v4029_v7 = vrot.slane %v8200_v28, %v6974_v4  ;;  %v5432_v28 = vpop.eup %5431  ;;  %v3552_v23 = vmul.f32 %v5430_v0, %v8204_v19  ;;  %v4372_v35 = vrot.slane %v3543_v15, %v6964_v41 }
 0x468   : > { %v3002_v17 = vpop.xlane.xlu0 %3001  ;;  %v3615_v55 = vmul.f32 %v5432_v28, %v8208_v37  ;;  %v3561_v34 = vsel %vm3560_vm0, %v8202_v44, %v3559_v62  ;;  %vm3611_vm2 = vcmp.eq.f32.partialorder %v8214_v20, 0.0  ;;  %vm8680_vm4 = vcmask 654912  }
 0x469   : > { %v2999_v8 = vpop.xlane.xlu1 %2998  ;;  %v3134_v40 = vsub.f32 %v3002_v17, %v3070_v33  ;;  %5435 = vrsqrt.f32 %v8248_v24  ;;  %v4000_v33 = vrot.slane %v8210_v1, %v6998_v50  ;;  %v3599_v1 = vsel %vm3597_vm3, %v3598_v59, %v3596_v42 }
 0x46a   : > { %v3133_v25 = vsub.f32 %v2999_v8, %v3069_v58  ;;  %v3991_v58 = vsel %vm3752_vm11, %v3990_v45, %v3986_v5  ;;  %v5434_v17 = vpop.eup %5433  ;;  %v4030_v60 = vsel %vm3752_vm11, %v4029_v7, %v4025_v52  ;;  %v4411_v42 = vrot.slane %v3599_v1, %v6964_v41  ;;  %vm8679_vm11 = vmmov %vm8678_vm9 }
 0x46b   : > { %v8271_v43 = vmax.f32 %v3134_v40, 0.0001  ;;  %v3608_v14 = vmul.f32 %v5434_v17, %v8214_v20  ;;  %v3617_v7 = vsel %vm3616_vm15, %v8208_v37, %v3615_v55  ;;  %v3564_v52 = vsel %vm3562_vm14, %v3563_v39, %v3561_v34 }
 0x46c   : > { %v8264_v29 = vmax.f32 %v3133_v25, 0.0001  ;;  %v2975_v12 = vpop.xlane.xlu0 %2974  ;;  %vm3574_vm3 = vcmp.eq.f32.partialorder %v8248_v24, inf  ;;  %vm3576_vm0 = vcmp.eq.f32.partialorder %v8248_v24, 0.0 }
 0x46d   : > { %v3125_v27 = vsub.f32 %v2975_v12, %v3061_v2  ;;  %v2984_v53 = vpop.xlane.xlu1 %2983  ;;  %v3610_v41 = vsel %vm3609_vm7, %v8214_v20, %v3608_v14  ;;  %vm3630_vm15 = vcmp.eq.f32.partialorder %v8271_v43, inf  ;;  %vm3632_vm14 = vcmp.eq.f32.partialorder %v8271_v43, 0.0 }
 0x46e   : > { %5437 = vrsqrt.f32 %v8264_v29  ;;  %v3128_v54 = vsub.f32 %v2984_v53, %v3064_v30  ;;  %v4039_v53 = vrot.slane %v8225_v63, %v6998_v50  ;;  %v3626_v55 = vand.u32 2147483648, %v8264_v29 }
 0x46f   : > { %v8297_v13 = vmax.f32 %v3125_v27, 0.0001  ;;  %5439 = vrsqrt.f32 %v8271_v43  ;;  %v3554_v27 = vsel %vm3553_vm6, %v8204_v19, %v3552_v23  ;;  %v4415_v19 = vrot.slane %v8275_v46, %v6952_v26  ;;  %vm8681_vm6 = vmmov %vm8680_vm4 }
 0x470   : > { %v2725_v51 = vpop.xlane.xlu0 %2724  ;;  %v8310_v8 = vmax.f32 %v3128_v54, 0.0001  ;;  %v3612_v54 = vand.u32 2147483648, %v8214_v20 }
 0x471   : > { %v3063_v22 = vmul.f32 %v2725_v51, %v2725_v51  ;;  %v3995_v49 = vrot.slane %v2725_v51, %v7014_v3  ;;  %v2981_v4 = vpop.xlane.xlu1 %2980  ;;  %5441 = vrsqrt.f32 %v8297_v13  ;;  %v3557_v51 = vsel %vm3555_vm10, %v3556_v38, %v3554_v27 }
 0x472   : > { %5443 = vrsqrt.f32 %v8310_v8  ;;  %v4381_v28 = vrot.slane %v3557_v51, %v6991_v31  ;;  %v3613_v62 = vsel %vm3611_vm2, %v3612_v54, %v3610_v41  ;;  %v4416_v20 = vsel %vm8681_vm6, %v4415_v19, %v4411_v42 }
 0x473   : > { %v3996_v40 = vsel %vm3759_vm12, %v3995_v49, %v3991_v58  ;;  %v3127_v25 = vsub.f32 %v2981_v4, %v3063_v22  ;;  %v4377_v49 = vsel %vm8680_vm4, %v4376_v56, %v4372_v35  ;;  %v4386_v4 = vrot.slane %v3564_v52, %v6980_v16 }
 0x474   : > { %v2749_v2 = vpop.xlane.xlu0 %2748  ;;  %v4001_v48 = vsel %vm8678_vm9, %v4000_v33, %v3996_v40  ;;  %v3633_v58 = vand.u32 2147483648, %v8271_v43  ;;  %vm3623_vm10 = vcmp.eq.f32.partialorder %v8264_v29, inf  ;;  %vm3567_vm7 = vcmp.eq.f32.partialorder %v8297_v13, inf }
 0x475   : > { %v8325_v12 = vmax.f32 %v3127_v25, 0.0001  ;;  %v3008_v45 = vpop.xlane.xlu1 %3007  ;;  %v4034_v47 = vrot.slane %v2749_v2, %v7014_v3  ;;  %v3071_v9 = vmul.f32 %v2749_v2, %v2749_v2  ;;  %v4052_v3 = vsel %vm4051_vm5, %v4001_v48, %v8074_v57 }
 0x476   : > { %v3136_v59 = vsub.f32 %v3008_v45, %v3072_v6  ;;  %v5436_v57 = vpop.eup %5435  ;;  %vm8682_vm9 = vcmask 720512   ;;  %vm8683_vm2 = vcmask 786112   ;;  %vm3588_vm6 = vcmp.eq.f32.partialorder %v8310_v8, inf }
 0x477   : > { %5445 = vrsqrt.f32 %v8325_v12  ;;  %v4035_v5 = vsel %vm3759_vm12, %v4034_v47, %v4030_v60  ;;  %vm3618_vm12 = vcmp.eq.f32.partialorder %v8208_v37, 0.0  ;;  %v3577_v37 = vand.u32 2147483648, %v8248_v24  ;;  %vm8684_vm4 = vmmov %vm8682_vm9 }
 0x478   : > { %v8340_v30 = vmax.f32 %v3136_v59, 0.0001  ;;  %v3005_v0 = vpop.xlane.xlu0 %3004  ;;  %v4040_v50 = vsel %vm8679_vm11, %v4039_v53, %v4035_v5  ;;  %v8372_v38 = vsel %vm3618_vm12, %v3619_v21, %v3617_v7  ;;  %v3573_v36 = vmul.f32 %v5436_v57, %v8248_v24 }
 0x479   : > { %v3135_v63 = vsub.f32 %v3005_v0, %v3071_v9  ;;  %v8366_v44 = vsel %vm4053_vm13, %v4040_v50, %v4052_v3  ;;  %v4425_v26 = vrot.slane %v8372_v38, %v6980_v16  ;;  %v4420_v21 = vrot.slane %v3613_v62, %v6991_v31 }
 0x47a   : > { %5447 = vrsqrt.f32 %v8340_v30  ;;  %v3570_v16 = vand.u32 2147483648, %v8297_v13  ;;  %v4382_v23 = vsel %vm8682_vm9, %v4381_v28, %v4377_v49  ;;  %vm3625_vm11 = vcmp.eq.f32.partialorder %v8264_v29, 0.0 }
 0x47b   : > { %v8363_v22 = vmax.f32 %v3135_v63, 0.0001  ;;  %v5438_v39 = vpop.eup %5437  ;;  %vm3569_vm12 = vcmp.eq.f32.partialorder %v8297_v13, 0.0  ;;  %v3575_v15 = vsel %vm3574_vm3, %v8248_v24, %v3573_v36  ;;  %v4387_v45 = vsel %vm8683_vm2, %v4386_v4, %v4382_v23 }
 0x47c   : > { %v5440_v33 = vpop.eup %5439  ;;  %v3622_v56 = vmul.f32 %v5438_v39, %v8264_v29  ;;  %v4421_v34 = vsel %vm8684_vm4, %v4420_v21, %v4416_v20  ;;  %vm3581_vm3 = vcmp.eq.f32.partialorder %v8325_v12, inf  ;;  %v3584_v59 = vand.u32 2147483648, %v8325_v12 }
 0x47d   : > { %5449 = vrsqrt.f32 %v8363_v22  ;;  %v3629_v25 = vmul.f32 %v5440_v33, %v8271_v43  ;;  %v3578_v27 = vsel %vm3576_vm0, %v3577_v37, %v3575_v15  ;;  %vm8685_vm0 = vcmask 851712  }
 0x47e   : > { %v5442_v46 = vpop.eup %5441  ;;  %v3624_v1 = vsel %vm3623_vm10, %v8264_v29, %v3622_v56  ;;  %vm3583_vm10 = vcmp.eq.f32.partialorder %v8325_v12, 0.0  ;;  %v4396_v42 = vrot.slane %v3578_v27, %v8649_v11  ;;  %vm3646_vm9 = vcmp.eq.f32.partialorder %v8340_v30, 0.0  ;;  %vm8688_vm4 = vmmov %vm8685_vm0 }
 0x47f   : > { %v3566_v17 = vmul.f32 %v5442_v46, %v8297_v13  ;;  %v5444_v40 = vpop.eup %5443  ;;  %v3631_v47 = vsel %vm3630_vm15, %v8271_v43, %v3629_v25  ;;  %v3627_v53 = vsel %vm3625_vm11, %v3626_v55, %v3624_v1  ;;  %vm3644_vm15 = vcmp.eq.f32.partialorder %v8340_v30, inf  ;;  %vm8686_vm11 = vmmov %vm8683_vm2 }
 0x480   : > { %v3587_v2 = vmul.f32 %v5444_v40, %v8310_v8  ;;  %v3634_v29 = vsel %vm3632_vm14, %v3633_v58, %v3631_v47  ;;  %v4426_v52 = vsel %vm8686_vm11, %v4425_v26, %v4421_v34  ;;  %vm3637_vm14 = vcmp.eq.f32.partialorder %v8363_v22, inf }
 0x481   : > { %v3568_v31 = vsel %vm3567_vm7, %v8297_v13, %v3566_v17  ;;  %v3591_v13 = vand.u32 2147483648, %v8310_v8  ;;  %vm3590_vm7 = vcmp.eq.f32.partialorder %v8310_v8, 0.0  ;;  %v3647_v51 = vand.u32 2147483648, %v8340_v30 }
 0x482   : > { %v3571_v6 = vsel %vm3569_vm12, %v3570_v16, %v3568_v31  ;;  %v3589_v5 = vsel %vm3588_vm6, %v8310_v8, %v3587_v2  ;;  %vm8687_vm12 = vcmask 917312   ;;  %v3640_v41 = vand.u32 2147483648, %v8363_v22 }
 0x483   : > { %v4391_v48 = vrot.slane %v3571_v6, %v8647_v18  ;;  %v3592_v8 = vsel %vm3590_vm7, %v3591_v13, %v3589_v5  ;;  %vm3639_vm2 = vcmp.eq.f32.partialorder %v8363_v22, 0.0  ;;  %v4435_v54 = vrot.slane %v3634_v29, %v8649_v11  ;;  %vm8689_vm6 = vmmov %vm8687_vm12 }
 0x484   : > { %v5446_v60 = vpop.eup %5445  ;;  %v4406_v38 = vrot.slane %v3592_v8, %v8652_v10 }
 0x485   : > { %v3580_v14 = vmul.f32 %v5446_v60, %v8325_v12  ;;  %v4392_v24 = vsel %vm8685_vm0, %v4391_v48, %v4387_v45 }
 0x487   : > { %v5448_v9 = vpop.eup %5447  ;;  %v3582_v35 = vsel %vm3581_vm3, %v8325_v12, %v3580_v14  ;;  %v4430_v12 = vrot.slane %v3627_v53, %v8647_v18  ;;  %v4397_v18 = vsel %vm8687_vm12, %v4396_v42, %v4392_v24  ;;  %vm8690_vm3 = vcmask 523264  }
 0x488   : > { %v3643_v0 = vmul.f32 %v5448_v9, %v8340_v30  ;;  %v3585_v3 = vsel %vm3583_vm10, %v3584_v59, %v3582_v35 }
 0x489   : > { %v4401_v7 = vrot.slane %v3585_v3, %v7154_v61  ;;  %v4431_v49 = vsel %vm8688_vm4, %v4430_v12, %v4426_v52 }
 0x48a   : > { %v5450_v50 = vpop.eup %5449  ;;  %v3645_v63 = vsel %vm3644_vm15, %v8340_v30, %v3643_v0  ;;  %v4436_v62 = vsel %vm8689_vm6, %v4435_v54, %v4431_v49 }
 0x48b   : > { %v3636_v43 = vmul.f32 %v5450_v50, %v8363_v22  ;;  %v4402_v57 = vsel %vm4165_vm8, %v4401_v7, %v4397_v18  ;;  %v3648_v19 = vsel %vm3646_vm9, %v3647_v51, %v3645_v63 }
 0x48c   : > { %v4407_v30 = vsel %vm4172_vm1, %v4406_v38, %v4402_v57  ;;  %v4445_v33 = vrot.slane %v3648_v19, %v8652_v10 }
 0x48d   : > { %v3638_v39 = vsel %vm3637_vm14, %v8363_v22, %v3636_v43  ;;  %v4452_v37 = vsel %vm4051_vm5, %v4407_v30, %v8222_v32 }
 0x48e   : > { %v3641_v4 = vsel %vm3639_vm2, %v3640_v41, %v3638_v39 }
 0x48f   : > { %v4440_v28 = vrot.slane %v3641_v4, %v7154_v61 }
 0x491   : > { %v4441_v11 = vsel %vm4165_vm8, %v4440_v28, %v4436_v62 }
 0x492   : > { %v4446_v22 = vsel %vm4172_vm1, %v4445_v33, %v4441_v11 }
 0x493   : > { %v4453_v20 = vsel %vm4053_vm13, %v4446_v22, %v4452_v37 }
 0x494   : > { %v4455_v61 = vsel %vm8690_vm3, %v8366_v44, %v4453_v20 }
 0x495   : > { %4456 = vst [vmem:[%s220_s23] sm:$0xff] %v4455_v61 }
 0x496   : > { %5528 = shalt.err (!%p5525_p3)
}
 0x497   : > { %s5529_s12 = scalar_lea.hbm %s8469_s6, 128  ;;  %s5533_s15 = scalar_lea.hbm %s8513_s5, 256 }
 0x498   : > { %p5530_p4 = scmp.ne.s32.totalorder %s8469_s6, %s5529_s12  ;;  %p5534_p9 = scmp.lt.s32.totalorder %s8469_s6, %s8513_s5 }
 0x499   : > { %p5535_p10 = scmp.lt.s32.totalorder %s5533_s15, %s5529_s12 }
 0x49a   : > { %p5531_p7 = pnand %p5530_p4, %p5649_p5 }
 0x49b   : > { %p5536_p11 = por %p5535_p10, %p5534_p9 }
 0x49c   : > { %p5532_p8 = pneg %p5531_p7 }
 0x49e   : > { %p5537_p12 = pnand %p5536_p11, %p5532_p8 }
 0x4a0   : > { %5540 = shalt.err (!%p5537_p12)
}
 0x4a1   : > { %5023 = dma.vmem_to_hbm [thread:$0]  (%p5649_p5), %s4472_s25, 128, %s8469_s6, %s4458_s22  }
 0x4a2 PF: > { %p5029_p13 = scmp.ge.s32.totalorder %s5575_s21, 2  ;;  %s4483_s17 = sand.u32 1, %s5563_s18  }
 0x4a3   : > { %s4484_s23 = scalar_lea.sflag [#allocation3], %s4483_s17 }
 0x4a4   : > { %p5026_p0 = pnand %p5029_p13, %p5653_p6 }
 0x4a6   : > { %p5027_p1 = pneg %p5026_p0 }
 0x4a8   : > { %5558 = dma.done.wait (%p5027_p1), %s4484_s23, 128  }
 0x4a9   : > { %5560 = vsyncadd (%p5027_p1), %s4484_s23, 4294967168  ;;  %p15_p2 = scmp.ge.s32.totalorder %s5636_s24, 4   ;;  %s8691_s18 = smov %s5567_s19 }
 0x4aa   : > { %s8692_s19 = smov %s5571_s20  ;;  %s8693_s20 = smov %s5647_s27 }
 0x4ab   : > { %s8694_s21 = smov %s5636_s24  ;;  %17 = sbr.rel (!%p15_p2) target bundleno = 3 (0x3), region = 75 }
 0x4b0   :  { %4489 = vsyncpa [#allocation3], 1 }
 0x4b1   :  { %4491 = vsyncpa [#allocation3 + $0x1], 1 }

</bundles_post_ra>
